<compile_context>
chip_gen: v7x
topology: tpu7x:2x2x1
jax: 0.10.0
libtpu: 0.0.40
codegen_flags: <defaults>
</compile_context>

<pallas_src>
import functools

import jax
import jax.numpy as jnp
from jax import lax
from jax.experimental import pallas as pl
from jax.experimental.pallas import tpu as pltpu

F32 = jnp.float32
BF16 = jnp.bfloat16
LANE = 128      # feature axis is kept 128-lane dense everywhere
ALIGN = 128     # node / edge axes are 128-aligned (they are matmul contraction dims)
SUBLANE = 8


def _round_up(v, m):
    return ((v + m - 1) // m) * m


# ------------------------------------------------------------------ fused kernel

def _buckgnn_kernel(
    # inputs ------------------------------------------------------------------
    x_in, e_in, row_g, col_g, row_s, pool,
    n_w1, n_b1, n_w2, n_b2,          # node encoder (f32, used at layer 0 only)
    q_w1, q_b1, q_w2, q_b2,          # edge encoder (f32, used at layer 0 only)
    d_w1, d_b1, d_w2, d_b2,          # decoder      (f32, used at last layer only)
    Ew1, Eb1, Ew2, Eb2,              # edge_mlp        (bf16 weights / f32 bias, streamed)
    Pw1, Pb1, Pw2, Pb2,              # node_mlp_phi    (streamed per layer)
    Gw1, Gb1, Gw2, Gb2,              # node_mlp_gamma  (streamed per layer)
    Bw1, Bb1, Bw2, Bb2,              # node_mlp_beta   (streamed per layer)
    # output ------------------------------------------------------------------
    out_ref,
    # VMEM scratch, resident across the layer grid ------------------------------
    x_scr, e_scr, rg_oh, cg_oh, sm_oh, inv_cnt,
):
    l = pl.program_id(0)
    num_layers = pl.num_programs(0)

    # ---- layer 0: encoders + gather / scatter-mean operators (built once, kept in VMEM)
    @pl.when(l == 0)
    def _init():
        h = jnp.maximum(
            jnp.dot(x_in[...], n_w1[...], preferred_element_type=F32) + n_b1[...], 0.0)
        x_scr[...] = jnp.dot(h, n_w2[...], preferred_element_type=F32) + n_b2[...]

        h = jnp.maximum(
            jnp.dot(e_in[...], q_w1[...], preferred_element_type=F32) + q_b1[...], 0.0)
        e_scr[...] = jnp.dot(h, q_w2[...], preferred_element_type=F32) + q_b2[...]

        e_pad, n_pad = rg_oh.shape
        node_iota = lax.broadcasted_iota(jnp.int32, (e_pad, n_pad), 1)
        rg_oh[...] = (row_g[...] == node_iota).astype(F32).astype(BF16)   # x[row] gather
        cg_oh[...] = (col_g[...] == node_iota).astype(F32).astype(BF16)   # x[col] gather
        edge_iota = lax.broadcasted_iota(jnp.int32, (n_pad, e_pad), 0)
        s_f = (row_s[...] == edge_iota).astype(F32)          # scatter one-hot (pad rows = -1 -> 0)
        sm_oh[...] = s_f.astype(BF16)                        # pure 0/1, exact in bf16
        counts = jnp.sum(s_f, axis=1, keepdims=True)         # in-degree counts, f32
        inv_cnt[...] = 1.0 / jnp.maximum(counts, 1.0)        # f32 mean normalization

    # ---- one GraphNetBlock (this layer's bf16 weights were streamed by the BlockSpecs)
    x = x_scr[...]                                            # f32 (N, H)
    e = e_scr[...]                                            # f32 (E, H)
    hd = x.shape[1]                                           # hidden size (static, 128)

    x16 = x.astype(BF16)
    xr = jnp.dot(rg_oh[...], x16, preferred_element_type=F32)  # x[row] (E, H), f32 out
    xc = jnp.dot(cg_oh[...], x16, preferred_element_type=F32)  # x[col] (E, H), f32 out
    xr16 = xr.astype(BF16)
    xc16 = xc.astype(BF16)
    e16 = e.astype(BF16)

    # edge_mlp(cat([x[row], x[col], edge_attr])) — split-weight bf16 matmuls, K = H each
    h = (jnp.dot(xr16, Ew1[0:hd, :], preferred_element_type=F32)
         + jnp.dot(xc16, Ew1[hd:2 * hd, :], preferred_element_type=F32)
         + jnp.dot(e16, Ew1[2 * hd:3 * hd, :], preferred_element_type=F32)
         + Eb1[...])
    h16 = jnp.maximum(h, 0.0).astype(BF16)
    e_new = jnp.dot(h16, Ew2[...], preferred_element_type=F32) + Eb2[...]

    # node_mlp_phi(cat([x[col], edge_attr_new]))
    en16 = e_new.astype(BF16)
    h = (jnp.dot(xc16, Pw1[0:hd, :], preferred_element_type=F32)
         + jnp.dot(en16, Pw1[hd:2 * hd, :], preferred_element_type=F32)
         + Pb1[...])
    h16 = jnp.maximum(h, 0.0).astype(BF16)
    msg = jnp.dot(h16, Pw2[...], preferred_element_type=F32) + Pb2[...]

    # aggregated_messages = scatter_mean(messages, row, dim_size=N)
    # bf16 one-hot scatter-sum with f32 accumulation, then f32 1/count normalization.
    agg = jnp.dot(sm_oh[...], msg.astype(BF16), preferred_element_type=F32) * inv_cnt[...]

    # node_mlp_gamma(cat([x, aggregated_messages]))
    h = (jnp.dot(x16, Gw1[0:hd, :], preferred_element_type=F32)
         + jnp.dot(agg.astype(BF16), Gw1[hd:2 * hd, :], preferred_element_type=F32)
         + Gb1[...])
    h16 = jnp.maximum(h, 0.0).astype(BF16)
    xg = jnp.dot(h16, Gw2[...], preferred_element_type=F32) + Gb2[...]

    # x = x_gamma + node_mlp_beta(x_gamma)
    h16 = jnp.maximum(
        jnp.dot(xg.astype(BF16), Bw1[...], preferred_element_type=F32) + Bb1[...],
        0.0).astype(BF16)
    x_new = xg + jnp.dot(h16, Bw2[...], preferred_element_type=F32) + Bb2[...]

    # EA_GNN residual: only for 0 < l < num_layers - 1, applied to both node and edge
    # state with the pre-block values.  Dropout = identity (eval mode).
    res = jnp.logical_and(l > 0, l < num_layers - 1).astype(F32)
    x_scr[...] = x_new + res * x
    e_scr[...] = e_new + res * e

    # ---- last layer: global mean pool + decoder (lane-dense (B_pad, 128) output)
    @pl.when(l == num_layers - 1)
    def _final():
        pooled = jnp.dot(pool[...], x_scr[...], preferred_element_type=F32)   # (B, H)
        h = jnp.maximum(
            jnp.dot(pooled, d_w1[...], preferred_element_type=F32) + d_b1[...], 0.0)
        out_ref[...] = jnp.dot(h, d_w2[...], preferred_element_type=F32) + d_b2[...]


# ------------------------------------------------------------------ specs / wrapper

def _full_spec(a):
    zeros = (0,) * a.ndim
    return pl.BlockSpec(tuple(a.shape), lambda l, z=zeros: z)


def _layer_spec(a):
    trailing = (0,) * (a.ndim - 1)
    return pl.BlockSpec((None,) + tuple(a.shape[1:]),
                        lambda l, t=trailing: (l,) + t)


def _nbytes(a):
    return int(a.size) * a.dtype.itemsize


@functools.partial(jax.jit, static_argnames=("num_layers", "num_graphs"))
def buckgnn_forward(x, edge_index, edge_attr, batch, params, num_layers, num_graphs):
    """EA_GNN / buckling / mean-pooling forward.  Returns (prediction, batch)."""
    n_nodes, f_node = x.shape
    n_edges, f_edge = edge_attr.shape
    hidden = params["node_encoder"][2].shape[1]

    # node / edge axes are 128-aligned: they are the contraction dims of the
    # gather / scatter matmuls (full MXU tiles, no masked lanes).
    n_pad = _round_up(n_nodes, ALIGN)
    e_pad = _round_up(n_edges, ALIGN)
    b_pad = _round_up(num_graphs, SUBLANE)

    # lane-dense (…, 128) zero-padded node / edge features
    x_p = jnp.zeros((n_pad, LANE), F32).at[:n_nodes, :f_node].set(x.astype(F32))
    e_p = jnp.zeros((e_pad, LANE), F32).at[:n_edges, :f_edge].set(edge_attr.astype(F32))

    # edge indices (pad rows get -1 so they gather zeros and scatter nowhere)
    row = edge_index[0].astype(jnp.int32)
    col = edge_index[1].astype(jnp.int32)
    row_pad = jnp.full((e_pad,), -1, jnp.int32).at[:n_edges].set(row)
    col_pad = jnp.full((e_pad,), -1, jnp.int32).at[:n_edges].set(col)
    row_g = row_pad.reshape(e_pad, 1)
    col_g = col_pad.reshape(e_pad, 1)
    row_s = row_pad.reshape(1, e_pad)

    # normalized global-mean-pool matrix (B_pad, N_pad)
    gids = jnp.arange(num_graphs, dtype=jnp.int32)
    graph_oh = (batch.astype(jnp.int32)[None, :] == gids[:, None]).astype(F32)
    pool = graph_oh / jnp.maximum(graph_oh.sum(axis=1, keepdims=True), 1.0)
    pool_mat = jnp.zeros((b_pad, n_pad), F32).at[:num_graphs, :n_nodes].set(pool)

    inputs = ((x_p, e_p, row_g, col_g, row_s, pool_mat)
              + tuple(params["node_encoder"]) + tuple(params["edge_encoder"])
              + tuple(params["decoder"]) + tuple(params["gn_stacked"]))
    n_static = 6 + 12                                   # non-layer-indexed inputs
    in_specs = ([_full_spec(a) for a in inputs[:n_static]]
                + [_layer_spec(a) for a in inputs[n_static:]])

    # explicit scoped-VMEM budget: scratch + 2x (double-buffered) input/output blocks,
    # ~30% headroom, clamped to stay safe on v7x (64 MiB physical VMEM).
    scratch_bytes = (n_pad * hidden * 4 + e_pad * hidden * 4          # x_scr, e_scr (f32)
                     + 2 * e_pad * n_pad * 2                          # rg_oh, cg_oh (bf16)
                     + n_pad * e_pad * 2                              # sm_oh (bf16)
                     + n_pad * LANE * 4)                              # inv_cnt (conservative)
    static_in_bytes = sum(_nbytes(a) for a in inputs[:n_static])
    layer_in_bytes = sum(_nbytes(a) // num_layers for a in inputs[n_static:])
    out_bytes = b_pad * LANE * 4
    total = scratch_bytes + 2 * (static_in_bytes + layer_in_bytes + out_bytes)
    vmem_limit = min(max(int(total * 1.3), 8 << 20), 64 << 20)

    out = pl.pallas_call(
        _buckgnn_kernel,
        out_shape=jax.ShapeDtypeStruct((b_pad, LANE), F32),
        grid=(num_layers,),
        in_specs=in_specs,
        out_specs=pl.BlockSpec((b_pad, LANE), lambda l: (0, 0)),
        scratch_shapes=[
            pltpu.VMEM((n_pad, hidden), F32),   # node hidden state (resident across layers)
            pltpu.VMEM((e_pad, hidden), F32),   # edge hidden state
            pltpu.VMEM((e_pad, n_pad), BF16),   # x[row] gather one-hot (0/1 exact in bf16)
            pltpu.VMEM((e_pad, n_pad), BF16),   # x[col] gather one-hot
            pltpu.VMEM((n_pad, e_pad), BF16),   # scatter one-hot (un-normalized)
            pltpu.VMEM((n_pad, 1), F32),        # 1/count scatter_mean normalization (f32)
        ],
        compiler_params=pltpu.CompilerParams(
            dimension_semantics=("arbitrary",),
            vmem_limit_bytes=vmem_limit),
    )(*inputs)

    # decoder output was computed lane-dense; the real scalar is column 0 of the first B rows
    return jnp.squeeze(out[:num_graphs, 0]), batch


# ------------------------------------------------------------------ parameters

def linear_params(key, fan_in, fan_out, pad_in=None, pad_out=None):
    """nn.Linear-style init, zero-padded to (pad_in, pad_out) for lane alignment."""
    pad_in = fan_in if pad_in is None else pad_in
    pad_out = fan_out if pad_out is None else pad_out
    k_w, k_b = jax.random.split(key)
    bound = 1.0 / (fan_in ** 0.5)
    w = jax.random.uniform(k_w, (fan_in, fan_out), minval=-bound, maxval=bound, dtype=F32)
    b = jax.random.uniform(k_b, (fan_out,), minval=-bound, maxval=bound, dtype=F32)
    w_p = jnp.zeros((pad_in, pad_out), F32).at[:fan_in, :fan_out].set(w)
    b_p = jnp.zeros((1, pad_out), F32).at[0, :fan_out].set(b)
    return w_p, b_p


def gn_block_params(key, hidden):
    ks = jax.random.split(key, 8)
    ew1, eb1 = linear_params(ks[0], 3 * hidden, hidden)   # edge_mlp
    ew2, eb2 = linear_params(ks[1], hidden, hidden)
    pw1, pb1 = linear_params(ks[2], 2 * hidden, hidden)   # node_mlp_phi
    pw2, pb2 = linear_params(ks[3], hidden, hidden)
    gw1, gb1 = linear_params(ks[4], 2 * hidden, hidden)   # node_mlp_gamma
    gw2, gb2 = linear_params(ks[5], hidden, hidden)
    bw1, bb1 = linear_params(ks[6], hidden, hidden)       # node_mlp_beta
    bw2, bb2 = linear_params(ks[7], hidden, hidden)
    return (ew1, eb1, ew2, eb2, pw1, pb1, pw2, pb2,
            gw1, gb1, gw2, gb2, bw1, bb1, bw2, bb2)


def make_params(key, f_node, f_edge, hidden, num_layers):
    pk = jax.random.split(key, 6 + num_layers)
    # encoder / decoder hidden width (64) is padded to 128 lanes so the l==0 / l==L-1
    # phases are fully lane-dense (padded columns/rows are exact zeros -> same math).
    node_enc = (linear_params(pk[0], f_node, 64, pad_in=LANE, pad_out=LANE)
                + linear_params(pk[1], 64, hidden, pad_in=LANE))
    edge_enc = (linear_params(pk[2], f_edge, 64, pad_in=LANE, pad_out=LANE)
                + linear_params(pk[3], 64, hidden, pad_in=LANE))
    decoder = (linear_params(pk[4], hidden, 64, pad_out=LANE)
               + linear_params(pk[5], 64, 1, pad_in=LANE, pad_out=LANE))
    blocks = [gn_block_params(pk[6 + i], hidden) for i in range(num_layers)]
    # stack per-layer GN-block params into (L, ...) arrays so one pallas_call can stream
    # them; weights (even indices) are stored bf16 (halves per-layer DMA), biases stay f32.
    gn_stacked = tuple(
        jnp.stack([blk[i] for blk in blocks]).astype(BF16 if i % 2 == 0 else F32)
        for i in range(16))
    return {"node_encoder": node_enc, "edge_encoder": edge_enc,
            "decoder": decoder, "gn_stacked": gn_stacked}


# ------------------------------------------------------------------ main

if __name__ == "__main__":
    key = jax.random.PRNGKey(0)
    N, E, B = 16, 32, 2                  # nodes, edges, graphs
    F_NODE, F_EDGE, HIDDEN = 8, 4, 128   # hidden_channels=128 (module default) -> lane-dense
    NUM_LAYERS = 3

    k_x, k_ea, k_ei, k_p = jax.random.split(key, 4)
    x = jax.random.normal(k_x, (N, F_NODE), dtype=F32)
    edge_attr = jax.random.normal(k_ea, (E, F_EDGE), dtype=F32)
    edge_index = jax.random.randint(k_ei, (2, E), 0, N, dtype=jnp.int32)
    batch = jnp.concatenate([jnp.zeros(N // 2, jnp.int32), jnp.ones(N - N // 2, jnp.int32)])

    params = make_params(k_p, F_NODE, F_EDGE, HIDDEN, NUM_LAYERS)

    # TODO(synk): non-EA_GNN branches (SAGEConv / SAGPooling / BatchNorm1d model_name values),
    # training-mode dropout, and the jnp.take / DMA-gather replacement of the one-hot gather
    # matrices (needed for very large E*N graphs on v7x) are not implemented.

    out, out_batch = buckgnn_forward(x, edge_index, edge_attr, batch, params,
                                     num_layers=NUM_LAYERS, num_graphs=B)
    jax.block_until_ready(out)
    print("KERNEL_OK")
</pallas_src>

<mosaic_0001>
module attributes {stable_mosaic.version = 11 : i64} {
  func.func @_buckgnn_kernel(%arg0: i32, %arg1: memref<128x128xf32, #tpu.memory_space<vmem>>, %arg2: memref<128x128xf32, #tpu.memory_space<vmem>>, %arg3: memref<128x1xi32, #tpu.memory_space<vmem>>, %arg4: memref<128x1xi32, #tpu.memory_space<vmem>>, %arg5: memref<1x128xi32, #tpu.memory_space<vmem>>, %arg6: memref<8x128xf32, #tpu.memory_space<vmem>>, %arg7: memref<128x128xf32, #tpu.memory_space<vmem>>, %arg8: memref<1x128xf32, #tpu.memory_space<vmem>>, %arg9: memref<128x128xf32, #tpu.memory_space<vmem>>, %arg10: memref<1x128xf32, #tpu.memory_space<vmem>>, %arg11: memref<128x128xf32, #tpu.memory_space<vmem>>, %arg12: memref<1x128xf32, #tpu.memory_space<vmem>>, %arg13: memref<128x128xf32, #tpu.memory_space<vmem>>, %arg14: memref<1x128xf32, #tpu.memory_space<vmem>>, %arg15: memref<128x128xf32, #tpu.memory_space<vmem>>, %arg16: memref<1x128xf32, #tpu.memory_space<vmem>>, %arg17: memref<128x128xf32, #tpu.memory_space<vmem>>, %arg18: memref<1x128xf32, #tpu.memory_space<vmem>>, %arg19: memref<1x384x128xbf16, #tpu.memory_space<vmem>>, %arg20: memref<1x1x128xf32, #tpu.memory_space<vmem>>, %arg21: memref<1x128x128xbf16, #tpu.memory_space<vmem>>, %arg22: memref<1x1x128xf32, #tpu.memory_space<vmem>>, %arg23: memref<1x256x128xbf16, #tpu.memory_space<vmem>>, %arg24: memref<1x1x128xf32, #tpu.memory_space<vmem>>, %arg25: memref<1x128x128xbf16, #tpu.memory_space<vmem>>, %arg26: memref<1x1x128xf32, #tpu.memory_space<vmem>>, %arg27: memref<1x256x128xbf16, #tpu.memory_space<vmem>>, %arg28: memref<1x1x128xf32, #tpu.memory_space<vmem>>, %arg29: memref<1x128x128xbf16, #tpu.memory_space<vmem>>, %arg30: memref<1x1x128xf32, #tpu.memory_space<vmem>>, %arg31: memref<1x128x128xbf16, #tpu.memory_space<vmem>>, %arg32: memref<1x1x128xf32, #tpu.memory_space<vmem>>, %arg33: memref<1x128x128xbf16, #tpu.memory_space<vmem>>, %arg34: memref<1x1x128xf32, #tpu.memory_space<vmem>>, %arg35: memref<8x128xf32, #tpu.memory_space<vmem>>, %arg36: memref<128x128xf32, #tpu.memory_space<vmem>>, %arg37: memref<128x128xf32, #tpu.memory_space<vmem>>, %arg38: memref<128x128xbf16, #tpu.memory_space<vmem>>, %arg39: memref<128x128xbf16, #tpu.memory_space<vmem>>, %arg40: memref<128x128xbf16, #tpu.memory_space<vmem>>, %arg41: memref<128x1xf32, #tpu.memory_space<vmem>>) attributes {dimension_semantics = [#tpu.dimension_semantics<arbitrary>], iteration_bounds = array<i64: 3>, scalar_prefetch = 0 : i64, scratch_operands = 6 : i64, tpu.core_type = #tpu.core_type<tc>, window_params = [{pipeline_mode = #tpu.pipeline_mode<synchronous>, transform_indices = @transform_0, window_bounds = array<i64: 128, 128>}, {pipeline_mode = #tpu.pipeline_mode<synchronous>, transform_indices = @transform_1, window_bounds = array<i64: 128, 128>}, {pipeline_mode = #tpu.pipeline_mode<synchronous>, transform_indices = @transform_2, window_bounds = array<i64: 128, 1>}, {pipeline_mode = #tpu.pipeline_mode<synchronous>, transform_indices = @transform_3, window_bounds = array<i64: 128, 1>}, {pipeline_mode = #tpu.pipeline_mode<synchronous>, transform_indices = @transform_4, window_bounds = array<i64: 1, 128>}, {pipeline_mode = #tpu.pipeline_mode<synchronous>, transform_indices = @transform_5, window_bounds = array<i64: 8, 128>}, {pipeline_mode = #tpu.pipeline_mode<synchronous>, transform_indices = @transform_6, window_bounds = array<i64: 128, 128>}, {pipeline_mode = #tpu.pipeline_mode<synchronous>, transform_indices = @transform_7, window_bounds = array<i64: 1, 128>}, {pipeline_mode = #tpu.pipeline_mode<synchronous>, transform_indices = @transform_8, window_bounds = array<i64: 128, 128>}, {pipeline_mode = #tpu.pipeline_mode<synchronous>, transform_indices = @transform_9, window_bounds = array<i64: 1, 128>}, {pipeline_mode = #tpu.pipeline_mode<synchronous>, transform_indices = @transform_10, window_bounds = array<i64: 128, 128>}, {pipeline_mode = #tpu.pipeline_mode<synchronous>, transform_indices = @transform_11, window_bounds = array<i64: 1, 128>}, {pipeline_mode = #tpu.pipeline_mode<synchronous>, transform_indices = @transform_12, window_bounds = array<i64: 128, 128>}, {pipeline_mode = #tpu.pipeline_mode<synchronous>, transform_indices = @transform_13, window_bounds = array<i64: 1, 128>}, {pipeline_mode = #tpu.pipeline_mode<synchronous>, transform_indices = @transform_14, window_bounds = array<i64: 128, 128>}, {pipeline_mode = #tpu.pipeline_mode<synchronous>, transform_indices = @transform_15, window_bounds = array<i64: 1, 128>}, {pipeline_mode = #tpu.pipeline_mode<synchronous>, transform_indices = @transform_16, window_bounds = array<i64: 128, 128>}, {pipeline_mode = #tpu.pipeline_mode<synchronous>, transform_indices = @transform_17, window_bounds = array<i64: 1, 128>}, {transform_indices = @transform_18, window_bounds = array<i64: 1, 384, 128>}, {transform_indices = @transform_19, window_bounds = array<i64: 1, 1, 128>}, {transform_indices = @transform_20, window_bounds = array<i64: 1, 128, 128>}, {transform_indices = @transform_21, window_bounds = array<i64: 1, 1, 128>}, {transform_indices = @transform_22, window_bounds = array<i64: 1, 256, 128>}, {transform_indices = @transform_23, window_bounds = array<i64: 1, 1, 128>}, {transform_indices = @transform_24, window_bounds = array<i64: 1, 128, 128>}, {transform_indices = @transform_25, window_bounds = array<i64: 1, 1, 128>}, {transform_indices = @transform_26, window_bounds = array<i64: 1, 256, 128>}, {transform_indices = @transform_27, window_bounds = array<i64: 1, 1, 128>}, {transform_indices = @transform_28, window_bounds = array<i64: 1, 128, 128>}, {transform_indices = @transform_29, window_bounds = array<i64: 1, 1, 128>}, {transform_indices = @transform_30, window_bounds = array<i64: 1, 128, 128>}, {transform_indices = @transform_31, window_bounds = array<i64: 1, 1, 128>}, {transform_indices = @transform_32, window_bounds = array<i64: 1, 128, 128>}, {transform_indices = @transform_33, window_bounds = array<i64: 1, 1, 128>}, {pipeline_mode = #tpu.pipeline_mode<synchronous>, transform_indices = @transform_34, window_bounds = array<i64: 8, 128>}]} {
    %c0_i32 = arith.constant 0 : i32
    %0 = arith.cmpi eq, %arg0, %c0_i32 : i32
    %1 = arith.extui %0 : i1 to i32
    %c0_i32_0 = arith.constant 0 : i32
    %2 = arith.cmpi ne, %1, %c0_i32_0 : i32
    scf.if %2 {
      %c0_95 = arith.constant 0 : index
      %c0_96 = arith.constant 0 : index
      %123 = vector.load %arg1[%c0_95, %c0_96] : memref<128x128xf32, #tpu.memory_space<vmem>>, vector<128x128xf32>
      %c0_97 = arith.constant 0 : index
      %c0_98 = arith.constant 0 : index
      %124 = vector.load %arg7[%c0_97, %c0_98] : memref<128x128xf32, #tpu.memory_space<vmem>>, vector<128x128xf32>
      %cst_99 = arith.constant dense<0.000000e+00> : vector<128x128xf32>
      %125 = tpu.matmul %123, %124, %cst_99 {dimension_numbers = #tpu.dot_dimension_numbers<[1], [0], [0], [1], [0, 0, 1, 1], [], []>} : vector<128x128xf32>, vector<128x128xf32>, vector<128x128xf32> -> vector<128x128xf32>
      %c0_100 = arith.constant 0 : index
      %c0_101 = arith.constant 0 : index
      %126 = vector.load %arg8[%c0_100, %c0_101] : memref<1x128xf32, #tpu.memory_space<vmem>>, vector<1x128xf32>
      %127 = vector.broadcast %126 : vector<1x128xf32> to vector<128x128xf32>
      %128 = arith.addf %125, %127 : vector<128x128xf32>
      %cst_102 = arith.constant 0.000000e+00 : f32
      %129 = vector.broadcast %cst_102 : f32 to vector<128x128xf32>
      %130 = arith.maximumf %128, %129 : vector<128x128xf32>
      %c0_103 = arith.constant 0 : index
      %c0_104 = arith.constant 0 : index
      %131 = vector.load %arg9[%c0_103, %c0_104] : memref<128x128xf32, #tpu.memory_space<vmem>>, vector<128x128xf32>
      %cst_105 = arith.constant dense<0.000000e+00> : vector<128x128xf32>
      %132 = tpu.matmul %130, %131, %cst_105 {dimension_numbers = #tpu.dot_dimension_numbers<[1], [0], [0], [1], [0, 0, 1, 1], [], []>} : vector<128x128xf32>, vector<128x128xf32>, vector<128x128xf32> -> vector<128x128xf32>
      %c0_106 = arith.constant 0 : index
      %c0_107 = arith.constant 0 : index
      %133 = vector.load %arg10[%c0_106, %c0_107] : memref<1x128xf32, #tpu.memory_space<vmem>>, vector<1x128xf32>
      %134 = vector.broadcast %133 : vector<1x128xf32> to vector<128x128xf32>
      %135 = arith.addf %132, %134 : vector<128x128xf32>
      %c0_108 = arith.constant 0 : index
      %c0_109 = arith.constant 0 : index
      %136 = vector.load %arg36[%c0_108, %c0_109] : memref<128x128xf32, #tpu.memory_space<vmem>>, vector<128x128xf32>
      tpu.vector_store %arg36[%c0_108, %c0_109], %135 {strides = array<i32>} : memref<128x128xf32, #tpu.memory_space<vmem>>, vector<128x128xf32>,
      %c0_110 = arith.constant 0 : index
      %c0_111 = arith.constant 0 : index
      %137 = vector.load %arg2[%c0_110, %c0_111] : memref<128x128xf32, #tpu.memory_space<vmem>>, vector<128x128xf32>
      %c0_112 = arith.constant 0 : index
      %c0_113 = arith.constant 0 : index
      %138 = vector.load %arg11[%c0_112, %c0_113] : memref<128x128xf32, #tpu.memory_space<vmem>>, vector<128x128xf32>
      %cst_114 = arith.constant dense<0.000000e+00> : vector<128x128xf32>
      %139 = tpu.matmul %137, %138, %cst_114 {dimension_numbers = #tpu.dot_dimension_numbers<[1], [0], [0], [1], [0, 0, 1, 1], [], []>} : vector<128x128xf32>, vector<128x128xf32>, vector<128x128xf32> -> vector<128x128xf32>
      %c0_115 = arith.constant 0 : index
      %c0_116 = arith.constant 0 : index
      %140 = vector.load %arg12[%c0_115, %c0_116] : memref<1x128xf32, #tpu.memory_space<vmem>>, vector<1x128xf32>
      %141 = vector.broadcast %140 : vector<1x128xf32> to vector<128x128xf32>
      %142 = arith.addf %139, %141 : vector<128x128xf32>
      %cst_117 = arith.constant 0.000000e+00 : f32
      %143 = vector.broadcast %cst_117 : f32 to vector<128x128xf32>
      %144 = arith.maximumf %142, %143 : vector<128x128xf32>
      %c0_118 = arith.constant 0 : index
      %c0_119 = arith.constant 0 : index
      %145 = vector.load %arg13[%c0_118, %c0_119] : memref<128x128xf32, #tpu.memory_space<vmem>>, vector<128x128xf32>
      %cst_120 = arith.constant dense<0.000000e+00> : vector<128x128xf32>
      %146 = tpu.matmul %144, %145, %cst_120 {dimension_numbers = #tpu.dot_dimension_numbers<[1], [0], [0], [1], [0, 0, 1, 1], [], []>} : vector<128x128xf32>, vector<128x128xf32>, vector<128x128xf32> -> vector<128x128xf32>
      %c0_121 = arith.constant 0 : index
      %c0_122 = arith.constant 0 : index
      %147 = vector.load %arg14[%c0_121, %c0_122] : memref<1x128xf32, #tpu.memory_space<vmem>>, vector<1x128xf32>
      %148 = vector.broadcast %147 : vector<1x128xf32> to vector<128x128xf32>
      %149 = arith.addf %146, %148 : vector<128x128xf32>
      %c0_123 = arith.constant 0 : index
      %c0_124 = arith.constant 0 : index
      %150 = vector.load %arg37[%c0_123, %c0_124] : memref<128x128xf32, #tpu.memory_space<vmem>>, vector<128x128xf32>
      tpu.vector_store %arg37[%c0_123, %c0_124], %149 {strides = array<i32>} : memref<128x128xf32, #tpu.memory_space<vmem>>, vector<128x128xf32>,
      %151 = tpu.iota {dimensions = array<i32: 1>} : vector<128x128xi32>
      %c0_125 = arith.constant 0 : index
      %c0_126 = arith.constant 0 : index
      %152 = vector.load %arg3[%c0_125, %c0_126] : memref<128x1xi32, #tpu.memory_space<vmem>>, vector<128x1xi32>
      %153 = vector.broadcast %152 : vector<128x1xi32> to vector<128x128xi32>
      %154 = arith.cmpi eq, %153, %151 : vector<128x128xi32>
      %155 = arith.extui %154 : vector<128x128xi1> to vector<128x128xi32>
      %156 = arith.sitofp %155 : vector<128x128xi32> to vector<128x128xf32>
      %157 = arith.truncf %156 : vector<128x128xf32> to vector<128x128xbf16>
      %c0_127 = arith.constant 0 : index
      %c0_128 = arith.constant 0 : index
      %158 = vector.load %arg38[%c0_127, %c0_128] : memref<128x128xbf16, #tpu.memory_space<vmem>>, vector<128x128xbf16>
      tpu.vector_store %arg38[%c0_127, %c0_128], %157 {strides = array<i32>} : memref<128x128xbf16, #tpu.memory_space<vmem>>, vector<128x128xbf16>,
      %c0_129 = arith.constant 0 : index
      %c0_130 = arith.constant 0 : index
      %159 = vector.load %arg4[%c0_129, %c0_130] : memref<128x1xi32, #tpu.memory_space<vmem>>, vector<128x1xi32>
      %160 = vector.broadcast %159 : vector<128x1xi32> to vector<128x128xi32>
      %161 = arith.cmpi eq, %160, %151 : vector<128x128xi32>
      %162 = arith.extui %161 : vector<128x128xi1> to vector<128x128xi32>
      %163 = arith.sitofp %162 : vector<128x128xi32> to vector<128x128xf32>
      %164 = arith.truncf %163 : vector<128x128xf32> to vector<128x128xbf16>
      %c0_131 = arith.constant 0 : index
      %c0_132 = arith.constant 0 : index
      %165 = vector.load %arg39[%c0_131, %c0_132] : memref<128x128xbf16, #tpu.memory_space<vmem>>, vector<128x128xbf16>
      tpu.vector_store %arg39[%c0_131, %c0_132], %164 {strides = array<i32>} : memref<128x128xbf16, #tpu.memory_space<vmem>>, vector<128x128xbf16>,
      %166 = tpu.iota {dimensions = array<i32: 0>} : vector<128x128xi32>
      %c0_133 = arith.constant 0 : index
      %c0_134 = arith.constant 0 : index
      %167 = vector.load %arg5[%c0_133, %c0_134] : memref<1x128xi32, #tpu.memory_space<vmem>>, vector<1x128xi32>
      %168 = vector.broadcast %167 : vector<1x128xi32> to vector<128x128xi32>
      %169 = arith.cmpi eq, %168, %166 : vector<128x128xi32>
      %170 = arith.extui %169 : vector<128x128xi1> to vector<128x128xi32>
      %171 = arith.sitofp %170 : vector<128x128xi32> to vector<128x128xf32>
      %172 = arith.truncf %171 : vector<128x128xf32> to vector<128x128xbf16>
      %c0_135 = arith.constant 0 : index
      %c0_136 = arith.constant 0 : index
      %173 = vector.load %arg40[%c0_135, %c0_136] : memref<128x128xbf16, #tpu.memory_space<vmem>>, vector<128x128xbf16>
      tpu.vector_store %arg40[%c0_135, %c0_136], %172 {strides = array<i32>} : memref<128x128xbf16, #tpu.memory_space<vmem>>, vector<128x128xbf16>,
      %cst_137 = arith.constant dense<0.000000e+00> : vector<128xf32>
      %174 = vector.multi_reduction <add>, %171, %cst_137 [1] : vector<128x128xf32> to vector<128xf32>
      %175 = vector.shape_cast %174 : vector<128xf32> to vector<128x1xf32>
      %cst_138 = arith.constant 1.000000e+00 : f32
      %176 = vector.broadcast %cst_138 : f32 to vector<128x1xf32>
      %177 = arith.maximumf %175, %176 : vector<128x1xf32>
      %cst_139 = arith.constant 1.000000e+00 : f32
      %178 = vector.broadcast %cst_139 : f32 to vector<128x1xf32>
      %179 = arith.divf %178, %177 : vector<128x1xf32>
      %c0_140 = arith.constant 0 : index
      %c0_141 = arith.constant 0 : index
      %180 = vector.load %arg41[%c0_140, %c0_141] : memref<128x1xf32, #tpu.memory_space<vmem>>, vector<128x1xf32>
      tpu.vector_store %arg41[%c0_140, %c0_141], %179 {strides = array<i32>} : memref<128x1xf32, #tpu.memory_space<vmem>>, vector<128x1xf32>,
    } else {
    }
    %c0 = arith.constant 0 : index
    %c0_1 = arith.constant 0 : index
    %3 = vector.load %arg36[%c0, %c0_1] : memref<128x128xf32, #tpu.memory_space<vmem>>, vector<128x128xf32>
    %c0_2 = arith.constant 0 : index
    %c0_3 = arith.constant 0 : index
    %4 = vector.load %arg37[%c0_2, %c0_3] : memref<128x128xf32, #tpu.memory_space<vmem>>, vector<128x128xf32>
    %5 = arith.truncf %3 : vector<128x128xf32> to vector<128x128xbf16>
    %c0_4 = arith.constant 0 : index
    %c0_5 = arith.constant 0 : index
    %6 = vector.load %arg38[%c0_4, %c0_5] : memref<128x128xbf16, #tpu.memory_space<vmem>>, vector<128x128xbf16>
    %cst = arith.constant dense<0.000000e+00> : vector<128x128xf32>
    %7 = tpu.matmul %6, %5, %cst {dimension_numbers = #tpu.dot_dimension_numbers<[1], [0], [0], [1], [0, 0, 1, 1], [], []>} : vector<128x128xbf16>, vector<128x128xbf16>, vector<128x128xf32> -> vector<128x128xf32>
    %c0_6 = arith.constant 0 : index
    %c0_7 = arith.constant 0 : index
    %8 = vector.load %arg39[%c0_6, %c0_7] : memref<128x128xbf16, #tpu.memory_space<vmem>>, vector<128x128xbf16>
    %cst_8 = arith.constant dense<0.000000e+00> : vector<128x128xf32>
    %9 = tpu.matmul %8, %5, %cst_8 {dimension_numbers = #tpu.dot_dimension_numbers<[1], [0], [0], [1], [0, 0, 1, 1], [], []>} : vector<128x128xbf16>, vector<128x128xbf16>, vector<128x128xf32> -> vector<128x128xf32>
    %10 = arith.truncf %7 : vector<128x128xf32> to vector<128x128xbf16>
    %11 = arith.truncf %9 : vector<128x128xf32> to vector<128x128xbf16>
    %12 = arith.truncf %4 : vector<128x128xf32> to vector<128x128xbf16>
    %c0_9 = arith.constant 0 : index
    %c0_10 = arith.constant 0 : index
    %c0_11 = arith.constant 0 : index
    %13 = vector.load %arg19[%c0_9, %c0_10, %c0_11] : memref<1x384x128xbf16, #tpu.memory_space<vmem>>, vector<1x128x128xbf16>
    %14 = vector.shape_cast %13 : vector<1x128x128xbf16> to vector<128x128xbf16>
    %cst_12 = arith.constant dense<0.000000e+00> : vector<128x128xf32>
    %15 = tpu.matmul %10, %14, %cst_12 {dimension_numbers = #tpu.dot_dimension_numbers<[1], [0], [0], [1], [0, 0, 1, 1], [], []>} : vector<128x128xbf16>, vector<128x128xbf16>, vector<128x128xf32> -> vector<128x128xf32>
    %c0_13 = arith.constant 0 : index
    %c128 = arith.constant 128 : index
    %c0_14 = arith.constant 0 : index
    %16 = vector.load %arg19[%c0_13, %c128, %c0_14] : memref<1x384x128xbf16, #tpu.memory_space<vmem>>, vector<1x128x128xbf16>
    %17 = vector.shape_cast %16 : vector<1x128x128xbf16> to vector<128x128xbf16>
    %cst_15 = arith.constant dense<0.000000e+00> : vector<128x128xf32>
    %18 = tpu.matmul %11, %17, %cst_15 {dimension_numbers = #tpu.dot_dimension_numbers<[1], [0], [0], [1], [0, 0, 1, 1], [], []>} : vector<128x128xbf16>, vector<128x128xbf16>, vector<128x128xf32> -> vector<128x128xf32>
    %19 = arith.addf %15, %18 : vector<128x128xf32>
    %c0_16 = arith.constant 0 : index
    %c256 = arith.constant 256 : index
    %c0_17 = arith.constant 0 : index
    %20 = vector.load %arg19[%c0_16, %c256, %c0_17] : memref<1x384x128xbf16, #tpu.memory_space<vmem>>, vector<1x128x128xbf16>
    %21 = vector.shape_cast %20 : vector<1x128x128xbf16> to vector<128x128xbf16>
    %cst_18 = arith.constant dense<0.000000e+00> : vector<128x128xf32>
    %22 = tpu.matmul %12, %21, %cst_18 {dimension_numbers = #tpu.dot_dimension_numbers<[1], [0], [0], [1], [0, 0, 1, 1], [], []>} : vector<128x128xbf16>, vector<128x128xbf16>, vector<128x128xf32> -> vector<128x128xf32>
    %23 = arith.addf %19, %22 : vector<128x128xf32>
    %c0_19 = arith.constant 0 : index
    %c0_20 = arith.constant 0 : index
    %c0_21 = arith.constant 0 : index
    %24 = vector.load %arg20[%c0_19, %c0_20, %c0_21] : memref<1x1x128xf32, #tpu.memory_space<vmem>>, vector<1x1x128xf32>
    %25 = vector.shape_cast %24 : vector<1x1x128xf32> to vector<1x128xf32>
    %26 = vector.broadcast %25 : vector<1x128xf32> to vector<128x128xf32>
    %27 = arith.addf %23, %26 : vector<128x128xf32>
    %cst_22 = arith.constant 0.000000e+00 : f32
    %28 = vector.broadcast %cst_22 : f32 to vector<128x128xf32>
    %29 = arith.maximumf %27, %28 : vector<128x128xf32>
    %30 = arith.truncf %29 : vector<128x128xf32> to vector<128x128xbf16>
    %c0_23 = arith.constant 0 : index
    %c0_24 = arith.constant 0 : index
    %c0_25 = arith.constant 0 : index
    %31 = vector.load %arg21[%c0_23, %c0_24, %c0_25] : memref<1x128x128xbf16, #tpu.memory_space<vmem>>, vector<1x128x128xbf16>
    %32 = vector.shape_cast %31 : vector<1x128x128xbf16> to vector<128x128xbf16>
    %cst_26 = arith.constant dense<0.000000e+00> : vector<128x128xf32>
    %33 = tpu.matmul %30, %32, %cst_26 {dimension_numbers = #tpu.dot_dimension_numbers<[1], [0], [0], [1], [0, 0, 1, 1], [], []>} : vector<128x128xbf16>, vector<128x128xbf16>, vector<128x128xf32> -> vector<128x128xf32>
    %c0_27 = arith.constant 0 : index
    %c0_28 = arith.constant 0 : index
    %c0_29 = arith.constant 0 : index
    %34 = vector.load %arg22[%c0_27, %c0_28, %c0_29] : memref<1x1x128xf32, #tpu.memory_space<vmem>>, vector<1x1x128xf32>
    %35 = vector.shape_cast %34 : vector<1x1x128xf32> to vector<1x128xf32>
    %36 = vector.broadcast %35 : vector<1x128xf32> to vector<128x128xf32>
    %37 = arith.addf %33, %36 : vector<128x128xf32>
    %38 = arith.truncf %37 : vector<128x128xf32> to vector<128x128xbf16>
    %c0_30 = arith.constant 0 : index
    %c0_31 = arith.constant 0 : index
    %c0_32 = arith.constant 0 : index
    %39 = vector.load %arg23[%c0_30, %c0_31, %c0_32] : memref<1x256x128xbf16, #tpu.memory_space<vmem>>, vector<1x128x128xbf16>
    %40 = vector.shape_cast %39 : vector<1x128x128xbf16> to vector<128x128xbf16>
    %cst_33 = arith.constant dense<0.000000e+00> : vector<128x128xf32>
    %41 = tpu.matmul %11, %40, %cst_33 {dimension_numbers = #tpu.dot_dimension_numbers<[1], [0], [0], [1], [0, 0, 1, 1], [], []>} : vector<128x128xbf16>, vector<128x128xbf16>, vector<128x128xf32> -> vector<128x128xf32>
    %c0_34 = arith.constant 0 : index
    %c128_35 = arith.constant 128 : index
    %c0_36 = arith.constant 0 : index
    %42 = vector.load %arg23[%c0_34, %c128_35, %c0_36] : memref<1x256x128xbf16, #tpu.memory_space<vmem>>, vector<1x128x128xbf16>
    %43 = vector.shape_cast %42 : vector<1x128x128xbf16> to vector<128x128xbf16>
    %cst_37 = arith.constant dense<0.000000e+00> : vector<128x128xf32>
    %44 = tpu.matmul %38, %43, %cst_37 {dimension_numbers = #tpu.dot_dimension_numbers<[1], [0], [0], [1], [0, 0, 1, 1], [], []>} : vector<128x128xbf16>, vector<128x128xbf16>, vector<128x128xf32> -> vector<128x128xf32>
    %45 = arith.addf %41, %44 : vector<128x128xf32>
    %c0_38 = arith.constant 0 : index
    %c0_39 = arith.constant 0 : index
    %c0_40 = arith.constant 0 : index
    %46 = vector.load %arg24[%c0_38, %c0_39, %c0_40] : memref<1x1x128xf32, #tpu.memory_space<vmem>>, vector<1x1x128xf32>
    %47 = vector.shape_cast %46 : vector<1x1x128xf32> to vector<1x128xf32>
    %48 = vector.broadcast %47 : vector<1x128xf32> to vector<128x128xf32>
    %49 = arith.addf %45, %48 : vector<128x128xf32>
    %cst_41 = arith.constant 0.000000e+00 : f32
    %50 = vector.broadcast %cst_41 : f32 to vector<128x128xf32>
    %51 = arith.maximumf %49, %50 : vector<128x128xf32>
    %52 = arith.truncf %51 : vector<128x128xf32> to vector<128x128xbf16>
    %c0_42 = arith.constant 0 : index
    %c0_43 = arith.constant 0 : index
    %c0_44 = arith.constant 0 : index
    %53 = vector.load %arg25[%c0_42, %c0_43, %c0_44] : memref<1x128x128xbf16, #tpu.memory_space<vmem>>, vector<1x128x128xbf16>
    %54 = vector.shape_cast %53 : vector<1x128x128xbf16> to vector<128x128xbf16>
    %cst_45 = arith.constant dense<0.000000e+00> : vector<128x128xf32>
    %55 = tpu.matmul %52, %54, %cst_45 {dimension_numbers = #tpu.dot_dimension_numbers<[1], [0], [0], [1], [0, 0, 1, 1], [], []>} : vector<128x128xbf16>, vector<128x128xbf16>, vector<128x128xf32> -> vector<128x128xf32>
    %c0_46 = arith.constant 0 : index
    %c0_47 = arith.constant 0 : index
    %c0_48 = arith.constant 0 : index
    %56 = vector.load %arg26[%c0_46, %c0_47, %c0_48] : memref<1x1x128xf32, #tpu.memory_space<vmem>>, vector<1x1x128xf32>
    %57 = vector.shape_cast %56 : vector<1x1x128xf32> to vector<1x128xf32>
    %58 = vector.broadcast %57 : vector<1x128xf32> to vector<128x128xf32>
    %59 = arith.addf %55, %58 : vector<128x128xf32>
    %c0_49 = arith.constant 0 : index
    %c0_50 = arith.constant 0 : index
    %60 = vector.load %arg40[%c0_49, %c0_50] : memref<128x128xbf16, #tpu.memory_space<vmem>>, vector<128x128xbf16>
    %61 = arith.truncf %59 : vector<128x128xf32> to vector<128x128xbf16>
    %cst_51 = arith.constant dense<0.000000e+00> : vector<128x128xf32>
    %62 = tpu.matmul %60, %61, %cst_51 {dimension_numbers = #tpu.dot_dimension_numbers<[1], [0], [0], [1], [0, 0, 1, 1], [], []>} : vector<128x128xbf16>, vector<128x128xbf16>, vector<128x128xf32> -> vector<128x128xf32>
    %c0_52 = arith.constant 0 : index
    %c0_53 = arith.constant 0 : index
    %63 = vector.load %arg41[%c0_52, %c0_53] : memref<128x1xf32, #tpu.memory_space<vmem>>, vector<128x1xf32>
    %64 = vector.broadcast %63 : vector<128x1xf32> to vector<128x128xf32>
    %65 = arith.mulf %62, %64 : vector<128x128xf32>
    %c0_54 = arith.constant 0 : index
    %c0_55 = arith.constant 0 : index
    %c0_56 = arith.constant 0 : index
    %66 = vector.load %arg27[%c0_54, %c0_55, %c0_56] : memref<1x256x128xbf16, #tpu.memory_space<vmem>>, vector<1x128x128xbf16>
    %67 = vector.shape_cast %66 : vector<1x128x128xbf16> to vector<128x128xbf16>
    %cst_57 = arith.constant dense<0.000000e+00> : vector<128x128xf32>
    %68 = tpu.matmul %5, %67, %cst_57 {dimension_numbers = #tpu.dot_dimension_numbers<[1], [0], [0], [1], [0, 0, 1, 1], [], []>} : vector<128x128xbf16>, vector<128x128xbf16>, vector<128x128xf32> -> vector<128x128xf32>
    %69 = arith.truncf %65 : vector<128x128xf32> to vector<128x128xbf16>
    %c0_58 = arith.constant 0 : index
    %c128_59 = arith.constant 128 : index
    %c0_60 = arith.constant 0 : index
    %70 = vector.load %arg27[%c0_58, %c128_59, %c0_60] : memref<1x256x128xbf16, #tpu.memory_space<vmem>>, vector<1x128x128xbf16>
    %71 = vector.shape_cast %70 : vector<1x128x128xbf16> to vector<128x128xbf16>
    %cst_61 = arith.constant dense<0.000000e+00> : vector<128x128xf32>
    %72 = tpu.matmul %69, %71, %cst_61 {dimension_numbers = #tpu.dot_dimension_numbers<[1], [0], [0], [1], [0, 0, 1, 1], [], []>} : vector<128x128xbf16>, vector<128x128xbf16>, vector<128x128xf32> -> vector<128x128xf32>
    %73 = arith.addf %68, %72 : vector<128x128xf32>
    %c0_62 = arith.constant 0 : index
    %c0_63 = arith.constant 0 : index
    %c0_64 = arith.constant 0 : index
    %74 = vector.load %arg28[%c0_62, %c0_63, %c0_64] : memref<1x1x128xf32, #tpu.memory_space<vmem>>, vector<1x1x128xf32>
    %75 = vector.shape_cast %74 : vector<1x1x128xf32> to vector<1x128xf32>
    %76 = vector.broadcast %75 : vector<1x128xf32> to vector<128x128xf32>
    %77 = arith.addf %73, %76 : vector<128x128xf32>
    %cst_65 = arith.constant 0.000000e+00 : f32
    %78 = vector.broadcast %cst_65 : f32 to vector<128x128xf32>
    %79 = arith.maximumf %77, %78 : vector<128x128xf32>
    %80 = arith.truncf %79 : vector<128x128xf32> to vector<128x128xbf16>
    %c0_66 = arith.constant 0 : index
    %c0_67 = arith.constant 0 : index
    %c0_68 = arith.constant 0 : index
    %81 = vector.load %arg29[%c0_66, %c0_67, %c0_68] : memref<1x128x128xbf16, #tpu.memory_space<vmem>>, vector<1x128x128xbf16>
    %82 = vector.shape_cast %81 : vector<1x128x128xbf16> to vector<128x128xbf16>
    %cst_69 = arith.constant dense<0.000000e+00> : vector<128x128xf32>
    %83 = tpu.matmul %80, %82, %cst_69 {dimension_numbers = #tpu.dot_dimension_numbers<[1], [0], [0], [1], [0, 0, 1, 1], [], []>} : vector<128x128xbf16>, vector<128x128xbf16>, vector<128x128xf32> -> vector<128x128xf32>
    %c0_70 = arith.constant 0 : index
    %c0_71 = arith.constant 0 : index
    %c0_72 = arith.constant 0 : index
    %84 = vector.load %arg30[%c0_70, %c0_71, %c0_72] : memref<1x1x128xf32, #tpu.memory_space<vmem>>, vector<1x1x128xf32>
    %85 = vector.shape_cast %84 : vector<1x1x128xf32> to vector<1x128xf32>
    %86 = vector.broadcast %85 : vector<1x128xf32> to vector<128x128xf32>
    %87 = arith.addf %83, %86 : vector<128x128xf32>
    %88 = arith.truncf %87 : vector<128x128xf32> to vector<128x128xbf16>
    %c0_73 = arith.constant 0 : index
    %c0_74 = arith.constant 0 : index
    %c0_75 = arith.constant 0 : index
    %89 = vector.load %arg31[%c0_73, %c0_74, %c0_75] : memref<1x128x128xbf16, #tpu.memory_space<vmem>>, vector<1x128x128xbf16>
    %90 = vector.shape_cast %89 : vector<1x128x128xbf16> to vector<128x128xbf16>
    %cst_76 = arith.constant dense<0.000000e+00> : vector<128x128xf32>
    %91 = tpu.matmul %88, %90, %cst_76 {dimension_numbers = #tpu.dot_dimension_numbers<[1], [0], [0], [1], [0, 0, 1, 1], [], []>} : vector<128x128xbf16>, vector<128x128xbf16>, vector<128x128xf32> -> vector<128x128xf32>
    %c0_77 = arith.constant 0 : index
    %c0_78 = arith.constant 0 : index
    %c0_79 = arith.constant 0 : index
    %92 = vector.load %arg32[%c0_77, %c0_78, %c0_79] : memref<1x1x128xf32, #tpu.memory_space<vmem>>, vector<1x1x128xf32>
    %93 = vector.shape_cast %92 : vector<1x1x128xf32> to vector<1x128xf32>
    %94 = vector.broadcast %93 : vector<1x128xf32> to vector<128x128xf32>
    %95 = arith.addf %91, %94 : vector<128x128xf32>
    %cst_80 = arith.constant 0.000000e+00 : f32
    %96 = vector.broadcast %cst_80 : f32 to vector<128x128xf32>
    %97 = arith.maximumf %95, %96 : vector<128x128xf32>
    %98 = arith.truncf %97 : vector<128x128xf32> to vector<128x128xbf16>
    %c0_81 = arith.constant 0 : index
    %c0_82 = arith.constant 0 : index
    %c0_83 = arith.constant 0 : index
    %99 = vector.load %arg33[%c0_81, %c0_82, %c0_83] : memref<1x128x128xbf16, #tpu.memory_space<vmem>>, vector<1x128x128xbf16>
    %100 = vector.shape_cast %99 : vector<1x128x128xbf16> to vector<128x128xbf16>
    %cst_84 = arith.constant dense<0.000000e+00> : vector<128x128xf32>
    %101 = tpu.matmul %98, %100, %cst_84 {dimension_numbers = #tpu.dot_dimension_numbers<[1], [0], [0], [1], [0, 0, 1, 1], [], []>} : vector<128x128xbf16>, vector<128x128xbf16>, vector<128x128xf32> -> vector<128x128xf32>
    %102 = arith.addf %87, %101 : vector<128x128xf32>
    %c0_85 = arith.constant 0 : index
    %c0_86 = arith.constant 0 : index
    %c0_87 = arith.constant 0 : index
    %103 = vector.load %arg34[%c0_85, %c0_86, %c0_87] : memref<1x1x128xf32, #tpu.memory_space<vmem>>, vector<1x1x128xf32>
    %104 = vector.shape_cast %103 : vector<1x1x128xf32> to vector<1x128xf32>
    %105 = vector.broadcast %104 : vector<1x128xf32> to vector<128x128xf32>
    %106 = arith.addf %102, %105 : vector<128x128xf32>
    %c0_i32_88 = arith.constant 0 : i32
    %107 = arith.cmpi sgt, %arg0, %c0_i32_88 : i32
    %c2_i32 = arith.constant 2 : i32
    %108 = arith.cmpi slt, %arg0, %c2_i32 : i32
    %109 = arith.andi %107, %108 : i1
    %110 = arith.extui %109 : i1 to i32
    %111 = arith.sitofp %110 : i32 to f32
    %112 = vector.broadcast %111 : f32 to vector<128x128xf32>
    %113 = arith.mulf %112, %3 : vector<128x128xf32>
    %114 = arith.addf %106, %113 : vector<128x128xf32>
    %c0_89 = arith.constant 0 : index
    %c0_90 = arith.constant 0 : index
    %115 = vector.load %arg36[%c0_89, %c0_90] : memref<128x128xf32, #tpu.memory_space<vmem>>, vector<128x128xf32>
    tpu.vector_store %arg36[%c0_89, %c0_90], %114 {strides = array<i32>} : memref<128x128xf32, #tpu.memory_space<vmem>>, vector<128x128xf32>,
    %116 = vector.broadcast %111 : f32 to vector<128x128xf32>
    %117 = arith.mulf %116, %4 : vector<128x128xf32>
    %118 = arith.addf %37, %117 : vector<128x128xf32>
    %c0_91 = arith.constant 0 : index
    %c0_92 = arith.constant 0 : index
    %119 = vector.load %arg37[%c0_91, %c0_92] : memref<128x128xf32, #tpu.memory_space<vmem>>, vector<128x128xf32>
    tpu.vector_store %arg37[%c0_91, %c0_92], %118 {strides = array<i32>} : memref<128x128xf32, #tpu.memory_space<vmem>>, vector<128x128xf32>,
    %c2_i32_93 = arith.constant 2 : i32
    %120 = arith.cmpi eq, %arg0, %c2_i32_93 : i32
    %121 = arith.extui %120 : i1 to i32
    %c0_i32_94 = arith.constant 0 : i32
    %122 = arith.cmpi ne, %121, %c0_i32_94 : i32
    scf.if %122 {
      %c0_95 = arith.constant 0 : index
      %c0_96 = arith.constant 0 : index
      %123 = vector.load %arg6[%c0_95, %c0_96] : memref<8x128xf32, #tpu.memory_space<vmem>>, vector<8x128xf32>
      %c0_97 = arith.constant 0 : index
      %c0_98 = arith.constant 0 : index
      %124 = vector.load %arg36[%c0_97, %c0_98] : memref<128x128xf32, #tpu.memory_space<vmem>>, vector<128x128xf32>
      %cst_99 = arith.constant dense<0.000000e+00> : vector<8x128xf32>
      %125 = tpu.matmul %123, %124, %cst_99 {dimension_numbers = #tpu.dot_dimension_numbers<[1], [0], [0], [1], [0, 0, 1, 1], [], []>} : vector<8x128xf32>, vector<128x128xf32>, vector<8x128xf32> -> vector<8x128xf32>
      %c0_100 = arith.constant 0 : index
      %c0_101 = arith.constant 0 : index
      %126 = vector.load %arg15[%c0_100, %c0_101] : memref<128x128xf32, #tpu.memory_space<vmem>>, vector<128x128xf32>
      %cst_102 = arith.constant dense<0.000000e+00> : vector<8x128xf32>
      %127 = tpu.matmul %125, %126, %cst_102 {dimension_numbers = #tpu.dot_dimension_numbers<[1], [0], [0], [1], [0, 0, 1, 1], [], []>} : vector<8x128xf32>, vector<128x128xf32>, vector<8x128xf32> -> vector<8x128xf32>
      %c0_103 = arith.constant 0 : index
      %c0_104 = arith.constant 0 : index
      %128 = vector.load %arg16[%c0_103, %c0_104] : memref<1x128xf32, #tpu.memory_space<vmem>>, vector<1x128xf32>
      %129 = vector.broadcast %128 : vector<1x128xf32> to vector<8x128xf32>
      %130 = arith.addf %127, %129 : vector<8x128xf32>
      %cst_105 = arith.constant 0.000000e+00 : f32
      %131 = vector.broadcast %cst_105 : f32 to vector<8x128xf32>
      %132 = arith.maximumf %130, %131 : vector<8x128xf32>
      %c0_106 = arith.constant 0 : index
      %c0_107 = arith.constant 0 : index
      %133 = vector.load %arg17[%c0_106, %c0_107] : memref<128x128xf32, #tpu.memory_space<vmem>>, vector<128x128xf32>
      %cst_108 = arith.constant dense<0.000000e+00> : vector<8x128xf32>
      %134 = tpu.matmul %132, %133, %cst_108 {dimension_numbers = #tpu.dot_dimension_numbers<[1], [0], [0], [1], [0, 0, 1, 1], [], []>} : vector<8x128xf32>, vector<128x128xf32>, vector<8x128xf32> -> vector<8x128xf32>
      %c0_109 = arith.constant 0 : index
      %c0_110 = arith.constant 0 : index
      %135 = vector.load %arg18[%c0_109, %c0_110] : memref<1x128xf32, #tpu.memory_space<vmem>>, vector<1x128xf32>
      %136 = vector.broadcast %135 : vector<1x128xf32> to vector<8x128xf32>
      %137 = arith.addf %134, %136 : vector<8x128xf32>
      %c0_111 = arith.constant 0 : index
      %c0_112 = arith.constant 0 : index
      %138 = vector.load %arg35[%c0_111, %c0_112] : memref<8x128xf32, #tpu.memory_space<vmem>>, vector<8x128xf32>
      tpu.vector_store %arg35[%c0_111, %c0_112], %137 {strides = array<i32>} : memref<8x128xf32, #tpu.memory_space<vmem>>, vector<8x128xf32>,
    } else {
    }
    return
  }
  func.func @transform_0(%arg0: i32) -> (i32, i32) {
    %c0_i32 = arith.constant 0 : i32
    %c0_i32_0 = arith.constant 0 : i32
    %c0_i32_1 = arith.constant 0 : i32
    return %c0_i32, %c0_i32_0 : i32, i32
  }
  func.func @transform_1(%arg0: i32) -> (i32, i32) {
    %c0_i32 = arith.constant 0 : i32
    %c0_i32_0 = arith.constant 0 : i32
    %c0_i32_1 = arith.constant 0 : i32
    return %c0_i32, %c0_i32_0 : i32, i32
  }
  func.func @transform_2(%arg0: i32) -> (i32, i32) {
    %c0_i32 = arith.constant 0 : i32
    %c0_i32_0 = arith.constant 0 : i32
    %c0_i32_1 = arith.constant 0 : i32
    return %c0_i32, %c0_i32_0 : i32, i32
  }
  func.func @transform_3(%arg0: i32) -> (i32, i32) {
    %c0_i32 = arith.constant 0 : i32
    %c0_i32_0 = arith.constant 0 : i32
    %c0_i32_1 = arith.constant 0 : i32
    return %c0_i32, %c0_i32_0 : i32, i32
  }
  func.func @transform_4(%arg0: i32) -> (i32, i32) {
    %c0_i32 = arith.constant 0 : i32
    %c0_i32_0 = arith.constant 0 : i32
    %c0_i32_1 = arith.constant 0 : i32
    return %c0_i32, %c0_i32_0 : i32, i32
  }
  func.func @transform_5(%arg0: i32) -> (i32, i32) {
    %c0_i32 = arith.constant 0 : i32
    %c0_i32_0 = arith.constant 0 : i32
    %c0_i32_1 = arith.constant 0 : i32
    return %c0_i32, %c0_i32_0 : i32, i32
  }
  func.func @transform_6(%arg0: i32) -> (i32, i32) {
    %c0_i32 = arith.constant 0 : i32
    %c0_i32_0 = arith.constant 0 : i32
    %c0_i32_1 = arith.constant 0 : i32
    return %c0_i32, %c0_i32_0 : i32, i32
  }
  func.func @transform_7(%arg0: i32) -> (i32, i32) {
    %c0_i32 = arith.constant 0 : i32
    %c0_i32_0 = arith.constant 0 : i32
    %c0_i32_1 = arith.constant 0 : i32
    return %c0_i32, %c0_i32_0 : i32, i32
  }
  func.func @transform_8(%arg0: i32) -> (i32, i32) {
    %c0_i32 = arith.constant 0 : i32
    %c0_i32_0 = arith.constant 0 : i32
    %c0_i32_1 = arith.constant 0 : i32
    return %c0_i32, %c0_i32_0 : i32, i32
  }
  func.func @transform_9(%arg0: i32) -> (i32, i32) {
    %c0_i32 = arith.constant 0 : i32
    %c0_i32_0 = arith.constant 0 : i32
    %c0_i32_1 = arith.constant 0 : i32
    return %c0_i32, %c0_i32_0 : i32, i32
  }
  func.func @transform_10(%arg0: i32) -> (i32, i32) {
    %c0_i32 = arith.constant 0 : i32
    %c0_i32_0 = arith.constant 0 : i32
    %c0_i32_1 = arith.constant 0 : i32
    return %c0_i32, %c0_i32_0 : i32, i32
  }
  func.func @transform_11(%arg0: i32) -> (i32, i32) {
    %c0_i32 = arith.constant 0 : i32
    %c0_i32_0 = arith.constant 0 : i32
    %c0_i32_1 = arith.constant 0 : i32
    return %c0_i32, %c0_i32_0 : i32, i32
  }
  func.func @transform_12(%arg0: i32) -> (i32, i32) {
    %c0_i32 = arith.constant 0 : i32
    %c0_i32_0 = arith.constant 0 : i32
    %c0_i32_1 = arith.constant 0 : i32
    return %c0_i32, %c0_i32_0 : i32, i32
  }
  func.func @transform_13(%arg0: i32) -> (i32, i32) {
    %c0_i32 = arith.constant 0 : i32
    %c0_i32_0 = arith.constant 0 : i32
    %c0_i32_1 = arith.constant 0 : i32
    return %c0_i32, %c0_i32_0 : i32, i32
  }
  func.func @transform_14(%arg0: i32) -> (i32, i32) {
    %c0_i32 = arith.constant 0 : i32
    %c0_i32_0 = arith.constant 0 : i32
    %c0_i32_1 = arith.constant 0 : i32
    return %c0_i32, %c0_i32_0 : i32, i32
  }
  func.func @transform_15(%arg0: i32) -> (i32, i32) {
    %c0_i32 = arith.constant 0 : i32
    %c0_i32_0 = arith.constant 0 : i32
    %c0_i32_1 = arith.constant 0 : i32
    return %c0_i32, %c0_i32_0 : i32, i32
  }
  func.func @transform_16(%arg0: i32) -> (i32, i32) {
    %c0_i32 = arith.constant 0 : i32
    %c0_i32_0 = arith.constant 0 : i32
    %c0_i32_1 = arith.constant 0 : i32
    return %c0_i32, %c0_i32_0 : i32, i32
  }
  func.func @transform_17(%arg0: i32) -> (i32, i32) {
    %c0_i32 = arith.constant 0 : i32
    %c0_i32_0 = arith.constant 0 : i32
    %c0_i32_1 = arith.constant 0 : i32
    return %c0_i32, %c0_i32_0 : i32, i32
  }
  func.func @transform_18(%arg0: i32) -> (i32, i32, i32) {
    %c0_i32 = arith.constant 0 : i32
    %c0_i32_0 = arith.constant 0 : i32
    %c0_i32_1 = arith.constant 0 : i32
    return %arg0, %c0_i32, %c0_i32_0 : i32, i32, i32
  }
  func.func @transform_19(%arg0: i32) -> (i32, i32, i32) {
    %c0_i32 = arith.constant 0 : i32
    %c0_i32_0 = arith.constant 0 : i32
    %c0_i32_1 = arith.constant 0 : i32
    return %arg0, %c0_i32, %c0_i32_0 : i32, i32, i32
  }
  func.func @transform_20(%arg0: i32) -> (i32, i32, i32) {
    %c0_i32 = arith.constant 0 : i32
    %c0_i32_0 = arith.constant 0 : i32
    %c0_i32_1 = arith.constant 0 : i32
    return %arg0, %c0_i32, %c0_i32_0 : i32, i32, i32
  }
  func.func @transform_21(%arg0: i32) -> (i32, i32, i32) {
    %c0_i32 = arith.constant 0 : i32
    %c0_i32_0 = arith.constant 0 : i32
    %c0_i32_1 = arith.constant 0 : i32
    return %arg0, %c0_i32, %c0_i32_0 : i32, i32, i32
  }
  func.func @transform_22(%arg0: i32) -> (i32, i32, i32) {
    %c0_i32 = arith.constant 0 : i32
    %c0_i32_0 = arith.constant 0 : i32
    %c0_i32_1 = arith.constant 0 : i32
    return %arg0, %c0_i32, %c0_i32_0 : i32, i32, i32
  }
  func.func @transform_23(%arg0: i32) -> (i32, i32, i32) {
    %c0_i32 = arith.constant 0 : i32
    %c0_i32_0 = arith.constant 0 : i32
    %c0_i32_1 = arith.constant 0 : i32
    return %arg0, %c0_i32, %c0_i32_0 : i32, i32, i32
  }
  func.func @transform_24(%arg0: i32) -> (i32, i32, i32) {
    %c0_i32 = arith.constant 0 : i32
    %c0_i32_0 = arith.constant 0 : i32
    %c0_i32_1 = arith.constant 0 : i32
    return %arg0, %c0_i32, %c0_i32_0 : i32, i32, i32
  }
  func.func @transform_25(%arg0: i32) -> (i32, i32, i32) {
    %c0_i32 = arith.constant 0 : i32
    %c0_i32_0 = arith.constant 0 : i32
    %c0_i32_1 = arith.constant 0 : i32
    return %arg0, %c0_i32, %c0_i32_0 : i32, i32, i32
  }
  func.func @transform_26(%arg0: i32) -> (i32, i32, i32) {
    %c0_i32 = arith.constant 0 : i32
    %c0_i32_0 = arith.constant 0 : i32
    %c0_i32_1 = arith.constant 0 : i32
    return %arg0, %c0_i32, %c0_i32_0 : i32, i32, i32
  }
  func.func @transform_27(%arg0: i32) -> (i32, i32, i32) {
    %c0_i32 = arith.constant 0 : i32
    %c0_i32_0 = arith.constant 0 : i32
    %c0_i32_1 = arith.constant 0 : i32
    return %arg0, %c0_i32, %c0_i32_0 : i32, i32, i32
  }
  func.func @transform_28(%arg0: i32) -> (i32, i32, i32) {
    %c0_i32 = arith.constant 0 : i32
    %c0_i32_0 = arith.constant 0 : i32
    %c0_i32_1 = arith.constant 0 : i32
    return %arg0, %c0_i32, %c0_i32_0 : i32, i32, i32
  }
  func.func @transform_29(%arg0: i32) -> (i32, i32, i32) {
    %c0_i32 = arith.constant 0 : i32
    %c0_i32_0 = arith.constant 0 : i32
    %c0_i32_1 = arith.constant 0 : i32
    return %arg0, %c0_i32, %c0_i32_0 : i32, i32, i32
  }
  func.func @transform_30(%arg0: i32) -> (i32, i32, i32) {
    %c0_i32 = arith.constant 0 : i32
    %c0_i32_0 = arith.constant 0 : i32
    %c0_i32_1 = arith.constant 0 : i32
    return %arg0, %c0_i32, %c0_i32_0 : i32, i32, i32
  }
  func.func @transform_31(%arg0: i32) -> (i32, i32, i32) {
    %c0_i32 = arith.constant 0 : i32
    %c0_i32_0 = arith.constant 0 : i32
    %c0_i32_1 = arith.constant 0 : i32
    return %arg0, %c0_i32, %c0_i32_0 : i32, i32, i32
  }
  func.func @transform_32(%arg0: i32) -> (i32, i32, i32) {
    %c0_i32 = arith.constant 0 : i32
    %c0_i32_0 = arith.constant 0 : i32
    %c0_i32_1 = arith.constant 0 : i32
    return %arg0, %c0_i32, %c0_i32_0 : i32, i32, i32
  }
  func.func @transform_33(%arg0: i32) -> (i32, i32, i32) {
    %c0_i32 = arith.constant 0 : i32
    %c0_i32_0 = arith.constant 0 : i32
    %c0_i32_1 = arith.constant 0 : i32
    return %arg0, %c0_i32, %c0_i32_0 : i32, i32, i32
  }
  func.func @transform_34(%arg0: i32) -> (i32, i32) {
    %c0_i32 = arith.constant 0 : i32
    %c0_i32_0 = arith.constant 0 : i32
    %c0_i32_1 = arith.constant 0 : i32
    return %c0_i32, %c0_i32_0 : i32, i32
  }
}

</mosaic_0001>

<bundles_post_ra>
// kernel: buckgnn_forward.1
= control target key start
LH: loop header
LB: loop body
LE: loop exit
PB: predicated region body
PF: predicated region fallthrough
CT: control target
= control target key end

     0   :  { %s8535_s6 = smov 1   ;;  %s8536_s10 = smov 2   ;;  %s9959_s0 = inlined_call_operand.smem [shape: u32[35], index: -1, kind: input, shape index: {}] }
   0x1   :  { %s8599_s5 = sld [smem:[%s9959_s0]]   ;;  %s8537_s14 = smov 3  }
   0x2   :  { %s8604_s9 = sld [smem:[%s9959_s0 + %s8535_s6]]   ;;  %s8538_s18 = smov 4  }
   0x3   :  { %s8609_s13 = sld [smem:[%s9959_s0 + %s8536_s10]]   ;;  %s8539_s22 = smov 5  }
   0x4   :  { %s8614_s17 = sld [smem:[%s9959_s0 + %s8537_s14]]   ;;  %s8540_s26 = smov 6  }
   0x5   :  { %s8619_s21 = sld [smem:[%s9959_s0 + %s8538_s18]]   ;;  %s8541_s30 = smov 7  }
   0x6   :  { %s8624_s25 = sld [smem:[%s9959_s0 + %s8539_s22]]   ;;  %s8542_s4 = smov 8  }
   0x7   :  { %10006 = sst [smem:[#allocation29_spill]] %s8599_s5  ;;  %s8543_s10 = smov 9  }
   0x8   :  { %10007 = sst [smem:[#allocation30_spill]] %s8604_s9  ;;  %s8544_s15 = smov 10  }
   0x9   :  { %10008 = sst [smem:[#allocation31_spill]] %s8609_s13  ;;  %s8545_s20 = smov 11  }
   0xa   :  { %10009 = sst [smem:[#allocation32_spill]] %s8614_s17  ;;  %s8547_s1 = smov 13  }
   0xb   :  { %10010 = sst [smem:[#allocation33_spill]] %s8619_s21  ;;  %s8548_s7 = smov 14  }
   0xc   :  { %10011 = sst [smem:[#allocation34_spill]] %s8624_s25  ;;  %s8550_s22 = smov 16  }
   0xd   :  { %s8629_s29 = sld [smem:[%s9959_s0 + %s8540_s26]]   ;;  %s8546_s26 = smov 12  }
   0xe   :  { %s8634_s3 = sld [smem:[%s9959_s0 + %s8541_s30]]   ;;  %s8551_s28 = smov 17  }
   0xf   :  { %s8639_s8 = sld [smem:[%s9959_s0 + %s8542_s4]]  }
  0x10   :  { %s8644_s14 = sld [smem:[%s9959_s0 + %s8543_s10]]  }
  0x11   :  { %s8649_s19 = sld [smem:[%s9959_s0 + %s8544_s15]]   ;;  %s8549_s15 = smov 15  }
  0x12   :  { %s8654_s24 = sld [smem:[%s9959_s0 + %s8545_s20]]  }
  0x13   :  { %10012 = sst [smem:[#allocation35_spill]] %s8629_s29 }
  0x14   :  { %10013 = sst [smem:[#allocation36_spill]] %s8634_s3 }
  0x15   :  { %10014 = sst [smem:[#allocation37_spill]] %s8639_s8 }
  0x16   :  { %10015 = sst [smem:[#allocation38_spill]] %s8644_s14 }
  0x17   :  { %10016 = sst [smem:[#allocation39_spill]] %s8649_s19 }
  0x18   :  { %10017 = sst [smem:[#allocation40_spill]] %s8654_s24 }
  0x19   :  { %s8659_s30 = sld [smem:[%s9959_s0 + %s8546_s26]]  }
  0x1a   :  { %s8664_s6 = sld [smem:[%s9959_s0 + %s8547_s1]]  }
  0x1b   :  { %s8669_s12 = sld [smem:[%s9959_s0 + %s8548_s7]]   ;;  %s8552_s7 = smov 18  }
  0x1c   :  { %s8674_s20 = sld [smem:[%s9959_s0 + %s8549_s15]]   ;;  %s8553_s15 = smov 19  }
  0x1d   :  { %s8679_s27 = sld [smem:[%s9959_s0 + %s8550_s22]]   ;;  %s8554_s22 = smov 20  }
  0x1e   :  { %s8684_s4 = sld [smem:[%s9959_s0 + %s8551_s28]]   ;;  %s8555_s28 = smov 21  }
  0x1f   :  { %10018 = sst [smem:[#allocation41_spill]] %s8659_s30 }
  0x20   :  { %10019 = sst [smem:[#allocation42_spill]] %s8664_s6 }
  0x21   :  { %10020 = sst [smem:[#allocation43_spill]] %s8669_s12 }
  0x22   :  { %10021 = sst [smem:[#allocation44_spill]] %s8674_s20 }
  0x23   :  { %10022 = sst [smem:[#allocation45_spill]] %s8679_s27 }
  0x24   :  { %10023 = sst [smem:[#allocation46_spill]] %s8684_s4 }
  0x25   :  { %s8689_s25 = sld [smem:[%s9959_s0 + %s8552_s7]]   ;;  %s8556_s7 = smov 22  }
  0x26   :  { %s8694_s20 = sld [smem:[%s9959_s0 + %s8553_s15]]   ;;  %s8557_s15 = smov 23  }
  0x27   :  { %s8699_s6 = sld [smem:[%s9959_s0 + %s8554_s22]]   ;;  %s8558_s22 = smov 24  }
  0x28   :  { %s8704_s4 = sld [smem:[%s9959_s0 + %s8555_s28]]   ;;  %s8559_s28 = smov 25  }
  0x29   :  { %s8709_s14 = sld [smem:[%s9959_s0 + %s8556_s7]]   ;;  %s8560_s7 = smov 26  }
  0x2a   :  { %s8714_s24 = sld [smem:[%s9959_s0 + %s8557_s15]]   ;;  %s8561_s15 = smov 27  }
  0x2b   :  { %10024 = sst [smem:[#allocation47_spill]] %s8689_s25 }
  0x2c   :  { %10025 = sst [smem:[#allocation48_spill]] %s8694_s20 }
  0x2d   :  { %10026 = sst [smem:[#allocation49_spill]] %s8699_s6 }
  0x2e   :  { %10027 = sst [smem:[#allocation50_spill]] %s8704_s4 }
  0x2f   :  { %10028 = sst [smem:[#allocation51_spill]] %s8709_s14 }
  0x30   :  { %10029 = sst [smem:[#allocation52_spill]] %s8714_s24 }
  0x31   :  { %s8719_s3 = sld [smem:[%s9959_s0 + %s8558_s22]]   ;;  %s8562_s22 = smov 28  }
  0x32   :  { %s8724_s17 = sld [smem:[%s9959_s0 + %s8559_s28]]   ;;  %s8563_s28 = smov 29  }
  0x33   :  { %s8729_s13 = sld [smem:[%s9959_s0 + %s8560_s7]]   ;;  %s8564_s7 = smov 30  }
  0x34   :  { %s8734_s9 = sld [smem:[%s9959_s0 + %s8561_s15]]   ;;  %s8565_s15 = smov 31  }
  0x35   :  { %s8739_s21 = sld [smem:[%s9959_s0 + %s8562_s22]]   ;;  %s8566_s22 = smov 32  }
  0x36   :  { %s8744_s5 = sld [smem:[%s9959_s0 + %s8563_s28]]   ;;  %s8567_s28 = smov 33  }
  0x37   :  { %10030 = sst [smem:[#allocation53_spill]] %s8719_s3 }
  0x38   :  { %10031 = sst [smem:[#allocation54_spill]] %s8724_s17 }
  0x39   :  { %10032 = sst [smem:[#allocation55_spill]] %s8729_s13 }
  0x3a   :  { %10033 = sst [smem:[#allocation56_spill]] %s8734_s9 }
  0x3b   :  { %10034 = sst [smem:[#allocation57_spill]] %s8739_s21 }
  0x3c   :  { %10035 = sst [smem:[#allocation58_spill]] %s8744_s5 }
  0x3d   :  { %s8749_s17 = sld [smem:[%s9959_s0 + %s8564_s7]]   ;;  %s8568_s7 = smov 34  }
  0x3e   :  { %s8754_s9 = sld [smem:[%s9959_s0 + %s8565_s15]]  }
  0x3f   :  { %s8759_s24 = sld [smem:[%s9959_s0 + %s8566_s22]]  }
  0x40   :  { %s8764_s5 = sld [smem:[%s9959_s0 + %s8567_s28]]  }
  0x41   :  { %s8769_s6 = sld [smem:[%s9959_s0 + %s8568_s7]]  }
  0x43   :  { %10036 = sst [smem:[#allocation59_spill]] %s8749_s17 }
  0x44   :  { %10037 = sst [smem:[#allocation60_spill]] %s8754_s9 }
  0x45   :  { %10038 = sst [smem:[#allocation61_spill]] %s8759_s24 }
  0x46   :  { %10039 = sst [smem:[#allocation62_spill]] %s8764_s5 }
  0x47   :  { %10040 = sst [smem:[#allocation63_spill]] %s8769_s6 }
  0x48   :  { %74 = vsyncpa [#allocation9], 0 }
  0x49   :  { %75 = vsyncpa [#allocation11], 0 }
  0x4a   :  { %76 = vsyncpa [#allocation14], 0 }
  0x4b   :  { %77 = vsyncpa [#allocation17], 0  ;;  %s8771_s15 = smov 0   ;;  %s8773_s16 = smov 0  }
  0x4c   :  { %s8775_s18 = smov 0   ;;  %s8777_s22 = smov 0  }
  0x4d LB: > { %s10041_s30 = sld [smem:[#allocation41_spill]]  ;;  %s10042_s27 = sld [smem:[#allocation45_spill]]  ;;  %s8533_s22 = sphi %s8777_s22, %s10124_s22   ;;  %s8529_s18 = sphi %s8775_s18, %s10127_s18   ;;  %s8525_s16 = sphi %s8773_s16, %s10126_s16   ;;  %s8521_s15 = sphi %s8771_s15, %s10125_s15  }
  0x4e   : > { %s10043_s24 = sld [smem:[#allocation61_spill]]  ;;  %s10044_s21 = sld [smem:[#allocation57_spill]] }
  0x4f   : > { %s10045_s19 = sld [smem:[#allocation39_spill]]  ;;  %s10046_s17 = sld [smem:[#allocation59_spill]] }
  0x50   : > { %s10047_s13 = sld [smem:[#allocation55_spill]]  ;;  %s10048_s12 = sld [smem:[#allocation43_spill]] }
  0x51   : > { %s10049_s8 = sld [smem:[#allocation37_spill]]  ;;  %s10051_s14 = sld [smem:[#allocation51_spill]] }
  0x52   : > { %s10050_s3 = sld [smem:[#allocation53_spill]]  ;;  %s10052_s29 = sld [smem:[#allocation35_spill]] }
  0x53   : > { %10053 = sst [smem:[#allocation64_spill]] %s8525_s16  ;;  %s8569_s0 = smov [#allocation8]  }
  0x54   : > { %10054 = sst [smem:[#allocation65_spill]] %s8529_s18  ;;  %s933_s23 = sshll.u32 %s8569_s0, 4  ;;  %s934_s23 = int_to_ptr.vmem [resolvable:$true] %s933_s23 }
  0x55   : > { %s8792_s26 = sadd.s32 4294967295, %s8533_s22   ;;  %p6096_p0 = scmp.ge.s32.totalorder %s8533_s22, 1 }
  0x56   : > { %10055 = sst [smem:[#allocation66_spill]] %s8792_s26  ;;  %p9964_p1 = scmp.eq.s32.totalorder %s8792_s26, 0 }
  0x57   : > { %p903_p2 = scmp.lt.s32.totalorder %s8533_s22, 4  ;;  %s8811_s2 = sadd.s32 1, %s8533_s22  }
  0x58   : > { %10058 = sst [smem:[#allocation67_spill]] %s8811_s2  ;;  %s8135_s7 = scalar_lea.hbm %s10052_s29, 2048 }
  0x59   : > { %p8798_p4 = pnand %p6096_p0, %p903_p2  ;;  %p8136_p7 = scmp.ne.s32.totalorder %s10052_s29, %s8135_s7 }
  0x5a   : > { %p8142_p11 = scmp.lt.u32.totalorder %s8135_s7, %s10052_s29 }
  0x5b   : > { %s10056_s28 = scalar_select %p8798_p4, 1, 0 }
  0x5c   : > { %p7854_p5 = pneg %p8798_p4 }
  0x5e   : > { %p8806_p6 = pnand %p7854_p5, %p9964_p1 }
  0x60   : > { %s10057_s1 = scalar_select %p8806_p6, 1, 0 }
  0x61   : > { %p8817_p8 = pneg %p8806_p6 }
  0x63   : > { %s10059_s10 = scalar_select %p8817_p8, 1, 0 }
  0x64   : > { %p8138_p9 = pnand %p8817_p8, %p8136_p7 }
  0x66   : > { %p8139_p10 = pneg %p8138_p9 }
  0x68   : > { %p8144_p12 = pnand %p8142_p11, %p8139_p10 }
  0x6a   : > { %8147 = shalt.err (!%p8144_p12)
}
  0x6b   : > { %s8148_s11 = scalar_lea.vmem %s934_s23, 2048  ;;  %p8156_p5 = scmp.lt.s32.totalorder %s934_s23, %s934_s23 }
  0x6c   : > { %p8149_p13 = scmp.ne.s32.totalorder %s934_s23, %s8148_s11  ;;  %p8157_p3 = scmp.lt.s32.totalorder %s8148_s11, %s8148_s11 }
  0x6e   : > { %p8151_p0 = pnand %p8149_p13, %p8817_p8  ;;  %p8158_p1 = por %p8157_p3, %p8156_p5 }
  0x70   : > { %p8152_p2 = pneg %p8151_p0 }
  0x72   : > { %p8159_p4 = pnand %p8158_p1, %p8152_p2 }
  0x74   : > { %8162 = shalt.err (!%p8159_p4)
}
  0x75   : > { %s9966_s0 = smov 128   ;;  %s9968_s7 = smov 8  }
  0x76   : > { %7857 = dma.hbm_to_vmem [thread:$0]  (!%p8806_p6), %s10052_s29, 2048, %s934_s23, [#allocation9], %s9966_s0, %s9966_s0, %s9968_s7  }
  0x77   : > { %s569_s11 = ssub.s32 %s8533_s22, %s8811_s2  ;;  %s572_s6 = sadd.s32 1, %s8529_s18 }
  0x78   : > { %p570_p1 = scmp.eq.s32.totalorder %s569_s11, 0  ;;  %p579_p3 = scmp.ne.s32.totalorder %s8529_s18, %s8525_s16 }
  0x79   : > { %p580_p4 = scmp.eq.s32.totalorder %s8533_s22, 0  ;;  %p585_p7 = scmp.ne.s32.totalorder %s8525_s16, %s8521_s15 }
  0x7a   : > { %s8841_s5 = scalar_select %p570_p1, %s8529_s18, %s572_s6  }
  0x7b   : > { %p581_p9 = por %p580_p4, %p579_p3  ;;  %p10061_p10 = scmp.eq.s32.totalorder %s8792_s26, 0 }
  0x7c   : > { %10060 = sst [smem:[#allocation68_spill]] %s8841_s5  ;;  %p7898_p12 = scmp.lt.s32.totalorder %s8533_s22, 3 }
  0x7d   : > { %p8845_p11 = por %p10061_p10, %p585_p7  ;;  %s1058_s25 = sand.u32 1, %s8533_s22  }
  0x7e   : > { %s9970_s4 = sand.u32 1, %s8529_s18   ;;  %s9972_s11 = sshll.u32 %s8533_s22, 11 }
  0x7f   : > { %s10062_s9 = scalar_select %p8845_p11, 1, 0 }
  0x80   : > { %s8854_s23 = sshll.u32 %s9970_s4, 7  ;;  %s8860_s15 = scalar_lea.hbm %s10051_s14, %s9972_s11 }
  0x81   : > { %10063 = sst [smem:[#allocation69_spill]] %s10062_s9  ;;  %s1062_s6 = scalar_lea.vmem [#allocation18], %s8854_s23 }
  0x82   : > { %s1069_s0 = sshll.u32 %s1062_s6, 4  ;;  %p8863_p13 = pnand %p7898_p12, %p581_p9  ;;  %s8867_s0 = int_to_ptr.vmem [resolvable:$true] %s1069_s0 }
  0x83   : > { %s8869_s4 = scalar_lea.sflag [#allocation9], %s1058_s25  ;;  %s8163_s29 = scalar_lea.hbm %s8860_s15, 2048 }
  0x84   : > { %s10064_s7 = scalar_select %p8863_p13, 1, 0 }
  0x85   : > { %p8164_p0 = scmp.ne.s32.totalorder %s8860_s15, %s8163_s29  ;;  %p8875_p2 = pneg %p8863_p13 }
  0x86   : > { %s8168_s6 = scalar_lea.hbm %s10051_s14, 6144  ;;  %p8169_p3 = scmp.lt.u32.totalorder %s8860_s15, %s10051_s14 }
  0x87   : > { %s10065_s11 = scalar_select %p8875_p2, 1, 0 }
  0x88   : > { %p8166_p5 = pnand %p8875_p2, %p8164_p0  ;;  %p8170_p4 = scmp.lt.u32.totalorder %s8168_s6, %s8163_s29 }
  0x89   : > { %p8172_p9 = scmp.lt.u32.totalorder %s8163_s29, %s8860_s15 }
  0x8a   : > { %p8167_p1 = pneg %p8166_p5  ;;  %p8171_p7 = por %p8170_p4, %p8169_p3 }
  0x8c   : > { %p8173_p10 = por %p8172_p9, %p8171_p7 }
  0x8e   : > { %p8174_p12 = pnand %p8173_p10, %p8167_p1 }
  0x90   : > { %8177 = shalt.err (!%p8174_p12)
}
  0x91   : > { %s8178_s25 = scalar_lea.vmem %s8867_s0, 2048  ;;  %s8572_s5 = smov [#allocation18]  }
  0x92   : > { %p8179_p11 = scmp.ne.s32.totalorder %s8867_s0, %s8178_s25  ;;  %s8183_s2 = sshll.u32 %s8572_s5, 4  ;;  %s8184_s2 = int_to_ptr.vmem [resolvable:$false] %s8183_s2 }
  0x93   : > { %s8185_s20 = scalar_lea.vmem %s8184_s2, 4096  ;;  %p8186_p0 = scmp.lt.s32.totalorder %s8867_s0, %s8184_s2 }
  0x94   : > { %p8181_p6 = pnand %p8179_p11, %p8875_p2  ;;  %p8187_p5 = scmp.lt.s32.totalorder %s8185_s20, %s8178_s25 }
  0x96   : > { %p8182_p8 = pneg %p8181_p6  ;;  %p8188_p3 = por %p8187_p5, %p8186_p0 }
  0x98   : > { %p8189_p4 = pnand %p8188_p3, %p8182_p8 }
  0x9a   : > { %8192 = shalt.err (!%p8189_p4)
}
  0x9b   : > { %s9992_s29 = smov 64   ;;  %s8574_s5 = smov 4  }
  0x9c   : > { %7876 = dma.hbm_to_vmem [thread:$0]  (!%p8863_p13), %s8860_s15, 2048, %s8867_s0, %s8869_s4, %s9992_s29, %s9992_s29, %s8574_s5  }
  0x9d   : > { %s10066_s20 = sand.u32 1, %s8529_s18   ;;  %s8903_s6 = sshll.u32 %s8533_s22, 10 }
  0x9e   : > { %s8900_s2 = sshll.u32 %s10066_s20, 6  ;;  %s8907_s25 = scalar_lea.hbm %s10050_s3, %s8903_s6 }
  0x9f   : > { %s1089_s14 = scalar_lea.vmem [#allocation19], %s8900_s2  ;;  %s10067_s16 = sshll.u32 %s8533_s22, 11 }
  0xa0   : > { %s1096_s9 = sshll.u32 %s1089_s14, 4  ;;  %s8915_s26 = scalar_lea.hbm %s10047_s13, %s10067_s16  ;;  %s8910_s9 = int_to_ptr.vmem [resolvable:$true] %s1096_s9 }
  0xa1   : > { %s8193_s0 = scalar_lea.hbm %s8907_s25, 1024  ;;  %s8198_s15 = scalar_lea.hbm %s10050_s3, 3072 }
  0xa2   : > { %p8194_p6 = scmp.ne.s32.totalorder %s8907_s25, %s8193_s0  ;;  %p8199_p1 = scmp.lt.u32.totalorder %s8907_s25, %s10050_s3 }
  0xa3   : > { %p8200_p7 = scmp.lt.u32.totalorder %s8198_s15, %s8193_s0  ;;  %p8202_p10 = scmp.lt.u32.totalorder %s8193_s0, %s8907_s25 }
  0xa4   : > { %p8196_p8 = pnand %p8194_p6, %p8875_p2 }
  0xa5   : > { %p8201_p9 = por %p8200_p7, %p8199_p1 }
  0xa6   : > { %p8197_p11 = pneg %p8196_p8 }
  0xa7   : > { %p8203_p12 = por %p8202_p10, %p8201_p9 }
  0xa9   : > { %p8204_p0 = pnand %p8203_p12, %p8197_p11 }
  0xab   : > { %8207 = shalt.err (!%p8204_p0)
}
  0xac   : > { %s8208_s14 = scalar_lea.vmem %s8910_s9, 1024  ;;  %s8575_s16 = smov [#allocation19]  }
  0xad   : > { %p8209_p5 = scmp.ne.s32.totalorder %s8910_s9, %s8208_s14  ;;  %s8213_s22 = sshll.u32 %s8575_s16, 4  ;;  %s8214_s22 = int_to_ptr.vmem [resolvable:$false] %s8213_s22 }
  0xae   : > { %s8215_s20 = scalar_lea.vmem %s8214_s22, 2048  ;;  %p8216_p6 = scmp.lt.s32.totalorder %s8910_s9, %s8214_s22 }
  0xaf   : > { %p8211_p3 = pnand %p8209_p5, %p8875_p2  ;;  %p8217_p8 = scmp.lt.s32.totalorder %s8215_s20, %s8208_s14 }
  0xb1   : > { %p8212_p4 = pneg %p8211_p3  ;;  %p8218_p1 = por %p8217_p8, %p8216_p6 }
  0xb3   : > { %p8219_p7 = pnand %p8218_p1, %p8212_p4 }
  0xb5   : > { %8222 = shalt.err (!%p8219_p7)
}
  0xb6   : > { %7879 = dma.hbm_to_vmem [thread:$0]  (!%p8863_p13), %s8907_s25, 1024, %s8910_s9, %s8869_s4, %s9992_s29, %s9992_s29, %s8574_s5  }
  0xb7   : > { %s1116_s0 = scalar_lea.vmem [#allocation20], %s8854_s23  ;;  %s8943_s14 = scalar_lea.hbm %s10044_s21, %s8903_s6 }
  0xb8   : > { %s1123_s15 = sshll.u32 %s1116_s0, 4  ;;  %s8223_s16 = scalar_lea.hbm %s8915_s26, 2048  ;;  %s8939_s15 = int_to_ptr.vmem [resolvable:$true] %s1123_s15 }
  0xb9   : > { %p8224_p11 = scmp.ne.s32.totalorder %s8915_s26, %s8223_s16  ;;  %s8228_s22 = scalar_lea.hbm %s10047_s13, 6144 }
  0xba   : > { %p8229_p12 = scmp.lt.u32.totalorder %s8915_s26, %s10047_s13  ;;  %p8230_p0 = scmp.lt.u32.totalorder %s8228_s22, %s8223_s16 }
  0xbb   : > { %p8226_p9 = pnand %p8224_p11, %p8875_p2  ;;  %p8232_p3 = scmp.lt.u32.totalorder %s8223_s16, %s8915_s26 }
  0xbc   : > { %p8231_p5 = por %p8230_p0, %p8229_p12 }
  0xbd   : > { %p8227_p10 = pneg %p8226_p9 }
  0xbe   : > { %p8233_p4 = por %p8232_p3, %p8231_p5 }
  0xc0   : > { %p8234_p6 = pnand %p8233_p4, %p8227_p10 }
  0xc2   : > { %8237 = shalt.err (!%p8234_p6)
}
  0xc3   : > { %s8238_s9 = scalar_lea.vmem %s8939_s15, 2048  ;;  %s8576_s23 = smov [#allocation20]  }
  0xc4   : > { %p8239_p8 = scmp.ne.s32.totalorder %s8939_s15, %s8238_s9  ;;  %s8243_s25 = sshll.u32 %s8576_s23, 4  ;;  %s8244_s25 = int_to_ptr.vmem [resolvable:$false] %s8243_s25 }
  0xc5   : > { %s8245_s20 = scalar_lea.vmem %s8244_s25, 4096  ;;  %p8246_p11 = scmp.lt.s32.totalorder %s8939_s15, %s8244_s25 }
  0xc6   : > { %p8241_p1 = pnand %p8239_p8, %p8875_p2  ;;  %p8247_p9 = scmp.lt.s32.totalorder %s8245_s20, %s8238_s9 }
  0xc8   : > { %p8242_p7 = pneg %p8241_p1  ;;  %p8248_p12 = por %p8247_p9, %p8246_p11 }
  0xca   : > { %p8249_p0 = pnand %p8248_p12, %p8242_p7 }
  0xcc   : > { %8252 = shalt.err (!%p8249_p0)
}
  0xcd   : > { %7882 = dma.hbm_to_vmem [thread:$0]  (!%p8863_p13), %s8915_s26, 2048, %s8939_s15, %s8869_s4, %s9992_s29, %s9992_s29, %s8574_s5  }
  0xce   : > { %s1143_s0 = scalar_lea.vmem [#allocation21], %s8900_s2  ;;  %s8577_s22 = smov [#allocation10]  }
  0xcf   : > { %s1150_s16 = sshll.u32 %s1143_s0, 4  ;;  %s8969_s9 = sshll.u32 %s8577_s22, 4  ;;  %s8967_s16 = int_to_ptr.vmem [resolvable:$true] %s1150_s16  ;;  %s950_s9 = int_to_ptr.vmem [resolvable:$true] %s8969_s9 }
  0xd0   : > { %s8253_s23 = scalar_lea.hbm %s8943_s14, 1024  ;;  %s8258_s25 = scalar_lea.hbm %s10044_s21, 3072 }
  0xd1   : > { %p8254_p10 = scmp.ne.s32.totalorder %s8943_s14, %s8253_s23  ;;  %p8259_p4 = scmp.lt.u32.totalorder %s8943_s14, %s10044_s21 }
  0xd2   : > { %p8260_p6 = scmp.lt.u32.totalorder %s8258_s25, %s8253_s23  ;;  %p8262_p1 = scmp.lt.u32.totalorder %s8253_s23, %s8943_s14 }
  0xd3   : > { %p8256_p5 = pnand %p8254_p10, %p8875_p2 }
  0xd4   : > { %p8261_p8 = por %p8260_p6, %p8259_p4 }
  0xd5   : > { %p8257_p3 = pneg %p8256_p5 }
  0xd6   : > { %p8263_p7 = por %p8262_p1, %p8261_p8 }
  0xd8   : > { %p8264_p11 = pnand %p8263_p7, %p8257_p3 }
  0xda   : > { %8267 = shalt.err (!%p8264_p11)
}
  0xdb   : > { %s8268_s26 = scalar_lea.vmem %s8967_s16, 1024  ;;  %s8578_s15 = smov [#allocation21]  }
  0xdc   : > { %p8269_p9 = scmp.ne.s32.totalorder %s8967_s16, %s8268_s26  ;;  %s8273_s20 = sshll.u32 %s8578_s15, 4  ;;  %s8274_s20 = int_to_ptr.vmem [resolvable:$false] %s8273_s20 }
  0xdd   : > { %s8275_s0 = scalar_lea.vmem %s8274_s20, 2048  ;;  %p8276_p10 = scmp.lt.s32.totalorder %s8967_s16, %s8274_s20 }
  0xde   : > { %p8271_p12 = pnand %p8269_p9, %p8875_p2  ;;  %p8277_p5 = scmp.lt.s32.totalorder %s8275_s0, %s8268_s26 }
  0xe0   : > { %p8272_p0 = pneg %p8271_p12  ;;  %p8278_p4 = por %p8277_p5, %p8276_p10 }
  0xe2   : > { %p8279_p6 = pnand %p8278_p4, %p8272_p0 }
  0xe4   : > { %8282 = shalt.err (!%p8279_p6)
}
  0xe5   : > { %7885 = dma.hbm_to_vmem [thread:$0]  (!%p8863_p13), %s8943_s14, 1024, %s8967_s16, %s8869_s4, %s9992_s29, %s9992_s29, %s8574_s5  }
  0xe6   : > { %s8283_s22 = scalar_lea.hbm %s10049_s8, 2048  ;;  %p10068_p8 = scmp.ne.s32.totalorder %s10059_s10, 0 }
  0xe7   : > { %p8284_p3 = scmp.ne.s32.totalorder %s10049_s8, %s8283_s22  ;;  %p8290_p11 = scmp.lt.u32.totalorder %s8283_s22, %s10049_s8 }
  0xe9   : > { %p8286_p1 = pnand %p8284_p3, %p10068_p8 }
  0xeb   : > { %p8287_p7 = pneg %p8286_p1 }
  0xed   : > { %p8292_p9 = pnand %p8290_p11, %p8287_p7 }
  0xef   : > { %8295 = shalt.err (!%p8292_p9)
}
  0xf0   : > { %s8296_s23 = scalar_lea.vmem %s950_s9, 2048  ;;  %p8304_p5 = scmp.lt.s32.totalorder %s950_s9, %s950_s9 }
  0xf1   : > { %p8297_p12 = scmp.ne.s32.totalorder %s950_s9, %s8296_s23  ;;  %p8305_p4 = scmp.lt.s32.totalorder %s8296_s23, %s8296_s23 }
  0xf3   : > { %p8299_p0 = pnand %p8297_p12, %p10068_p8  ;;  %p8306_p6 = por %p8305_p4, %p8304_p5 }
  0xf5   : > { %p8300_p10 = pneg %p8299_p0 }
  0xf7   : > { %p8307_p2 = pnand %p8306_p6, %p8300_p10 }
  0xf9   : > { %8310 = shalt.err (!%p8307_p2)
}
  0xfa   : > { %p10069_p13 = scmp.ne.s32.totalorder %s10057_s1, 0  ;;  %s10070_s14 = smov 8  }
  0xfb   : > { %s10071_s16 = smov 128   ;;  %s8579_s25 = smov [#allocation13]  }
  0xfc   : > { %7860 = dma.hbm_to_vmem [thread:$0]  (!%p10069_p13), %s10049_s8, 2048, %s950_s9, [#allocation11], %s10071_s16, %s10071_s16, %s10070_s14  }
  0xfd   : > { %s981_s26 = sshll.u32 %s8579_s25, 4  ;;  %s9008_s15 = scalar_lea.hbm %s10046_s17, %s8903_s6  ;;  %s982_s26 = int_to_ptr.vmem [resolvable:$true] %s981_s26 }
  0xfe   : > { %s8311_s20 = scalar_lea.hbm %s10041_s30, 2048 }
  0xff   : > { %p8312_p2 = scmp.ne.s32.totalorder %s10041_s30, %s8311_s20  ;;  %p8318_p7 = scmp.lt.u32.totalorder %s8311_s20, %s10041_s30 }
 0x101   : > { %p8314_p3 = pnand %p8312_p2, %p10068_p8 }
 0x103   : > { %p8315_p1 = pneg %p8314_p3 }
 0x105   : > { %p8320_p11 = pnand %p8318_p7, %p8315_p1 }
 0x107   : > { %8323 = shalt.err (!%p8320_p11)
}
 0x108   : > { %s8324_s0 = scalar_lea.vmem %s982_s26, 2048  ;;  %p8332_p10 = scmp.lt.s32.totalorder %s982_s26, %s982_s26 }
 0x109   : > { %p8325_p9 = scmp.ne.s32.totalorder %s982_s26, %s8324_s0  ;;  %p8333_p5 = scmp.lt.s32.totalorder %s8324_s0, %s8324_s0 }
 0x10b   : > { %p8327_p12 = pnand %p8325_p9, %p10068_p8  ;;  %p8334_p4 = por %p8333_p5, %p8332_p10 }
 0x10d   : > { %p8328_p0 = pneg %p8327_p12 }
 0x10f   : > { %p8335_p6 = pnand %p8334_p4, %p8328_p0 }
 0x111   : > { %8338 = shalt.err (!%p8335_p6)
}
 0x112   : > { %7866 = dma.hbm_to_vmem [thread:$0]  (!%p10069_p13), %s10041_s30, 2048, %s982_s26, [#allocation14], %s10071_s16, %s10071_s16, %s10070_s14  }
 0x113   : > { %s1170_s9 = scalar_lea.vmem [#allocation22], %s8900_s2  ;;  %s8580_s23 = smov [#allocation12]  }
 0x114   : > { %s1177_s22 = sshll.u32 %s1170_s9, 4  ;;  %s9026_s25 = sshll.u32 %s8580_s23, 4  ;;  %s9024_s22 = int_to_ptr.vmem [resolvable:$true] %s1177_s22  ;;  %s966_s25 = int_to_ptr.vmem [resolvable:$true] %s9026_s25 }
 0x115   : > { %s8339_s20 = scalar_lea.hbm %s9008_s15, 1024  ;;  %p10072_p3 = scmp.ne.s32.totalorder %s10065_s11, 0 }
 0x116   : > { %p8340_p2 = scmp.ne.s32.totalorder %s9008_s15, %s8339_s20  ;;  %s8344_s0 = scalar_lea.hbm %s10046_s17, 3072 }
 0x117   : > { %p8345_p11 = scmp.lt.u32.totalorder %s9008_s15, %s10046_s17  ;;  %p8346_p9 = scmp.lt.u32.totalorder %s8344_s0, %s8339_s20 }
 0x118   : > { %p8342_p1 = pnand %p8340_p2, %p10072_p3  ;;  %p8348_p0 = scmp.lt.u32.totalorder %s8339_s20, %s9008_s15 }
 0x119   : > { %p8347_p12 = por %p8346_p9, %p8345_p11 }
 0x11a   : > { %p8343_p7 = pneg %p8342_p1 }
 0x11b   : > { %p8349_p10 = por %p8348_p0, %p8347_p12 }
 0x11d   : > { %p8350_p5 = pnand %p8349_p10, %p8343_p7 }
 0x11f   : > { %8353 = shalt.err (!%p8350_p5)
}
 0x120   : > { %s8354_s26 = scalar_lea.vmem %s9024_s22, 1024  ;;  %s8581_s9 = smov [#allocation22]  }
 0x121   : > { %p8355_p4 = scmp.ne.s32.totalorder %s9024_s22, %s8354_s26  ;;  %s8359_s23 = sshll.u32 %s8581_s9, 4  ;;  %s8360_s23 = int_to_ptr.vmem [resolvable:$false] %s8359_s23 }
 0x122   : > { %s8361_s29 = scalar_lea.vmem %s8360_s23, 2048  ;;  %p8362_p2 = scmp.lt.s32.totalorder %s9024_s22, %s8360_s23 }
 0x123   : > { %p8357_p6 = pnand %p8355_p4, %p10072_p3  ;;  %p8363_p1 = scmp.lt.s32.totalorder %s8361_s29, %s8354_s26 }
 0x125   : > { %p8358_p13 = pneg %p8357_p6  ;;  %p8364_p11 = por %p8363_p1, %p8362_p2 }
 0x127   : > { %p8365_p9 = pnand %p8364_p11, %p8358_p13 }
 0x129   : > { %8368 = shalt.err (!%p8365_p9)
}
 0x12a   : > { %p10073_p7 = scmp.ne.s32.totalorder %s10064_s7, 0  ;;  %s10074_s20 = smov 64  }
 0x12b   : > { %s8369_s0 = scalar_lea.hbm %s10045_s19, 2048 }
 0x12c   : > { %7888 = dma.hbm_to_vmem [thread:$0]  (!%p10073_p7), %s9008_s15, 1024, %s9024_s22, %s8869_s4, %s10074_s20, %s10074_s20, %s8574_s5  }
 0x12d   : > { %p8370_p12 = scmp.ne.s32.totalorder %s10045_s19, %s8369_s0  ;;  %p8376_p10 = scmp.lt.u32.totalorder %s8369_s0, %s10045_s19 }
 0x12f   : > { %p8372_p13 = pnand %p8370_p12, %p10068_p8 }
 0x131   : > { %p8373_p0 = pneg %p8372_p13 }
 0x133   : > { %p8378_p5 = pnand %p8376_p10, %p8373_p0 }
 0x135   : > { %8381 = shalt.err (!%p8378_p5)
}
 0x136   : > { %s8382_s29 = scalar_lea.vmem %s966_s25, 2048  ;;  %p8390_p1 = scmp.lt.s32.totalorder %s966_s25, %s966_s25 }
 0x137   : > { %p8383_p4 = scmp.ne.s32.totalorder %s966_s25, %s8382_s29  ;;  %p8391_p11 = scmp.lt.s32.totalorder %s8382_s29, %s8382_s29 }
 0x139   : > { %p8385_p6 = pnand %p8383_p4, %p10068_p8  ;;  %p8392_p9 = por %p8391_p11, %p8390_p1 }
 0x13b   : > { %p8386_p2 = pneg %p8385_p6 }
 0x13d   : > { %p8393_p3 = pnand %p8392_p9, %p8386_p2 }
 0x13f   : > { %8396 = shalt.err (!%p8393_p3)
}
 0x140   : > { %p10075_p7 = scmp.ne.s32.totalorder %s10057_s1, 0  ;;  %s8582_s15 = smov [#allocation15]  }
 0x141   : > { %s997_s22 = sshll.u32 %s8582_s15, 4  ;;  %s8583_s26 = smov [#allocation16]   ;;  %s998_s22 = int_to_ptr.vmem [resolvable:$true] %s997_s22 }
 0x142   : > { %7863 = dma.hbm_to_vmem [thread:$0]  (!%p10075_p7), %s10045_s19, 2048, %s966_s25, [#allocation11], %s10071_s16, %s10071_s16, %s10070_s14  }
 0x143   : > { %s1013_s9 = sshll.u32 %s8583_s26, 4  ;;  %s8397_s23 = scalar_lea.hbm %s10048_s12, 2048  ;;  %s1014_s9 = int_to_ptr.vmem [resolvable:$true] %s1013_s9 }
 0x144   : > { %p8398_p12 = scmp.ne.s32.totalorder %s10048_s12, %s8397_s23  ;;  %p8404_p0 = scmp.lt.u32.totalorder %s8397_s23, %s10048_s12 }
 0x146   : > { %p8400_p3 = pnand %p8398_p12, %p10068_p8 }
 0x148   : > { %p8401_p13 = pneg %p8400_p3 }
 0x14a   : > { %p8406_p10 = pnand %p8404_p0, %p8401_p13 }
 0x14c   : > { %8409 = shalt.err (!%p8406_p10)
}
 0x14d   : > { %s8410_s0 = scalar_lea.vmem %s998_s22, 2048  ;;  %p8418_p2 = scmp.lt.s32.totalorder %s998_s22, %s998_s22 }
 0x14e   : > { %p8411_p5 = scmp.ne.s32.totalorder %s998_s22, %s8410_s0  ;;  %p8419_p1 = scmp.lt.s32.totalorder %s8410_s0, %s8410_s0 }
 0x150   : > { %p8413_p4 = pnand %p8411_p5, %p10068_p8  ;;  %p8420_p11 = por %p8419_p1, %p8418_p2 }
 0x152   : > { %p8414_p6 = pneg %p8413_p4 }
 0x154   : > { %p8421_p9 = pnand %p8420_p11, %p8414_p6 }
 0x156   : > { %8424 = shalt.err (!%p8421_p9)
}
 0x157   : > { %7869 = dma.hbm_to_vmem [thread:$0]  (!%p10075_p7), %s10048_s12, 2048, %s998_s22, [#allocation14], %s10071_s16, %s10071_s16, %s10070_s14  }
 0x158   : > { %s8425_s25 = scalar_lea.hbm %s10042_s27, 2048 }
 0x159   : > { %p8426_p12 = scmp.ne.s32.totalorder %s10042_s27, %s8425_s25  ;;  %p8432_p0 = scmp.lt.u32.totalorder %s8425_s25, %s10042_s27 }
 0x15b   : > { %p8428_p3 = pnand %p8426_p12, %p10068_p8 }
 0x15d   : > { %p8429_p13 = pneg %p8428_p3 }
 0x15f   : > { %p8434_p10 = pnand %p8432_p0, %p8429_p13 }
 0x161   : > { %8437 = shalt.err (!%p8434_p10)
}
 0x162   : > { %s8438_s29 = scalar_lea.vmem %s1014_s9, 2048  ;;  %p8446_p2 = scmp.lt.s32.totalorder %s1014_s9, %s1014_s9 }
 0x163   : > { %p8439_p5 = scmp.ne.s32.totalorder %s1014_s9, %s8438_s29  ;;  %p8447_p1 = scmp.lt.s32.totalorder %s8438_s29, %s8438_s29 }
 0x165   : > { %p8441_p4 = pnand %p8439_p5, %p10068_p8  ;;  %p8448_p11 = por %p8447_p1, %p8446_p2 }
 0x167   : > { %p8442_p6 = pneg %p8441_p4 }
 0x169   : > { %p8449_p9 = pnand %p8448_p11, %p8442_p6 }
 0x16b   : > { %8452 = shalt.err (!%p8449_p9)
}
 0x16c   : > { %7872 = dma.hbm_to_vmem [thread:$0]  (!%p10075_p7), %s10042_s27, 2048, %s1014_s9, [#allocation17], %s10071_s16, %s10071_s16, %s10070_s14  }
 0x16d   : > { %s9091_s10 = scalar_lea.hbm %s10043_s24, %s8903_s6  ;;  %s1197_s15 = scalar_lea.vmem [#allocation23], %s8900_s2 }
 0x16e   : > { %s1204_s22 = sshll.u32 %s1197_s15, 4  ;;  %s8453_s1 = scalar_lea.hbm %s9091_s10, 1024  ;;  %s9094_s22 = int_to_ptr.vmem [resolvable:$true] %s1204_s22 }
 0x16f   : > { %p8454_p8 = scmp.ne.s32.totalorder %s9091_s10, %s8453_s1  ;;  %p10076_p12 = scmp.ne.s32.totalorder %s10065_s11, 0 }
 0x170   : > { %s8458_s26 = scalar_lea.hbm %s10043_s24, 3072  ;;  %p8459_p0 = scmp.lt.u32.totalorder %s9091_s10, %s10043_s24 }
 0x171   : > { %p8456_p3 = pnand %p8454_p8, %p10076_p12  ;;  %p8460_p10 = scmp.lt.u32.totalorder %s8458_s26, %s8453_s1 }
 0x172   : > { %p8462_p7 = scmp.lt.u32.totalorder %s8453_s1, %s9091_s10 }
 0x173   : > { %p8457_p13 = pneg %p8456_p3  ;;  %p8461_p5 = por %p8460_p10, %p8459_p0 }
 0x175   : > { %p8463_p4 = por %p8462_p7, %p8461_p5 }
 0x177   : > { %p8464_p6 = pnand %p8463_p4, %p8457_p13 }
 0x179   : > { %8467 = shalt.err (!%p8464_p6)
}
 0x17a   : > { %s8468_s2 = scalar_lea.vmem %s9094_s22, 1024  ;;  %s8584_s6 = smov [#allocation23]  }
 0x17b   : > { %p8469_p2 = scmp.ne.s32.totalorder %s9094_s22, %s8468_s2  ;;  %s8473_s14 = sshll.u32 %s8584_s6, 4  ;;  %s8474_s14 = int_to_ptr.vmem [resolvable:$false] %s8473_s14 }
 0x17c   : > { %s8475_s16 = scalar_lea.vmem %s8474_s14, 2048  ;;  %p8476_p9 = scmp.lt.s32.totalorder %s9094_s22, %s8474_s14 }
 0x17d   : > { %p8471_p1 = pnand %p8469_p2, %p10076_p12  ;;  %p8477_p8 = scmp.lt.s32.totalorder %s8475_s16, %s8468_s2 }
 0x17f   : > { %p8472_p11 = pneg %p8471_p1  ;;  %p8478_p3 = por %p8477_p8, %p8476_p9 }
 0x181   : > { %p8479_p0 = pnand %p8478_p3, %p8472_p11 }
 0x183   : > { %8482 = shalt.err (!%p8479_p0)
}
 0x184   : > { %p10077_p13 = scmp.ne.s32.totalorder %s10064_s7, 0  ;;  %p10078_p12 = scmp.ne.s32.totalorder %s10056_s28, 0 }
 0x185   : > { %s10079_s11 = sld [smem:[#allocation66_spill]] (!%p10078_p12) }
 0x186   : > { %7891 = dma.hbm_to_vmem [thread:$0]  (!%p10077_p13), %s9091_s10, 1024, %s9094_s22, %s8869_s4, %s10074_s20, %s10074_s20, %s8574_s5  }
 0x187   : > { %1222 = sbr.rel (%p10078_p12) target bundleno = 4060 (0xfdc), region = 156 }
 0x18b   : > { %p10080_p10 = scmp.eq.s32.totalorder (!%p10078_p12), %s10079_s11, 0 }
 0x18e   : > { %8500 = dma.done.wait (%p10080_p10), [#allocation9], 2048   ;;  %p10081_p5 = pmov %p10080_p10 }
 0x190   : > { %8502 = vsyncadd (%p10081_p5), [#allocation9], 4294965248  ;;  %p10082_p7 = pmov %p10081_p5 }
 0x191   : > { %p10083_p4 = pmov %p10081_p5 }
 0x192   : > { %8504 = dma.done.wait (%p10082_p7), [#allocation11], 4096  }
 0x193   : > { %8506 = vsyncadd (%p10083_p4), [#allocation11], 4294963200  ;;  %p10084_p6 = pmov %p10083_p4 }
 0x194   : > { %p10085_p2 = pmov %p10083_p4 }
 0x195   : > { %8508 = dma.done.wait (%p10084_p6), [#allocation14], 4096  }
 0x196   : > { %8510 = vsyncadd (%p10085_p2), [#allocation14], 4294963200  ;;  %p10086_p1 = pmov %p10085_p2 }
 0x198   : > { %8512 = dma.done.wait (%p10086_p1), [#allocation17], 2048   ;;  %p10087_p11 = pmov %p10086_p1 }
 0x199   : > { %s10088_s4 = sld [smem:[#allocation64_spill]]  ;;  %s10089_s28 = sld [smem:[#allocation69_spill]] }
 0x19a   : > { %8514 = vsyncadd (%p10087_p11), [#allocation17], 4294965248  ;;  %s1248_s7 = sand.u32 1, %s10079_s11  }
 0x19b   : > { %s1249_s9 = scalar_lea.sflag [#allocation9], %s1248_s7 }
 0x19f   : > { %s1250_s5 = sand.u32 1, %s10088_s4   ;;  %p10090_p9 = scmp.ne.s32.totalorder %s10089_s28, 0 }
 0x1a0   : > { %s6129_s20 = sshll.u32 %s1250_s5, 7 }
 0x1a1   : > { %s9137_s23 = scalar_lea.vmem [#allocation18], %s6129_s20 }
 0x1a2   : > { %8516 = dma.done.wait (%p10090_p9), %s1249_s9, 8192  }
 0x1a3   : > { %8518 = vsyncadd (%p10090_p9), %s1249_s9, 4294959104  ;;  %s10091_s0 = sld [smem:[#allocation48_spill]]  ;;  %s10092_s25 = sld [smem:[#allocation50_spill]] }
 0x1a4   : > { %s10093_s29 = sld [smem:[#allocation47_spill]]  ;;  %s10094_s10 = sld [smem:[#allocation49_spill]] }
 0x1a5   : > { %s10095_s15 = sld [smem:[#allocation52_spill]]  ;;  %s10096_s22 = sld [smem:[#allocation54_spill]] }
 0x1a6   : > { %s10097_s1 = sld [smem:[#allocation56_spill]]  ;;  %s10098_s26 = sld [smem:[#allocation58_spill]] }
 0x1a7   : > { %s10099_s2 = sld [smem:[#allocation60_spill]]  ;;  %s10100_s6 = sld [smem:[#allocation62_spill]] }
 0x1a8   : > { %s6130_s14 = sshll.u32 %s1250_s5, 6  ;;  %p1436_p8 = scmp.lt.s32.totalorder %s10079_s11, 2 }
 0x1a9   : > { %s9173_s24 = scalar_lea.vmem [#allocation19], %s6130_s14  ;;  %s9175_s27 = scalar_lea.vmem [#allocation20], %s6129_s20 }
 0x1aa   : > { %s9147_s16 = scalar_select %p1436_p8, %s10079_s11, 2 }
 0x1ab   : > { %s9177_s30 = scalar_lea.vmem [#allocation21], %s6130_s14  ;;  %s9179_s18 = scalar_lea.vmem [#allocation22], %s6130_s14 }
 0x1ac   : > { %s7817_s4 = smul.u32 192, %s9147_s16  ;;  %s1443_s28 = scalar_lea.vmem %s10091_s0, %s9147_s16 }
 0x1ad   : > { %s6308_s7 = sshll.u32 %s9147_s16, 6  ;;  %s1451_s9 = scalar_lea.vmem %s10092_s25, %s9147_s16 }
 0x1ae   : > { %s9156_s3 = scalar_lea.vmem %s10093_s29, %s7817_s4  ;;  %s9159_s5 = scalar_lea.vmem %s10094_s10, %s6308_s7 }
 0x1af   : > { %s1454_s8 = scalar_lea.vmem %s10095_s15, %s9147_s16  ;;  %s1457_s12 = scalar_lea.vmem %s10096_s22, %s9147_s16 }
 0x1b0   : > { %s1460_s13 = scalar_lea.vmem %s10097_s1, %s9147_s16  ;;  %s1463_s17 = scalar_lea.vmem %s10098_s26, %s9147_s16 }
 0x1b1   : > { %s1466_s19 = scalar_lea.vmem %s10099_s2, %s9147_s16  ;;  %s1469_s21 = scalar_lea.vmem %s10100_s6, %s9147_s16 }
 0x1b2   : > { %s9181_s0 = scalar_lea.vmem [#allocation23], %s6130_s14  ;;  %p10101_p3 = scmp.ne.s32.totalorder %s10079_s11, 0 }
 0x1b3   : > { %v1491_v0 = vld [vmem:[#allocation8] sm:$0xff] (!%p10101_p3)  ;;  %s10102_s25 = sld [smem:[#allocation29_spill]] (!%p10101_p3)  ;;  %v1492_v1 = vld [vmem:[#allocation8 + $0x8] sm:$0xff] (!%p10101_p3)  ;;  %v1493_v2 = vld [vmem:[#allocation8 + $0x10] sm:$0xff] (!%p10101_p3)  ;;  %v2243_v15 = vlaneseq (!%p10101_p3)  ;;  %s10103_s11 = sld [smem:[#allocation33_spill]] (!%p10101_p3)  ;;  %v8585_v42 = vmov (!%p10101_p3), 0.0  }
 0x1b4   : > { %1474 = sbr.rel (%p10101_p3) target bundleno = 964 (0x3c4), region = 208  ;;  %v7537_v3 = vpack.c.bf16 (!%p10101_p3), %v1492_v1, %v1491_v0  ;;  %v1494_v4 = vld [vmem:[#allocation8 + $0x18] sm:$0xff] (!%p10101_p3)  ;;  %v1495_v6 = vld [vmem:[#allocation8 + $0x20] sm:$0xff] (!%p10101_p3)  ;;  %v1496_v7 = vld [vmem:[#allocation8 + $0x28] sm:$0xff] (!%p10101_p3)  ;;  %s10104_s20 = sld [smem:[#allocation30_spill]] (!%p10101_p3) }
 0x1b5   : > { %v7541_v5 = vpack.c.bf16 (!%p10101_p3), %v1494_v4, %v1493_v2  ;;  %v7545_v8 = vpack.c.bf16 (!%p10101_p3), %v1496_v7, %v1495_v6  ;;  %v1497_v10 = vld [vmem:[#allocation8 + $0x30] sm:$0xff] (!%p10101_p3)  ;;  %v1498_v11 = vld [vmem:[#allocation8 + $0x38] sm:$0xff] (!%p10101_p3)  ;;  %v1499_v13 = vld [vmem:[#allocation8 + $0x40] sm:$0xff] (!%p10101_p3)  ;;  %v9187_v19 = vshrl.u32 (!%p10101_p3), %v2243_v15, 7  ;;  %s10105_s29 = sld [smem:[#allocation31_spill]] (!%p10101_p3)  ;;  %s10106_s10 = sld [smem:[#allocation32_spill]] (!%p10101_p3) }
 0x1b6   : > { %7538 = vmatprep.subr.bf16.mxu0 (!%p10101_p3), %v7537_v3  ;;  %v7549_v12 = vpack.c.bf16 (!%p10101_p3), %v1498_v11, %v1497_v10  ;;  %v1500_v14 = vld [vmem:[#allocation8 + $0x48] sm:$0xff] (!%p10101_p3)  ;;  %v1501_v17 = vld [vmem:[#allocation8 + $0x50] sm:$0xff] (!%p10101_p3)  ;;  %v1502_v18 = vld [vmem:[#allocation8 + $0x58] sm:$0xff] (!%p10101_p3)  ;;  %s10107_s15 = sld [smem:[#allocation36_spill]] (!%p10101_p3)  ;;  %s10108_s22 = sld [smem:[#allocation40_spill]] (!%p10101_p3) }
 0x1b7   : > { %7540 = vmatpush3.bf16.msra.mxu0 (!%p10101_p3), %v7537_v3  ;;  %v7553_v16 = vpack.c.bf16 (!%p10101_p3), %v1500_v14, %v1499_v13  ;;  %v7557_v20 = vpack.c.bf16 (!%p10101_p3), %v1502_v18, %v1501_v17  ;;  %v1503_v21 = vld [vmem:[#allocation8 + $0x60] sm:$0xff] (!%p10101_p3)  ;;  %v1504_v22 = vld [vmem:[#allocation8 + $0x68] sm:$0xff] (!%p10101_p3)  ;;  %v2503_v23 = vadd.s32 (!%p10101_p3), 8, %v9187_v19  ;;  %v2504_v24 = vadd.s32 (!%p10101_p3), 16, %v9187_v19  ;;  %v1505_v25 = vld [vmem:[#allocation8 + $0x70] sm:$0xff] (!%p10101_p3)  ;;  %s10109_s1 = sld [smem:[#allocation38_spill]] (!%p10101_p3) }
 0x1b8   : > { %7542 = vmatprep.subr.bf16.mxu0 (!%p10101_p3), %v7541_v5  ;;  %v7561_v26 = vpack.c.bf16 (!%p10101_p3), %v1504_v22, %v1503_v21  ;;  %v1506_v27 = vld [vmem:[#allocation8 + $0x78] sm:$0xff] (!%p10101_p3)  ;;  %v1675_v28 = vld [vmem:[#allocation10] sm:$0xff] (!%p10101_p3)  ;;  %v1676_v29 = vld [vmem:[#allocation10 + $0x8] sm:$0xff] (!%p10101_p3)  ;;  %v2505_v30 = vadd.s32 (!%p10101_p3), 24, %v9187_v19  ;;  %v2506_v31 = vadd.s32 (!%p10101_p3), 32, %v9187_v19  ;;  %v2507_v36 = vadd.s32 (!%p10101_p3), 40, %v9187_v19 }
 0x1b9   : > { %v1475_v9 = vld [vmem:[%s10102_s25] sm:$0xff] (!%p10101_p3)  ;;  %v7569_v32 = vpack.c.bf16 (!%p10101_p3), %v1676_v29, %v1675_v28  ;;  %v1677_v33 = vld [vmem:[#allocation10 + $0x10] sm:$0xff] (!%p10101_p3)  ;;  %v1678_v34 = vld [vmem:[#allocation10 + $0x18] sm:$0xff] (!%p10101_p3)  ;;  %v2508_v37 = vadd.s32 (!%p10101_p3), 48, %v9187_v19  ;;  %v7565_v41 = vpack.c.bf16 (!%p10101_p3), %v1506_v27, %v1505_v25  ;;  %v2509_v45 = vadd.s32 (!%p10101_p3), 56, %v9187_v19  ;;  %s10110_s26 = sld [smem:[#allocation42_spill]] (!%p10101_p3) }
 0x1ba   : > { %6760 = vmatprep.mubr.f32.mxu0 (!%p10101_p3), %v1475_v9  ;;  %v9194_v35 = vld [vmem:[%s10103_s11] ss:$0 sm:$0xff] (!%p10101_p3)  ;;  %v7573_v38 = vpack.c.bf16 (!%p10101_p3), %v1678_v34, %v1677_v33  ;;  %v1680_v40 = vld [vmem:[#allocation10 + $0x28] sm:$0xff] (!%p10101_p3)  ;;  %v1681_v52 = vld [vmem:[#allocation10 + $0x30] sm:$0xff] (!%p10101_p3)  ;;  %v2510_v4 = vadd.s32 (!%p10101_p3), 64, %v9187_v19 }
 0x1bb   : > { %7544 = vmatpush3.bf16.msra.mxu0 %v7541_v5  ;;  %vm2524_vm0 = vcmp.eq.s32.totalorder %v9194_v35, %v2503_v23  ;;  %v1679_v39 = vld [vmem:[#allocation10 + $0x20] sm:$0xff]  ;;  %vm2523_vm1 = vcmp.eq.s32.totalorder %v9194_v35, %v9187_v19  ;;  %vm2525_vm2 = vcmp.eq.s32.totalorder %v9194_v35, %v2504_v24  ;;  %7570 = vmatprep.subr.bf16.mxu1 %v7569_v32  ;;  %v1876_v49 = vld [vmem:[#allocation12 + $0x8] sm:$0xff]  ;;  %v1682_v53 = vld [vmem:[#allocation10 + $0x38] sm:$0xff] }
 0x1bc   : > { %7546 = vmatprep.subr.bf16.mxu0 %v7545_v8  ;;  %v6177_v43 = vsel %vm2524_vm0, 1.0, %v8585_v42  ;;  %v6176_v44 = vsel %vm2523_vm1, 1.0, %v8585_v42  ;;  %7572 = vmatpush3.bf16.msra.mxu1 %v7569_v32  ;;  %v7577_v46 = vpack.c.bf16 %v1680_v40, %v1679_v39  ;;  %vm2526_vm3 = vcmp.eq.s32.totalorder %v9194_v35, %v2505_v30  ;;  %v1875_v48 = vld [vmem:[#allocation12] sm:$0xff]  ;;  %v1877_v61 = vld [vmem:[#allocation12 + $0x10] sm:$0xff]  ;;  %v1878_v62 = vld [vmem:[#allocation12 + $0x18] sm:$0xff] }
 0x1bd   : > { %v2571_v47 = vpack.c.bf16 %v6177_v43, %v6176_v44  ;;  %7574 = vmatprep.subr.bf16.mxu1 %v7573_v38  ;;  %2589 = vadd.xlane.f32.xlu0 %v6177_v43  ;;  %v6178_v50 = vsel %vm2525_vm2, 1.0, %v8585_v42  ;;  %v6179_v51 = vsel %vm2526_vm3, 1.0, %v8585_v42  ;;  %vm2527_vm4 = vcmp.eq.s32.totalorder %v9194_v35, %v2506_v31  ;;  %v1683_v1 = vld [vmem:[#allocation10 + $0x40] sm:$0xff]  ;;  %v1684_v2 = vld [vmem:[#allocation10 + $0x48] sm:$0xff]  ;;  %v1477_v5 = vld [vmem:[%s10102_s25 + $0x10] sm:$0xff] }
 0x1be   : > { %vm2528_vm5 = vcmp.eq.s32.totalorder %v9194_v35, %v2507_v36  ;;  %2587 = vadd.xlane.f32.xlu1 %v6176_v44  ;;  %v2572_v54 = vpack.c.bf16 %v6179_v51, %v6178_v50  ;;  %v6180_v55 = vsel %vm2527_vm4, 1.0, %v8585_v42  ;;  %vm2529_vm6 = vcmp.eq.s32.totalorder %v9194_v35, %v2508_v37  ;;  %v1476_v3 = vld [vmem:[%s10102_s25 + $0x8] sm:$0xff]  ;;  %v1879_v7 = vld [vmem:[#allocation12 + $0x20] sm:$0xff]  ;;  %v1685_v10 = vld [vmem:[#allocation10 + $0x50] sm:$0xff] }
 0x1bf   : > { %7548 = vmatpush3.bf16.msra.mxu0 %v7545_v8  ;;  %2579 = vst [vmem:[#allocation6] sm:$0xff] %v2571_v47  ;;  %v6181_v56 = vsel %vm2528_vm5, 1.0, %v8585_v42  ;;  %vm2530_vm7 = vcmp.eq.s32.totalorder %v9194_v35, %v2509_v45  ;;  %v7601_v58 = vpack.c.bf16 %v1876_v49, %v1875_v48  ;;  %v6182_v59 = vsel %vm2529_vm6, 1.0, %v8585_v42  ;;  %v1880_v8 = vld [vmem:[#allocation12 + $0x28] sm:$0xff]  ;;  %v1686_v11 = vld [vmem:[#allocation10 + $0x58] sm:$0xff]  ;;  %v1479_v13 = vld [vmem:[%s10102_s25 + $0x20] sm:$0xff] }
 0x1c0   : > { %7550 = vmatprep.subr.bf16.mxu0 %v7549_v12  ;;  %v2573_v57 = vpack.c.bf16 %v6181_v56, %v6180_v55  ;;  %7576 = vmatpush3.bf16.msra.mxu1 %v7573_v38  ;;  %2580 = vst [vmem:[#allocation6 + $0x8] sm:$0xff] %v2572_v54  ;;  %v6183_v60 = vsel %vm2530_vm7, 1.0, %v8585_v42  ;;  %v7581_v63 = vpack.c.bf16 %v1682_v53, %v1681_v52  ;;  %v1882_v17 = vld [vmem:[#allocation12 + $0x38] sm:$0xff]  ;;  %v1687_v21 = vld [vmem:[#allocation10 + $0x60] sm:$0xff]  ;;  %v1688_v22 = vld [vmem:[#allocation10 + $0x68] sm:$0xff]  ;;  %vm2667_vm0 = vcmask 7168  }
 0x1c1   : > { %7578 = vmatprep.subr.bf16.mxu1 %v7577_v46  ;;  %2591 = vadd.xlane.f32.xlu0 %v6178_v50  ;;  %v2574_v0 = vpack.c.bf16 %v6183_v60, %v6182_v59  ;;  %v7605_v6 = vpack.c.bf16 %v1878_v62, %v1877_v61  ;;  %v7585_v9 = vpack.c.bf16 %v1684_v2, %v1683_v1  ;;  %v1480_v23 = vld [vmem:[%s10102_s25 + $0x28] sm:$0xff]  ;;  %v1481_v24 = vld [vmem:[%s10102_s25 + $0x30] sm:$0xff]  ;;  %v1482_v29 = vld [vmem:[%s10102_s25 + $0x38] sm:$0xff]  ;;  %v2511_v2 = vadd.s32 72, %v9187_v19 }
 0x1c2   : > { %2581 = vst [vmem:[#allocation6 + $0x10] sm:$0xff] %v2573_v57  ;;  %2593 = vadd.xlane.f32.xlu1 %v6179_v51  ;;  %vm2531_vm8 = vcmp.eq.s32.totalorder %v9194_v35, %v2510_v4  ;;  %v7609_v14 = vpack.c.bf16 %v1880_v8, %v1879_v7  ;;  %v7589_v18 = vpack.c.bf16 %v1686_v11, %v1685_v10  ;;  %v1884_v27 = vld [vmem:[#allocation12 + $0x48] sm:$0xff]  ;;  %v1483_v30 = vld [vmem:[%s10102_s25 + $0x40] sm:$0xff]  ;;  %v1885_v32 = vld [vmem:[#allocation12 + $0x50] sm:$0xff]  ;;  %v2513_v8 = vadd.s32 88, %v9187_v19 }
 0x1c3   : > { %7552 = vmatpush3.bf16.msra.mxu0 %v7549_v12  ;;  %2582 = vst [vmem:[#allocation6 + $0x18] sm:$0xff] %v2574_v0  ;;  %v1478_v12 = vld [vmem:[%s10102_s25 + $0x18] sm:$0xff]  ;;  %v7593_v28 = vpack.c.bf16 %v1688_v22, %v1687_v21  ;;  %v1484_v34 = vld [vmem:[%s10102_s25 + $0x48] sm:$0xff]  ;;  %v1485_v36 = vld [vmem:[%s10102_s25 + $0x50] sm:$0xff]  ;;  %vm2532_vm9 = vcmp.eq.s32.totalorder %v9194_v35, %v2511_v2 }
 0x1c4   : > { %7554 = vmatprep.subr.bf16.mxu0 %v7553_v16  ;;  %7580 = vmatpush3.bf16.msra.mxu1 %v7577_v46  ;;  %v1886_v33 = vld [vmem:[#allocation12 + $0x58] sm:$0xff]  ;;  %v1887_v38 = vld [vmem:[#allocation12 + $0x60] sm:$0xff]  ;;  %v1888_v39 = vld [vmem:[#allocation12 + $0x68] sm:$0xff]  ;;  %v6185_v4 = vsel %vm2532_vm9, 1.0, %v8585_v42  ;;  %vm2534_vm11 = vcmp.eq.s32.totalorder %v9194_v35, %v2513_v8 }
 0x1c5   : > { %7582 = vmatprep.subr.bf16.mxu1 %v7581_v63  ;;  %2595 = vadd.xlane.f32.xlu0 %v6180_v55  ;;  %v7621_v37 = vpack.c.bf16 %v1886_v33, %v1885_v32  ;;  %v1486_v40 = vld [vmem:[%s10102_s25 + $0x58] sm:$0xff]  ;;  %v7625_v43 = vpack.c.bf16 %v1888_v39, %v1887_v38  ;;  %v1889_v44 = vld [vmem:[#allocation12 + $0x70] sm:$0xff]  ;;  %v1488_v46 = vld [vmem:[%s10102_s25 + $0x68] sm:$0xff] }
 0x1c6   : > { %2597 = vadd.xlane.f32.xlu1 %v6181_v56  ;;  %v1890_v45 = vld [vmem:[#allocation12 + $0x78] sm:$0xff]  ;;  %v1489_v47 = vld [vmem:[%s10102_s25 + $0x70] sm:$0xff]  ;;  %v1859_v50 = vld [vmem:[%s10104_s20] sm:$0xff] }
 0x1c7   : > { %7556 = vmatpush3.bf16.msra.mxu0 %v7553_v16  ;;  %v1881_v16 = vld [vmem:[#allocation12 + $0x30] sm:$0xff]  ;;  %v7629_v48 = vpack.c.bf16 %v1890_v45, %v1889_v44  ;;  %v1490_v49 = vld [vmem:[%s10102_s25 + $0x78] sm:$0xff]  ;;  %v1860_v51 = vld [vmem:[%s10104_s20 + $0x8] sm:$0xff] }
 0x1c8   : > { %7558 = vmatprep.subr.bf16.mxu0 %v7557_v20  ;;  %7584 = vmatpush3.bf16.msra.mxu1 %v7581_v63  ;;  %v7613_v25 = vpack.c.bf16 %v1882_v17, %v1881_v16  ;;  %v1861_v52 = vld [vmem:[%s10104_s20 + $0x10] sm:$0xff]  ;;  %v1862_v53 = vld [vmem:[%s10104_s20 + $0x18] sm:$0xff]  ;;  %v1863_v54 = vld [vmem:[%s10104_s20 + $0x20] sm:$0xff]  ;;  %v2515_v17 = vadd.s32 104, %v9187_v19 }
 0x1c9   : > { %7586 = vmatprep.subr.bf16.mxu1 %v7585_v9  ;;  %2599 = vadd.xlane.f32.xlu0 %v6182_v59  ;;  %v1864_v55 = vld [vmem:[%s10104_s20 + $0x28] sm:$0xff]  ;;  %v1865_v56 = vld [vmem:[%s10104_s20 + $0x30] sm:$0xff]  ;;  %v1866_v57 = vld [vmem:[%s10104_s20 + $0x38] sm:$0xff] }
 0x1ca   : > { %2601 = vadd.xlane.f32.xlu1 %v6183_v60  ;;  %v1868_v59 = vld [vmem:[%s10104_s20 + $0x48] sm:$0xff]  ;;  %v1869_v60 = vld [vmem:[%s10104_s20 + $0x50] sm:$0xff]  ;;  %v1870_v61 = vld [vmem:[%s10104_s20 + $0x58] sm:$0xff]  ;;  %vm2536_vm13 = vcmp.eq.s32.totalorder %v9194_v35, %v2515_v17 }
 0x1cb   : > { %7560 = vmatpush3.bf16.msra.mxu0 %v7557_v20  ;;  %v9225_v20 = vsel %vm2531_vm8, 1.0, %v8585_v42  ;;  %v1871_v62 = vld [vmem:[%s10104_s20 + $0x60] sm:$0xff]  ;;  %v1872_v63 = vld [vmem:[%s10104_s20 + $0x68] sm:$0xff]  ;;  %v1873_v0 = vld [vmem:[%s10104_s20 + $0x70] sm:$0xff]  ;;  %v6189_v22 = vsel %vm2536_vm13, 1.0, %v8585_v42 }
 0x1cc   : > { %7562 = vmatprep.subr.bf16.mxu0 %v7561_v26  ;;  %7588 = vmatpush3.bf16.msra.mxu1 %v7585_v9  ;;  %v1874_v1 = vld [vmem:[%s10104_s20 + $0x78] sm:$0xff]  ;;  %v2514_v9 = vadd.s32 96, %v9187_v19  ;;  %v2575_v11 = vpack.c.bf16 %v6185_v4, %v9225_v20  ;;  %v2060_v16 = vld [vmem:[#allocation13 + $0x8] sm:$0xff]  ;;  %v2249_v32 = vld [vmem:[%s10105_s29 + $0x20] sm:$0xff] }
 0x1cd   : > { %7590 = vmatprep.subr.bf16.mxu1 %v7589_v18  ;;  %2603 = vadd.xlane.f32.xlu0 %v9225_v20  ;;  %v1690_v7 = vld [vmem:[#allocation10 + $0x78] sm:$0xff]  ;;  %v2255_v39 = vld [vmem:[%s10105_s29 + $0x50] sm:$0xff]  ;;  %v2374_v45 = vld [vmem:[%s10106_s10 + $0x8] sm:$0xff] }
 0x1ce   : > { %2605 = vadd.xlane.f32.xlu1 %v6185_v4  ;;  %vm2535_vm12 = vcmp.eq.s32.totalorder %v9194_v35, %v2514_v9  ;;  %2583 = vst [vmem:[#allocation6 + $0x20] sm:$0xff] %v2575_v11  ;;  %v2252_v33 = vld [vmem:[%s10105_s29 + $0x38] sm:$0xff]  ;;  %v2259_v44 = vld [vmem:[%s10105_s29 + $0x70] sm:$0xff]  ;;  %v2386_v11 = vld [vmem:[%s10106_s10 + $0x68] sm:$0xff] }
 0x1cf   : > { %7564 = vmatpush3.bf16.msra.mxu0 %v7561_v26  ;;  %v1883_v26 = vld [vmem:[#allocation12 + $0x40] sm:$0xff]  ;;  %v2256_v38 = vld [vmem:[%s10105_s29 + $0x58] sm:$0xff] }
 0x1d0   : > { %7566 = vmatprep.subr.bf16.mxu0 %v7565_v41  ;;  %v7617_v31 = vpack.c.bf16 %v1884_v27, %v1883_v26  ;;  %7592 = vmatpush3.bf16.msra.mxu1 %v7589_v18  ;;  %v2516_v18 = vadd.s32 112, %v9187_v19 }
 0x1d1   : > { %7594 = vmatprep.subr.bf16.mxu1 %v7593_v28 }
 0x1d2   : > { %vm2537_vm14 = vcmp.eq.s32.totalorder %v9194_v35, %v2516_v18  ;;  %v2388_v18 = vld [vmem:[%s10106_s10 + $0x78] sm:$0xff] }
 0x1d3   : > { %7568 = vmatpush3.bf16.msra.mxu0 %v7565_v41  ;;  %v1487_v41 = vld [vmem:[%s10102_s25 + $0x60] sm:$0xff] }
 0x1d4   : > { %7602 = vmatprep.subr.bf16.mxu0 %v7601_v58  ;;  %7596 = vmatpush3.bf16.msra.mxu1 %v7593_v28  ;;  %v8586_v28 = vmov 0  }
 0x1d5   : > { %7988 = vset.pattern.permute.xlu1 %v8586_v28  ;;  %7987 = vset.pattern.permute.xlu0 %v8586_v28 }
 0x1d6   : > { %6761 = vmatmul.mubr.f32.vlgmr.msra.gmra.mrb[0].mxu0 %v1476_v3  ;;  %v2512_v3 = vadd.s32 80, %v9187_v19 }
 0x1d7   : > { %7604 = vmatpush3.bf16.msra.mxu0 %v7601_v58  ;;  %6763 = vmatprep.mubr.f32.mxu0 %v1477_v5  ;;  %v1867_v58 = vld [vmem:[%s10104_s20 + $0x40] sm:$0xff] }
 0x1d8   : > { %7606 = vmatprep.subr.bf16.mxu0 %v7605_v6  ;;  %vm2533_vm10 = vcmp.eq.s32.totalorder %v9194_v35, %v2512_v3  ;;  %v2384_v3 = vld [vmem:[%s10106_s10 + $0x58] sm:$0xff] }
 0x1d9   : > { %v6186_v5 = vsel %vm2533_vm10, 1.0, %v8585_v42 }
 0x1da   : > { %6764 = vmatmul.mubr.f32.gmra.mrb[2].mxu0 %v1478_v12  ;;  %2607 = vadd.xlane.f32.xlu0 %v6186_v5  ;;  %v6187_v12 = vsel %vm2534_vm11, 1.0, %v8585_v42 }
 0x1db   : > { %7608 = vmatpush3.bf16.msra.mxu0 %v7605_v6  ;;  %6766 = vmatprep.mubr.f32.mxu0 %v1479_v13  ;;  %v1689_v6 = vld [vmem:[#allocation10 + $0x70] sm:$0xff]  ;;  %v6188_v13 = vsel %vm2535_vm12, 1.0, %v8585_v42  ;;  %v2576_v20 = vpack.c.bf16 %v6187_v12, %v6186_v5 }
 0x1dc   : > { %7610 = vmatprep.subr.bf16.mxu0 %v7609_v14  ;;  %v7597_v10 = vpack.c.bf16 %v1690_v7, %v1689_v6  ;;  %2609 = vadd.xlane.f32.xlu1 %v6187_v12  ;;  %v2383_v7 = vld [vmem:[%s10106_s10 + $0x50] sm:$0xff] }
 0x1dd   : > { %2584 = vst [vmem:[#allocation6 + $0x28] sm:$0xff] %v2576_v20 }
 0x1de   : > { %6767 = vmatmul.mubr.f32.gmra.mrb[4].mxu0 %v1480_v23  ;;  %7598 = vmatprep.subr.bf16.mxu1 %v7597_v10  ;;  %v6190_v23 = vsel %vm2537_vm14, 1.0, %v8585_v42 }
 0x1df   : > { %7612 = vmatpush3.bf16.msra.mxu0 %v7609_v14  ;;  %6769 = vmatprep.mubr.f32.mxu0 %v1481_v24  ;;  %v2059_v14 = vld [vmem:[#allocation13] sm:$0xff]  ;;  %v2517_v24 = vadd.s32 120, %v9187_v19  ;;  %v2247_v19 = vld [vmem:[%s10105_s29 + $0x10] sm:$0xff] }
 0x1e0   : > { %7614 = vmatprep.subr.bf16.mxu0 %v7613_v25  ;;  %7600 = vmatpush3.bf16.msra.mxu1 %v7597_v10  ;;  %v9270_v21 = vpack.c.bf16 %v2060_v16, %v2059_v14  ;;  %v2385_v14 = vld [vmem:[%s10106_s10 + $0x60] sm:$0xff] }
 0x1e1   : > { %2611 = vadd.xlane.f32.xlu0 %v6188_v13  ;;  %2613 = vadd.xlane.f32.xlu1 %v6189_v22  ;;  %vm2538_vm15 = vcmp.eq.s32.totalorder %v9194_v35, %v2517_v24  ;;  %v2248_v35 = vld [vmem:[%s10105_s29 + $0x18] sm:$0xff] }
 0x1e2   : > { %6770 = vmatmul.mubr.f32.gmra.mrb[6].mxu0 %v1482_v29  ;;  %7634 = vmatprep.subr.bf16.mxu1 %v9270_v21  ;;  %v6191_v26 = vsel %vm2538_vm15, 1.0, %v8585_v42  ;;  %v2245_v29 = vld [vmem:[%s10105_s29] sm:$0xff] }
 0x1e3   : > { %7616 = vmatpush3.bf16.msra.mxu0 %v7613_v25  ;;  %6772 = vmatprep.mubr.f32.mxu0 %v1483_v30  ;;  %v2577_v25 = vpack.c.bf16 %v6189_v22, %v6188_v13  ;;  %v2578_v27 = vpack.c.bf16 %v6191_v26, %v6190_v23  ;;  %v2246_v30 = vld [vmem:[%s10105_s29 + $0x8] sm:$0xff]  ;;  %v2387_v22 = vld [vmem:[%s10106_s10 + $0x70] sm:$0xff] }
 0x1e4   : > { %7618 = vmatprep.subr.bf16.mxu0 %v7617_v31 }
 0x1e5   : > { %2615 = vadd.xlane.f32.xlu0 %v6190_v23  ;;  %2617 = vadd.xlane.f32.xlu1 %v6191_v26  ;;  %2585 = vst [vmem:[#allocation6 + $0x30] sm:$0xff] %v2577_v25  ;;  %2586 = vst [vmem:[#allocation6 + $0x38] sm:$0xff] %v2578_v27  ;;  %v9322_v27 = vld [vmem:[%s10107_s15] ss:$0 sm:$0xff] }
 0x1e6   : > { %6773 = vmatmul.mubr.f32.gmra.mrb[8].mxu0 %v1484_v34  ;;  %v2251_v34 = vld [vmem:[%s10105_s29 + $0x30] sm:$0xff] }
 0x1e7   : > { %7620 = vmatpush3.bf16.msra.mxu0 %v7617_v31  ;;  %6775 = vmatprep.mubr.f32.mxu0 %v1485_v36  ;;  %v2250_v31 = vld [vmem:[%s10105_s29 + $0x28] sm:$0xff] }
 0x1e8   : > { %7622 = vmatprep.subr.bf16.mxu0 %v7621_v37  ;;  %v2254_v36 = vld [vmem:[%s10105_s29 + $0x48] sm:$0xff] }
 0x1ea   : > { %6776 = vmatmul.mubr.f32.gmra.mrb[10].mxu0 %v1486_v40  ;;  %v2258_v40 = vld [vmem:[%s10105_s29 + $0x68] sm:$0xff] }
 0x1eb   : > { %7624 = vmatpush3.bf16.msra.mxu0 %v7621_v37  ;;  %6778 = vmatprep.mubr.f32.mxu0 %v1487_v41  ;;  %v2253_v37 = vld [vmem:[%s10105_s29 + $0x40] sm:$0xff] }
 0x1ec   : > { %7626 = vmatprep.subr.bf16.mxu0 %v7625_v43  ;;  %v2257_v41 = vld [vmem:[%s10105_s29 + $0x60] sm:$0xff] }
 0x1ee   : > { %6779 = vmatmul.mubr.f32.gmra.mrb[12].mxu0 %v1488_v46  ;;  %v2373_v46 = vld [vmem:[%s10106_s10] sm:$0xff] }
 0x1ef   : > { %7628 = vmatpush3.bf16.msra.mxu0 %v7625_v43  ;;  %6781 = vmatprep.mubr.f32.mxu0 %v1489_v47  ;;  %v2260_v43 = vld [vmem:[%s10105_s29 + $0x78] sm:$0xff] }
 0x1f0   : > { %7630 = vmatprep.subr.bf16.mxu0 %v7629_v48  ;;  %v2376_v47 = vld [vmem:[%s10106_s10 + $0x18] sm:$0xff] }
 0x1f2   : > { %6782 = vmatmul.mubr.f32.gmra.mrb[14].mxu0 %v1490_v49  ;;  %v2378_v49 = vld [vmem:[%s10106_s10 + $0x28] sm:$0xff] }
 0x1f3   : > { %7632 = vmatpush3.bf16.msra.mxu0 %v7629_v48  ;;  %6872 = vmatprep.mubr.f32.mxu0 %v1859_v50  ;;  %v2375_v48 = vld [vmem:[%s10106_s10 + $0x10] sm:$0xff] }
 0x1f6   : > { %6873 = vmatmul.mubr.f32.vlgmr.msra.gmra.mrb[16].mxu0 %v1860_v51  ;;  %2268 = vperm.xlu1 %7988, %v2247_v19  }
 0x1f7   : > { %6875 = vmatprep.mubr.f32.mxu0 %v1861_v52  ;;  %v2377_v52 = vld [vmem:[%s10106_s10 + $0x20] sm:$0xff] }
 0x1fa   : > { %6876 = vmatmul.mubr.f32.gmra.mrb[18].mxu0 %v1862_v53  ;;  %2271 = vperm.xlu1 %7988, %v2248_v35  }
 0x1fb   : > { %6878 = vmatprep.mubr.f32.mxu0 %v1863_v54  ;;  %2262 = vperm.xlu0 %7987, %v2245_v29  }
 0x1fe   : > { %6879 = vmatmul.mubr.f32.gmra.mrb[20].mxu0 %v1864_v55  ;;  %2277 = vperm.xlu1 %7988, %v2250_v31   ;;  %v2381_v55 = vld [vmem:[%s10106_s10 + $0x40] sm:$0xff]  ;;  %v2062_v31 = vld [vmem:[#allocation13 + $0x18] sm:$0xff] }
 0x1ff   : > { %6881 = vmatprep.mubr.f32.mxu0 %v1865_v56  ;;  %2265 = vperm.xlu0 %7987, %v2246_v30   ;;  %v2061_v30 = vld [vmem:[#allocation13 + $0x10] sm:$0xff] }
 0x202   : > { %6882 = vmatmul.mubr.f32.gmra.mrb[22].mxu0 %v1866_v57  ;;  %2283 = vperm.xlu1 %7988, %v2252_v33  }
 0x203   : > { %6884 = vmatprep.mubr.f32.mxu0 %v1867_v58  ;;  %2274 = vperm.xlu0 %7987, %v2249_v32   ;;  %v2379_v58 = vld [vmem:[%s10106_s10 + $0x30] sm:$0xff] }
 0x206   : > { %6885 = vmatmul.mubr.f32.gmra.mrb[24].mxu0 %v1868_v59  ;;  %2289 = vperm.xlu1 %7988, %v2254_v36  }
 0x207   : > { %6887 = vmatprep.mubr.f32.mxu0 %v1869_v60  ;;  %2280 = vperm.xlu0 %7987, %v2251_v34  }
 0x20a   : > { %6888 = vmatmul.mubr.f32.gmra.mrb[26].mxu0 %v1870_v61  ;;  %2295 = vperm.xlu1 %7988, %v2256_v38   ;;  %v2382_v61 = vld [vmem:[%s10106_s10 + $0x48] sm:$0xff]  ;;  %v7637_v38 = vpack.c.bf16 %v2062_v31, %v2061_v30 }
 0x20b   : > { %6890 = vmatprep.mubr.f32.mxu0 %v1871_v62  ;;  %2286 = vperm.xlu0 %7987, %v2253_v37  }
 0x20e   : > { %6891 = vmatmul.mubr.f32.gmra.mrb[28].mxu0 %v1872_v63  ;;  %2301 = vperm.xlu1 %7988, %v2258_v40   ;;  %v2063_v40 = vld [vmem:[#allocation13 + $0x20] sm:$0xff] }
 0x20f   : > { %6893 = vmatprep.mubr.f32.mxu0 %v1873_v0  ;;  %2292 = vperm.xlu0 %7987, %v2255_v39   ;;  %v2380_v0 = vld [vmem:[%s10106_s10 + $0x38] sm:$0xff] }
 0x212   : > { %6894 = vmatmul.mubr.f32.gmra.mrb[30].mxu0 %v1874_v1  ;;  %2307 = vperm.xlu1 %7988, %v2260_v43  }
 0x213   : > { %2298 = vperm.xlu0 %7987, %v2257_v41   ;;  %v2064_v41 = vld [vmem:[#allocation13 + $0x28] sm:$0xff] }
 0x216   : > { %2393 = vperm.xlu1 %7988, %v2374_v45  }
 0x217   : > { %2304 = vperm.xlu0 %7987, %v2259_v44  }
 0x21a   : > { %2399 = vperm.xlu1 %7988, %v2376_v47  }
 0x21b   : > { %2390 = vperm.xlu0 %7987, %v2373_v46  }
 0x21e   : > { %2405 = vperm.xlu1 %7988, %v2378_v49  }
 0x21f   : > { %2396 = vperm.xlu0 %7987, %v2375_v48   ;;  %v7641_v48 = vpack.c.bf16 %v2064_v41, %v2063_v40  ;;  %v2074_v40 = vld [vmem:[#allocation13 + $0x78] sm:$0xff] }
 0x222   : > { %2414 = vperm.xlu1 %7988, %v2381_v55  }
 0x223   : > { %2402 = vperm.xlu0 %7987, %v2377_v52  }
 0x226   : > { %2417 = vperm.xlu1 %7988, %v2382_v61  }
 0x227   : > { %2408 = vperm.xlu0 %7987, %v2379_v58  }
 0x22a   : > { %2423 = vperm.xlu1 %7988, %v2384_v3  }
 0x22b   : > { %2411 = vperm.xlu0 %7987, %v2380_v0  }
 0x22e   : > { %2429 = vperm.xlu1 %7988, %v2386_v11  }
 0x22f   : > { %2420 = vperm.xlu0 %7987, %v2383_v7  }
 0x232   : > { %2435 = vperm.xlu1 %7988, %v2388_v18  }
 0x233   : > { %2426 = vperm.xlu0 %7987, %v2385_v14  }
 0x237   : > { %2432 = vperm.xlu0 %7987, %v2387_v22  }
 0x24a   : > { %v2590_v51 = vpop.xlane.xlu0 %2589 }
 0x24b   : > { %v2588_v50 = vpop.xlane.xlu1 %2587  ;;  %v2620_v54 = vmax.f32 %v2590_v51, 1.0  ;;  %v2066_v51 = vld [vmem:[#allocation13 + $0x38] sm:$0xff] }
 0x24c   : > { %v2619_v53 = vmax.f32 %v2588_v50, 1.0  ;;  %v2065_v50 = vld [vmem:[#allocation13 + $0x30] sm:$0xff] }
 0x24e   : > { %7989 = vrcp.f32 %v2619_v53  ;;  %v2592_v57 = vpop.xlane.xlu0 %2591 }
 0x24f   : > { %7991 = vrcp.f32 %v2620_v54  ;;  %v2594_v56 = vpop.xlane.xlu1 %2593  ;;  %v2621_v60 = vmax.f32 %v2592_v57, 1.0 }
 0x250   : > { %v2622_v59 = vmax.f32 %v2594_v56, 1.0 }
 0x252   : > { %7993 = vrcp.f32 %v2622_v59  ;;  %v2596_v63 = vpop.xlane.xlu0 %2595  ;;  %v2067_v59 = vld [vmem:[#allocation13 + $0x40] sm:$0xff] }
 0x253   : > { %7995 = vrcp.f32 %v2621_v60  ;;  %v2598_v62 = vpop.xlane.xlu1 %2597  ;;  %v2623_v2 = vmax.f32 %v2596_v63, 1.0  ;;  %v2068_v60 = vld [vmem:[#allocation13 + $0x48] sm:$0xff] }
 0x254   : > { %v2624_v1 = vmax.f32 %v2598_v62, 1.0 }
 0x256   : > { %7997 = vrcp.f32 %v2624_v1  ;;  %v2600_v5 = vpop.xlane.xlu0 %2599 }
 0x257   : > { %7999 = vrcp.f32 %v2623_v2  ;;  %v2602_v4 = vpop.xlane.xlu1 %2601  ;;  %v2625_v9 = vmax.f32 %v2600_v5, 1.0  ;;  %v7649_v5 = vpack.c.bf16 %v2068_v60, %v2067_v59 }
 0x258   : > { %v7990_v6 = vpop.eup %7989  ;;  %v2626_v8 = vmax.f32 %v2602_v4, 1.0 }
 0x259   : > { %v7992_v10 = vpop.eup %7991  ;;  %2668 = vst.msk [vmem:[#allocation7] sm:$0xff] %vm2667_vm0, %v7990_v6 }
 0x25a   : > { %2669 = vst.msk [vmem:[#allocation7 + $0x8] sm:$0xff] %vm2667_vm0, %v7992_v10  ;;  %8001 = vrcp.f32 %v2626_v8  ;;  %v2604_v12 = vpop.xlane.xlu0 %2603  ;;  %v2069_v8 = vld [vmem:[#allocation13 + $0x50] sm:$0xff] }
 0x25b   : > { %8003 = vrcp.f32 %v2625_v9  ;;  %v2627_v16 = vmax.f32 %v2604_v12, 1.0  ;;  %v2606_v57 = vpop.xlane.xlu1 %2605  ;;  %v2070_v9 = vld [vmem:[#allocation13 + $0x58] sm:$0xff] }
 0x25c   : > { %v7994_v13 = vpop.eup %7993  ;;  %v2628_v61 = vmax.f32 %v2606_v57, 1.0 }
 0x25d   : > { %v7996_v17 = vpop.eup %7995  ;;  %2671 = vst.msk [vmem:[#allocation7 + $0x18] sm:$0xff] %vm2667_vm0, %v7994_v13  ;;  %8005 = vrcp.f32 %v2627_v16 }
 0x25e   : > { %2670 = vst.msk [vmem:[#allocation7 + $0x10] sm:$0xff] %vm2667_vm0, %v7996_v17  ;;  %8007 = vrcp.f32 %v2628_v61 }
 0x260   : > { %v7998_v20 = vpop.eup %7997 }
 0x261   : > { %v8000_v23 = vpop.eup %7999  ;;  %2673 = vst.msk [vmem:[#allocation7 + $0x28] sm:$0xff] %vm2667_vm0, %v7998_v20  ;;  %v7653_v20 = vpack.c.bf16 %v2070_v9, %v2069_v8 }
 0x262   : > { %2672 = vst.msk [vmem:[#allocation7 + $0x20] sm:$0xff] %vm2667_vm0, %v8000_v23 }
 0x264   : > { %v8002_v24 = vpop.eup %8001 }
 0x265   : > { %v8004_v25 = vpop.eup %8003  ;;  %2675 = vst.msk [vmem:[#allocation7 + $0x38] sm:$0xff] %vm2667_vm0, %v8002_v24  ;;  %v2071_v24 = vld [vmem:[#allocation13 + $0x60] sm:$0xff] }
 0x266   : > { %2674 = vst.msk [vmem:[#allocation7 + $0x30] sm:$0xff] %vm2667_vm0, %v8004_v25  ;;  %v2072_v25 = vld [vmem:[#allocation13 + $0x68] sm:$0xff] }
 0x267   : > { %v8006_v26 = vpop.eup %8005  ;;  %v2608_v62 = vpop.xlane.xlu0 %2607 }
 0x268   : > { %2676 = vst.msk [vmem:[#allocation7 + $0x40] sm:$0xff] %vm2667_vm0, %v8006_v26  ;;  %v2629_v63 = vmax.f32 %v2608_v62, 1.0 }
 0x269   : > { %v2610_v6 = vpop.xlane.xlu1 %2609 }
 0x26a   : > { %8009 = vrcp.f32 %v2629_v63  ;;  %v2630_v10 = vmax.f32 %v2610_v6, 1.0 }
 0x26c   : > { %8011 = vrcp.f32 %v2630_v10 }
 0x26e   : > { %v2612_v11 = vpop.xlane.xlu0 %2611  ;;  %v2614_v22 = vpop.xlane.xlu1 %2613 }
 0x26f   : > { %v2631_v12 = vmax.f32 %v2612_v11, 1.0  ;;  %v2632_v26 = vmax.f32 %v2614_v22, 1.0 }
 0x271   : > { %8013 = vrcp.f32 %v2631_v12 }
 0x272   : > { %8015 = vrcp.f32 %v2632_v26 }
 0x2a9   : > { %v6762_v28 = vpop.f32.mrb[0].mxu0 }
 0x2aa   : > { %v1586_v19 = vadd.f32 %v6762_v28, %v9322_v27  ;;  %v1580_v29 = vpop.f32.mrb[1].mxu0  ;;  %v2616_v28 = vpop.xlane.xlu0 %2615 }
 0x2ab   : > { %v1581_v35 = vadd.f32 %v9322_v27, %v1580_v29 }
 0x2ac   : > { %v1660_v34 = vmax.f32 %v1586_v19, 0.0  ;;  %v2633_v19 = vmax.f32 %v2616_v28, 1.0 }
 0x2ad   : > { %v6765_v32 = vpop.f32.mrb[2].mxu0  ;;  %v1659_v33 = vmax.f32 %v1581_v35, 0.0 }
 0x2ae   : > { %v1596_v36 = vadd.f32 %v6765_v32, %v9322_v27  ;;  %v1590_v37 = vpop.f32.mrb[3].mxu0  ;;  %8017 = vrcp.f32 %v2633_v19 }
 0x2af   : > { %v1591_v39 = vadd.f32 %v9322_v27, %v1590_v37  ;;  %6816 = vmatprep.mubr.f32.mxu1 %v1659_v33  ;;  %v7657_v33 = vpack.c.bf16 %v2072_v25, %v2071_v24  ;;  %v9339_v37 = vand.u32 127, %v2243_v15 }
 0x2b0   : > { %6817 = vmatmul.mubr.f32.vlgmr.msra.gmra.mrb[0].mxu1 %v1660_v34  ;;  %v1662_v45 = vmax.f32 %v1596_v36, 0.0  ;;  %v2618_v34 = vpop.xlane.xlu1 %2617  ;;  %v8008_v36 = vpop.eup %8007 }
 0x2b1   : > { %v1661_v43 = vmax.f32 %v1591_v39, 0.0  ;;  %v6768_v44 = vpop.f32.mrb[4].mxu0  ;;  %7636 = vmatpush3.bf16.msra.mxu1 %v9270_v21  ;;  %v7645_v21 = vpack.c.bf16 %v2066_v51, %v2065_v50  ;;  %v2073_v39 = vld [vmem:[#allocation13 + $0x70] sm:$0xff]  ;;  %v2634_v41 = vmax.f32 %v2618_v34, 1.0  ;;  %2677 = vst.msk [vmem:[#allocation7 + $0x48] sm:$0xff] %vm2667_vm0, %v8008_v36 }
 0x2b2   : > { %v1606_v46 = vadd.f32 %v6768_v44, %v9322_v27  ;;  %v1600_v47 = vpop.f32.mrb[5].mxu0  ;;  %7638 = vmatprep.subr.bf16.mxu1 %v7637_v38 }
 0x2b3   : > { %v1601_v49 = vadd.f32 %v9322_v27, %v1600_v47  ;;  %6819 = vmatprep.mubr.f32.mxu1 %v1661_v43  ;;  %v8010_v43 = vpop.eup %8009  ;;  %8019 = vrcp.f32 %v2634_v41 }
 0x2b4   : > { %6820 = vmatmul.mubr.f32.gmra.mrb[2].mxu1 %v1662_v45  ;;  %v1664_v54 = vmax.f32 %v1606_v46, 0.0  ;;  %2678 = vst.msk [vmem:[#allocation7 + $0x50] sm:$0xff] %vm2667_vm0, %v8010_v43  ;;  %v8012_v50 = vpop.eup %8011 }
 0x2b5   : > { %v1663_v52 = vmax.f32 %v1601_v49, 0.0  ;;  %v6771_v53 = vpop.f32.mrb[6].mxu0  ;;  %7640 = vmatpush3.bf16.msra.mxu1 %v7637_v38  ;;  %v2269_v49 = vpop.permute.xlu1 %2268  ;;  %2679 = vst.msk [vmem:[#allocation7 + $0x58] sm:$0xff] %vm2667_vm0, %v8012_v50 }
 0x2b6   : > { %v1616_v55 = vadd.f32 %v6771_v53, %v9322_v27  ;;  %v1610_v56 = vpop.f32.mrb[7].mxu0  ;;  %7642 = vmatprep.subr.bf16.mxu1 %v7641_v48  ;;  %vm2311_vm1 = vcmp.eq.s32.totalorder %v2269_v49, %v9339_v37  ;;  %v2263_v53 = vpop.permute.xlu0 %2262 }
 0x2b7   : > { %v1611_v58 = vadd.f32 %v9322_v27, %v1610_v56  ;;  %6822 = vmatprep.mubr.f32.mxu1 %v1663_v52  ;;  %v9347_v52 = vld [vmem:[%s10108_s22] ss:$0 sm:$0xff]  ;;  %vm2309_vm2 = vcmp.eq.s32.totalorder %v2263_v53, %v9339_v37 }
 0x2b8   : > { %6823 = vmatmul.mubr.f32.gmra.mrb[4].mxu1 %v1664_v54  ;;  %v1666_v2 = vmax.f32 %v1616_v55, 0.0  ;;  %v8014_v54 = vpop.eup %8013  ;;  %v6143_v62 = vsel %vm2309_vm2, 1.0, %v8585_v42 }
 0x2b9   : > { %v1665_v0 = vmax.f32 %v1611_v58, 0.0  ;;  %v6774_v1 = vpop.f32.mrb[8].mxu0  ;;  %7644 = vmatpush3.bf16.msra.mxu1 %v7641_v48  ;;  %v7661_v48 = vpack.c.bf16 %v2074_v40, %v2073_v39  ;;  %2680 = vst.msk [vmem:[#allocation7 + $0x60] sm:$0xff] %vm2667_vm0, %v8014_v54  ;;  %v6145_v58 = vsel %vm2311_vm1, 1.0, %v8585_v42  ;;  %v2272_v59 = vpop.permute.xlu1 %2271 }
 0x2ba   : > { %v1626_v3 = vadd.f32 %v6774_v1, %v9322_v27  ;;  %v1620_v4 = vpop.f32.mrb[9].mxu0  ;;  %7646 = vmatprep.subr.bf16.mxu1 %v7645_v21  ;;  %v8016_v60 = vpop.eup %8015  ;;  %vm2312_vm3 = vcmp.eq.s32.totalorder %v2272_v59, %v9339_v37 }
 0x2bb   : > { %v1621_v7 = vadd.f32 %v9322_v27, %v1620_v4  ;;  %6825 = vmatprep.mubr.f32.mxu1 %v1665_v0  ;;  %v2266_v63 = vpop.permute.xlu0 %2265  ;;  %v8018_v0 = vpop.eup %8017  ;;  %2681 = vst.msk [vmem:[#allocation7 + $0x68] sm:$0xff] %vm2667_vm0, %v8016_v60  ;;  %v6146_v1 = vsel %vm2312_vm3, 1.0, %v8585_v42 }
 0x2bc   : > { %6826 = vmatmul.mubr.f32.gmra.mrb[6].mxu1 %v1666_v2  ;;  %v1668_v16 = vmax.f32 %v1626_v3, 0.0  ;;  %vm2310_vm4 = vcmp.eq.s32.totalorder %v2266_v63, %v9339_v37  ;;  %2682 = vst.msk [vmem:[#allocation7 + $0x70] sm:$0xff] %vm2667_vm0, %v8018_v0  ;;  %v2358_v4 = vpack.c.bf16 %v6146_v1, %v6145_v58 }
 0x2bd   : > { %v1667_v13 = vmax.f32 %v1621_v7, 0.0  ;;  %v6777_v14 = vpop.f32.mrb[10].mxu0  ;;  %7648 = vmatpush3.bf16.msra.mxu1 %v7645_v21  ;;  %v2278_v10 = vpop.permute.xlu1 %2277 }
 0x2be   : > { %v1636_v17 = vadd.f32 %v6777_v14, %v9322_v27  ;;  %v1630_v18 = vpop.f32.mrb[11].mxu0  ;;  %7650 = vmatprep.subr.bf16.mxu1 %v7649_v5  ;;  %v8020_v11 = vpop.eup %8019  ;;  %2366 = vst [vmem:[#allocation4 + $0x8] sm:$0xff] %v2358_v4  ;;  %vm2314_vm5 = vcmp.eq.s32.totalorder %v2278_v10, %v9339_v37 }
 0x2bf   : > { %v1631_v23 = vadd.f32 %v9322_v27, %v1630_v18  ;;  %6828 = vmatprep.mubr.f32.mxu1 %v1667_v13  ;;  %v2275_v13 = vpop.permute.xlu0 %2274  ;;  %2683 = vst.msk [vmem:[#allocation7 + $0x78] sm:$0xff] %vm2667_vm0, %v8020_v11  ;;  %v6148_v14 = vsel %vm2314_vm5, 1.0, %v8585_v42 }
 0x2c0   : > { %6829 = vmatmul.mubr.f32.gmra.mrb[8].mxu1 %v1668_v16  ;;  %v1670_v30 = vmax.f32 %v1636_v17, 0.0  ;;  %vm2313_vm6 = vcmp.eq.s32.totalorder %v2275_v13, %v9339_v37 }
 0x2c1   : > { %v1669_v29 = vmax.f32 %v1631_v23, 0.0  ;;  %v6780_v35 = vpop.f32.mrb[12].mxu0  ;;  %7652 = vmatpush3.bf16.msra.mxu1 %v7649_v5  ;;  %v6144_v5 = vsel %vm2310_vm4, 1.0, %v8585_v42  ;;  %v6147_v18 = vsel %vm2313_vm6, 1.0, %v8585_v42  ;;  %v2284_v25 = vpop.permute.xlu1 %2283 }
 0x2c2   : > { %v1646_v31 = vadd.f32 %v6780_v35, %v9322_v27  ;;  %v1640_v32 = vpop.f32.mrb[13].mxu0  ;;  %7654 = vmatprep.subr.bf16.mxu1 %v7653_v20  ;;  %v2357_v9 = vpack.c.bf16 %v6144_v5, %v6143_v62  ;;  %v2359_v24 = vpack.c.bf16 %v6148_v14, %v6147_v18  ;;  %vm2316_vm7 = vcmp.eq.s32.totalorder %v2284_v25, %v9339_v37 }
 0x2c3   : > { %v1641_v38 = vadd.f32 %v9322_v27, %v1640_v32  ;;  %6831 = vmatprep.mubr.f32.mxu1 %v1669_v29  ;;  %v2281_v28 = vpop.permute.xlu0 %2280  ;;  %v6150_v19 = vsel %vm2316_vm7, 1.0, %v8585_v42 }
 0x2c4   : > { %6832 = vmatmul.mubr.f32.gmra.mrb[10].mxu1 %v1670_v30  ;;  %v1672_v46 = vmax.f32 %v1646_v31, 0.0  ;;  %2365 = vst [vmem:[#allocation4] sm:$0xff] %v2357_v9  ;;  %2367 = vst [vmem:[#allocation4 + $0x10] sm:$0xff] %v2359_v24  ;;  %vm2315_vm8 = vcmp.eq.s32.totalorder %v2281_v28, %v9339_v37 }
 0x2c5   : > { %v1671_v44 = vmax.f32 %v1641_v38, 0.0  ;;  %v6783_v45 = vpop.f32.mrb[14].mxu0  ;;  %7656 = vmatpush3.bf16.msra.mxu1 %v7653_v20  ;;  %v6149_v30 = vsel %vm2315_vm8, 1.0, %v8585_v42  ;;  %v2290_v36 = vpop.permute.xlu1 %2289 }
 0x2c6   : > { %v1656_v15 = vadd.f32 %v6783_v45, %v9322_v27  ;;  %v1650_v47 = vpop.f32.mrb[15].mxu0  ;;  %7658 = vmatprep.subr.bf16.mxu1 %v7657_v33  ;;  %v2360_v34 = vpack.c.bf16 %v6150_v19, %v6149_v30  ;;  %vm2318_vm9 = vcmp.eq.s32.totalorder %v2290_v36, %v9339_v37 }
 0x2c7   : > { %v1651_v51 = vadd.f32 %v9322_v27, %v1650_v47  ;;  %6834 = vmatprep.mubr.f32.mxu1 %v1671_v44  ;;  %v2287_v39 = vpop.permute.xlu0 %2286  ;;  %v6152_v40 = vsel %vm2318_vm9, 1.0, %v8585_v42 }
 0x2c8   : > { %6835 = vmatmul.mubr.f32.gmra.mrb[12].mxu1 %v1672_v46  ;;  %v1674_v21 = vmax.f32 %v1656_v15, 0.0  ;;  %2368 = vst [vmem:[#allocation4 + $0x18] sm:$0xff] %v2360_v34  ;;  %vm2317_vm10 = vcmp.eq.s32.totalorder %v2287_v39, %v9339_v37 }
 0x2c9   : > { %v1673_v55 = vmax.f32 %v1651_v51, 0.0  ;;  %v6874_v56 = vpop.f32.mrb[16].mxu0  ;;  %7660 = vmatpush3.bf16.msra.mxu1 %v7657_v33  ;;  %v6151_v44 = vsel %vm2317_vm10, 1.0, %v8585_v42 }
 0x2ca   : > { %v1970_v27 = vadd.f32 %v6874_v56, %v9347_v52  ;;  %v1964_v57 = vpop.f32.mrb[17].mxu0  ;;  %7662 = vmatprep.subr.bf16.mxu1 %v7661_v48  ;;  %v2361_v47 = vpack.c.bf16 %v6152_v40, %v6151_v44 }
 0x2cb   : > { %v1965_v61 = vadd.f32 %v9347_v52, %v1964_v57  ;;  %6837 = vmatprep.mubr.f32.mxu1 %v1673_v55  ;;  %v2293_v50 = vpop.permute.xlu0 %2292 }
 0x2cc   : > { %6838 = vmatmul.mubr.f32.gmra.mrb[14].mxu1 %v1674_v21  ;;  %v2044_v6 = vmax.f32 %v1970_v27, 0.0  ;;  %2369 = vst [vmem:[#allocation4 + $0x20] sm:$0xff] %v2361_v47  ;;  %vm2319_vm12 = vcmp.eq.s32.totalorder %v2293_v50, %v9339_v37 }
 0x2cd   : > { %v2043_v2 = vmax.f32 %v1965_v61, 0.0  ;;  %v6877_v3 = vpop.f32.mrb[18].mxu0  ;;  %7664 = vmatpush3.bf16.msra.mxu1 %v7661_v48  ;;  %v2296_v48 = vpop.permute.xlu1 %2295  ;;  %v6153_v55 = vsel %vm2319_vm12, 1.0, %v8585_v42 }
 0x2ce   : > { %v1980_v7 = vadd.f32 %v6877_v3, %v9347_v52  ;;  %v1974_v8 = vpop.f32.mrb[19].mxu0  ;;  %vm2320_vm11 = vcmp.eq.s32.totalorder %v2296_v48, %v9339_v37 }
 0x2cf   : > { %v1975_v12 = vadd.f32 %v9347_v52, %v1974_v8  ;;  %6928 = vmatprep.mubr.f32.mxu1 %v2043_v2  ;;  %v6154_v51 = vsel %vm2320_vm11, 1.0, %v8585_v42  ;;  %v2299_v60 = vpop.permute.xlu0 %2298 }
 0x2d0   : > { %6929 = vmatmul.mubr.f32.vlgmr.msra.gmra.mrb[16].mxu1 %v2044_v6  ;;  %v2046_v20 = vmax.f32 %v1980_v7, 0.0  ;;  %v2362_v57 = vpack.c.bf16 %v6154_v51, %v6153_v55  ;;  %vm2321_vm14 = vcmp.eq.s32.totalorder %v2299_v60, %v9339_v37 }
 0x2d1   : > { %v2045_v16 = vmax.f32 %v1975_v12, 0.0  ;;  %v6880_v17 = vpop.f32.mrb[20].mxu0  ;;  %v2302_v58 = vpop.permute.xlu1 %2301  ;;  %v6155_v0 = vsel %vm2321_vm14, 1.0, %v8585_v42 }
 0x2d2   : > { %v1990_v22 = vadd.f32 %v6880_v17, %v9347_v52  ;;  %v1984_v23 = vpop.f32.mrb[21].mxu0  ;;  %vm2322_vm13 = vcmp.eq.s32.totalorder %v2302_v58, %v9339_v37  ;;  %2370 = vst [vmem:[#allocation4 + $0x28] sm:$0xff] %v2362_v57 }
 0x2d3   : > { %v1985_v26 = vadd.f32 %v9347_v52, %v1984_v23  ;;  %6931 = vmatprep.mubr.f32.mxu1 %v2045_v16  ;;  %v6156_v61 = vsel %vm2322_vm13, 1.0, %v8585_v42  ;;  %v2305_v7 = vpop.permute.xlu0 %2304 }
 0x2d4   : > { %6932 = vmatmul.mubr.f32.gmra.mrb[18].mxu1 %v2046_v20  ;;  %v2048_v31 = vmax.f32 %v1990_v22, 0.0  ;;  %v2363_v4 = vpack.c.bf16 %v6156_v61, %v6155_v0  ;;  %vm2323_vm0 = vcmp.eq.s32.totalorder %v2305_v7, %v9339_v37  ;;  %v6140_v61 = vld [vmem:[%s10109_s1] ss:$0 sm:$0xff] }
 0x2d5   : > { %v2047_v29 = vmax.f32 %v1985_v26, 0.0  ;;  %v6883_v35 = vpop.f32.mrb[22].mxu0  ;;  %v2308_v5 = vpop.permute.xlu1 %2307  ;;  %v6157_v11 = vsel %vm2323_vm0, 1.0, %v8585_v42 }
 0x2d6   : > { %v2000_v32 = vadd.f32 %v6883_v35, %v9347_v52  ;;  %v1994_v33 = vpop.f32.mrb[23].mxu0  ;;  %vm2324_vm15 = vcmp.eq.s32.totalorder %v2308_v5, %v9339_v37  ;;  %2371 = vst [vmem:[#allocation4 + $0x30] sm:$0xff] %v2363_v4 }
 0x2d7   : > { %v1995_v38 = vadd.f32 %v9347_v52, %v1994_v33  ;;  %6934 = vmatprep.mubr.f32.mxu1 %v2047_v29  ;;  %v6158_v8 = vsel %vm2324_vm15, 1.0, %v8585_v42  ;;  %v2391_v20 = vpop.permute.xlu0 %2390 }
 0x2d8   : > { %6935 = vmatmul.mubr.f32.gmra.mrb[20].mxu1 %v2048_v31  ;;  %v2050_v45 = vmax.f32 %v2000_v32, 0.0  ;;  %v2364_v16 = vpack.c.bf16 %v6158_v8, %v6157_v11  ;;  %vm2437_vm2 = vcmp.eq.s32.totalorder %v2391_v20, %v9339_v37 }
 0x2d9   : > { %v2049_v41 = vmax.f32 %v1995_v38, 0.0  ;;  %v6886_v43 = vpop.f32.mrb[24].mxu0  ;;  %v2394_v17 = vpop.permute.xlu1 %2393  ;;  %v6159_v24 = vsel %vm2437_vm2, 1.0, %v8585_v42 }
 0x2da   : > { %v2010_v46 = vadd.f32 %v6886_v43, %v9347_v52  ;;  %v2004_v15 = vpop.f32.mrb[25].mxu0  ;;  %vm2438_vm1 = vcmp.eq.s32.totalorder %v2394_v17, %v9339_v37  ;;  %2372 = vst [vmem:[#allocation4 + $0x38] sm:$0xff] %v2364_v16 }
 0x2db   : > { %v2005_v49 = vadd.f32 %v9347_v52, %v2004_v15  ;;  %6937 = vmatprep.mubr.f32.mxu1 %v2049_v41  ;;  %v6160_v22 = vsel %vm2438_vm1, 1.0, %v8585_v42 }
 0x2dc   : > { %6938 = vmatmul.mubr.f32.gmra.mrb[22].mxu1 %v2050_v45  ;;  %v2052_v56 = vmax.f32 %v2010_v46, 0.0  ;;  %v2485_v26 = vpack.c.bf16 %v6160_v22, %v6159_v24 }
 0x2dd   : > { %v2051_v53 = vmax.f32 %v2005_v49, 0.0  ;;  %v6889_v54 = vpop.f32.mrb[26].mxu0  ;;  %v2400_v28 = vpop.permute.xlu1 %2399 }
 0x2de   : > { %v2020_v21 = vadd.f32 %v6889_v54, %v9347_v52  ;;  %v2014_v27 = vpop.f32.mrb[27].mxu0  ;;  %vm2440_vm3 = vcmp.eq.s32.totalorder %v2400_v28, %v9339_v37  ;;  %2493 = vst [vmem:[#allocation5] sm:$0xff] %v2485_v26 }
 0x2df   : > { %v2015_v59 = vadd.f32 %v9347_v52, %v2014_v27  ;;  %6940 = vmatprep.mubr.f32.mxu1 %v2051_v53  ;;  %v6162_v19 = vsel %vm2440_vm3, 1.0, %v8585_v42 }
 0x2e0   : > { %6941 = vmatmul.mubr.f32.gmra.mrb[24].mxu1 %v2052_v56  ;;  %v2054_v1 = vmax.f32 %v2020_v21, 0.0 }
 0x2e1   : > { %v2053_v62 = vmax.f32 %v2015_v59, 0.0  ;;  %v6892_v63 = vpop.f32.mrb[28].mxu0  ;;  %v2406_v30 = vpop.permute.xlu1 %2405 }
 0x2e2   : > { %v2030_v2 = vadd.f32 %v6892_v63, %v9347_v52  ;;  %v2024_v3 = vpop.f32.mrb[29].mxu0  ;;  %vm2442_vm5 = vcmp.eq.s32.totalorder %v2406_v30, %v9339_v37 }
 0x2e3   : > { %v2025_v6 = vadd.f32 %v9347_v52, %v2024_v3  ;;  %6943 = vmatprep.mubr.f32.mxu1 %v2053_v62  ;;  %v6164_v32 = vsel %vm2442_vm5, 1.0, %v8585_v42 }
 0x2e4   : > { %6944 = vmatmul.mubr.f32.gmra.mrb[26].mxu1 %v2054_v1  ;;  %v2056_v12 = vmax.f32 %v2030_v2, 0.0 }
 0x2e5   : > { %v2055_v9 = vmax.f32 %v2025_v6, 0.0  ;;  %v6895_v10 = vpop.f32.mrb[30].mxu0  ;;  %v2415_v36 = vpop.permute.xlu1 %2414 }
 0x2e6   : > { %v2040_v13 = vadd.f32 %v6895_v10, %v9347_v52  ;;  %v2034_v14 = vpop.f32.mrb[31].mxu0  ;;  %vm2445_vm7 = vcmp.eq.s32.totalorder %v2415_v36, %v9339_v37 }
 0x2e7   : > { %v2035_v18 = vadd.f32 %v9347_v52, %v2034_v14  ;;  %6946 = vmatprep.mubr.f32.mxu1 %v2055_v9  ;;  %v2397_v52 = vpop.permute.xlu0 %2396  ;;  %v6167_v39 = vsel %vm2445_vm7, 1.0, %v8585_v42 }
 0x2e8   : > { %6947 = vmatmul.mubr.f32.gmra.mrb[28].mxu1 %v2056_v12  ;;  %v2058_v25 = vmax.f32 %v2040_v13, 0.0  ;;  %vm2439_vm4 = vcmp.eq.s32.totalorder %v2397_v52, %v9339_v37 }
 0x2e9   : > { %v2057_v23 = vmax.f32 %v2035_v18, 0.0  ;;  %v6161_v29 = vsel %vm2439_vm4, 1.0, %v8585_v42  ;;  %v2418_v40 = vpop.permute.xlu1 %2417 }
 0x2ea   : > { %v2486_v35 = vpack.c.bf16 %v6162_v19, %v6161_v29  ;;  %vm2446_vm9 = vcmp.eq.s32.totalorder %v2418_v40, %v9339_v37 }
 0x2eb   : > { %6949 = vmatprep.mubr.f32.mxu1 %v2057_v23  ;;  %v2403_v31 = vpop.permute.xlu0 %2402  ;;  %v6168_v44 = vsel %vm2446_vm9, 1.0, %v8585_v42 }
 0x2ec   : > { %6950 = vmatmul.mubr.f32.gmra.mrb[30].mxu1 %v2058_v25  ;;  %2494 = vst [vmem:[#allocation5 + $0x8] sm:$0xff] %v2486_v35  ;;  %vm2441_vm6 = vcmp.eq.s32.totalorder %v2403_v31, %v9339_v37  ;;  %v2489_v45 = vpack.c.bf16 %v6168_v44, %v6167_v39  ;;  %v6142_v35 = vld [vmem:[%s10110_s26] ss:$0 sm:$0xff] }
 0x2ed   : > { %v6163_v33 = vsel %vm2441_vm6, 1.0, %v8585_v42  ;;  %v2424_v47 = vpop.permute.xlu1 %2423 }
 0x2ee   : > { %v2487_v34 = vpack.c.bf16 %v6164_v32, %v6163_v33  ;;  %2497 = vst [vmem:[#allocation5 + $0x20] sm:$0xff] %v2489_v45  ;;  %vm2448_vm11 = vcmp.eq.s32.totalorder %v2424_v47, %v9339_v37 }
 0x2ef   : > { %v2409_v38 = vpop.permute.xlu0 %2408  ;;  %v6170_v49 = vsel %vm2448_vm11, 1.0, %v8585_v42 }
 0x2f0   : > { %2495 = vst [vmem:[#allocation5 + $0x10] sm:$0xff] %v2487_v34  ;;  %vm2443_vm8 = vcmp.eq.s32.totalorder %v2409_v38, %v9339_v37 }
 0x2f1   : > { %v6165_v41 = vsel %vm2443_vm8, 1.0, %v8585_v42  ;;  %v2430_v53 = vpop.permute.xlu1 %2429 }
 0x2f2   : > { %vm2450_vm13 = vcmp.eq.s32.totalorder %v2430_v53, %v9339_v37 }
 0x2f3   : > { %v2412_v43 = vpop.permute.xlu0 %2411  ;;  %v6172_v55 = vsel %vm2450_vm13, 1.0, %v8585_v42 }
 0x2f4   : > { %vm2444_vm10 = vcmp.eq.s32.totalorder %v2412_v43, %v9339_v37 }
 0x2f5   : > { %v6166_v46 = vsel %vm2444_vm10, 1.0, %v8585_v42  ;;  %v2436_v27 = vpop.permute.xlu1 %2435 }
 0x2f6   : > { %v2488_v15 = vpack.c.bf16 %v6166_v46, %v6165_v41  ;;  %vm2452_vm15 = vcmp.eq.s32.totalorder %v2436_v27, %v9339_v37 }
 0x2f7   : > { %v2421_v48 = vpop.permute.xlu0 %2420  ;;  %v6174_v58 = vsel %vm2452_vm15, 1.0, %v8585_v42 }
 0x2f8   : > { %2496 = vst [vmem:[#allocation5 + $0x18] sm:$0xff] %v2488_v15  ;;  %vm2447_vm12 = vcmp.eq.s32.totalorder %v2421_v48, %v9339_v37 }
 0x2f9   : > { %v6169_v50 = vsel %vm2447_vm12, 1.0, %v8585_v42 }
 0x2fa   : > { %v2490_v51 = vpack.c.bf16 %v6170_v49, %v6169_v50 }
 0x2fb   : > { %v2427_v54 = vpop.permute.xlu0 %2426 }
 0x2fc   : > { %2498 = vst [vmem:[#allocation5 + $0x28] sm:$0xff] %v2490_v51  ;;  %vm2449_vm14 = vcmp.eq.s32.totalorder %v2427_v54, %v9339_v37 }
 0x2fd   : > { %v6171_v56 = vsel %vm2449_vm14, 1.0, %v8585_v42 }
 0x2fe   : > { %v2491_v21 = vpack.c.bf16 %v6172_v55, %v6171_v56 }
 0x2ff   : > { %v2433_v57 = vpop.permute.xlu0 %2432 }
 0x300   : > { %2499 = vst [vmem:[#allocation5 + $0x30] sm:$0xff] %v2491_v21  ;;  %vm2451_vm0 = vcmp.eq.s32.totalorder %v2433_v57, %v9339_v37 }
 0x301   : > { %v6173_v59 = vsel %vm2451_vm0, 1.0, %v8585_v42 }
 0x302   : > { %v2492_v60 = vpack.c.bf16 %v6174_v58, %v6173_v59 }
 0x304   : > { %2500 = vst [vmem:[#allocation5 + $0x38] sm:$0xff] %v2492_v60 }
 0x383   : > { %v6818_v62 = vpop.f32.mrb[0].mxu1 }
 0x384   : > { %v1770_v63 = vadd.f32 %v6818_v62, %v6140_v61  ;;  %v1764_v0 = vpop.f32.mrb[1].mxu1 }
 0x385   : > { %v1765_v1 = vadd.f32 %v6140_v61, %v1764_v0 }
 0x386   : > { %1844 = vst [vmem:[#allocation2 + $0x8] sm:$0xff] %v1770_v63 }
 0x387   : > { %1843 = vst [vmem:[#allocation2] sm:$0xff] %v1765_v1  ;;  %v6821_v2 = vpop.f32.mrb[2].mxu1 }
 0x388   : > { %v1780_v3 = vadd.f32 %v6821_v2, %v6140_v61  ;;  %v1774_v4 = vpop.f32.mrb[3].mxu1 }
 0x389   : > { %v1775_v5 = vadd.f32 %v6140_v61, %v1774_v4 }
 0x38a   : > { %1846 = vst [vmem:[#allocation2 + $0x18] sm:$0xff] %v1780_v3 }
 0x38b   : > { %1845 = vst [vmem:[#allocation2 + $0x10] sm:$0xff] %v1775_v5  ;;  %v6824_v6 = vpop.f32.mrb[4].mxu1 }
 0x38c   : > { %v1790_v7 = vadd.f32 %v6824_v6, %v6140_v61  ;;  %v1784_v37 = vpop.f32.mrb[5].mxu1 }
 0x38d   : > { %v1785_v8 = vadd.f32 %v6140_v61, %v1784_v37 }
 0x38e   : > { %1848 = vst [vmem:[#allocation2 + $0x28] sm:$0xff] %v1790_v7 }
 0x38f   : > { %1847 = vst [vmem:[#allocation2 + $0x20] sm:$0xff] %v1785_v8  ;;  %v6827_v42 = vpop.f32.mrb[6].mxu1 }
 0x390   : > { %v1800_v9 = vadd.f32 %v6827_v42, %v6140_v61  ;;  %v1794_v10 = vpop.f32.mrb[7].mxu1 }
 0x391   : > { %v1795_v11 = vadd.f32 %v6140_v61, %v1794_v10 }
 0x392   : > { %1850 = vst [vmem:[#allocation2 + $0x38] sm:$0xff] %v1800_v9 }
 0x393   : > { %1849 = vst [vmem:[#allocation2 + $0x30] sm:$0xff] %v1795_v11  ;;  %v6830_v12 = vpop.f32.mrb[8].mxu1 }
 0x394   : > { %v1810_v13 = vadd.f32 %v6830_v12, %v6140_v61  ;;  %v1804_v14 = vpop.f32.mrb[9].mxu1 }
 0x395   : > { %v1805_v16 = vadd.f32 %v6140_v61, %v1804_v14 }
 0x396   : > { %1852 = vst [vmem:[#allocation2 + $0x48] sm:$0xff] %v1810_v13 }
 0x397   : > { %1851 = vst [vmem:[#allocation2 + $0x40] sm:$0xff] %v1805_v16  ;;  %v6833_v17 = vpop.f32.mrb[10].mxu1 }
 0x398   : > { %v1820_v18 = vadd.f32 %v6833_v17, %v6140_v61  ;;  %v1814_v20 = vpop.f32.mrb[11].mxu1 }
 0x399   : > { %v1815_v22 = vadd.f32 %v6140_v61, %v1814_v20 }
 0x39a   : > { %1854 = vst [vmem:[#allocation2 + $0x58] sm:$0xff] %v1820_v18 }
 0x39b   : > { %1853 = vst [vmem:[#allocation2 + $0x50] sm:$0xff] %v1815_v22  ;;  %v6836_v23 = vpop.f32.mrb[12].mxu1 }
 0x39c   : > { %v1830_v24 = vadd.f32 %v6836_v23, %v6140_v61  ;;  %v1824_v25 = vpop.f32.mrb[13].mxu1 }
 0x39d   : > { %v1825_v26 = vadd.f32 %v6140_v61, %v1824_v25 }
 0x39e   : > { %1856 = vst [vmem:[#allocation2 + $0x68] sm:$0xff] %v1830_v24 }
 0x39f   : > { %1855 = vst [vmem:[#allocation2 + $0x60] sm:$0xff] %v1825_v26  ;;  %v6839_v28 = vpop.f32.mrb[14].mxu1 }
 0x3a0   : > { %v1840_v52 = vadd.f32 %v6839_v28, %v6140_v61  ;;  %v1834_v19 = vpop.f32.mrb[15].mxu1 }
 0x3a1   : > { %v1835_v29 = vadd.f32 %v6140_v61, %v1834_v19 }
 0x3a2   : > { %1858 = vst [vmem:[#allocation2 + $0x78] sm:$0xff] %v1840_v52 }
 0x3a3   : > { %1857 = vst [vmem:[#allocation2 + $0x70] sm:$0xff] %v1835_v29  ;;  %v6930_v30 = vpop.f32.mrb[16].mxu1 }
 0x3a4   : > { %v2154_v31 = vadd.f32 %v6930_v30, %v6142_v35  ;;  %v2148_v32 = vpop.f32.mrb[17].mxu1 }
 0x3a5   : > { %v2149_v33 = vadd.f32 %v6142_v35, %v2148_v32 }
 0x3a6   : > { %2228 = vst [vmem:[#allocation3 + $0x8] sm:$0xff] %v2154_v31 }
 0x3a7   : > { %2227 = vst [vmem:[#allocation3] sm:$0xff] %v2149_v33  ;;  %v6933_v34 = vpop.f32.mrb[18].mxu1 }
 0x3a8   : > { %v2164_v36 = vadd.f32 %v6933_v34, %v6142_v35  ;;  %v2158_v38 = vpop.f32.mrb[19].mxu1 }
 0x3a9   : > { %v2159_v39 = vadd.f32 %v6142_v35, %v2158_v38 }
 0x3aa   : > { %2230 = vst [vmem:[#allocation3 + $0x18] sm:$0xff] %v2164_v36 }
 0x3ab   : > { %2229 = vst [vmem:[#allocation3 + $0x10] sm:$0xff] %v2159_v39  ;;  %v6936_v40 = vpop.f32.mrb[20].mxu1 }
 0x3ac   : > { %v2174_v41 = vadd.f32 %v6936_v40, %v6142_v35  ;;  %v2168_v43 = vpop.f32.mrb[21].mxu1 }
 0x3ad   : > { %v2169_v44 = vadd.f32 %v6142_v35, %v2168_v43 }
 0x3ae   : > { %2232 = vst [vmem:[#allocation3 + $0x28] sm:$0xff] %v2174_v41 }
 0x3af   : > { %2231 = vst [vmem:[#allocation3 + $0x20] sm:$0xff] %v2169_v44  ;;  %v6939_v45 = vpop.f32.mrb[22].mxu1 }
 0x3b0   : > { %v2184_v46 = vadd.f32 %v6939_v45, %v6142_v35  ;;  %v2178_v15 = vpop.f32.mrb[23].mxu1 }
 0x3b1   : > { %v2179_v47 = vadd.f32 %v6142_v35, %v2178_v15 }
 0x3b2   : > { %2234 = vst [vmem:[#allocation3 + $0x38] sm:$0xff] %v2184_v46 }
 0x3b3   : > { %2233 = vst [vmem:[#allocation3 + $0x30] sm:$0xff] %v2179_v47  ;;  %v6942_v48 = vpop.f32.mrb[24].mxu1 }
 0x3b4   : > { %v2194_v49 = vadd.f32 %v6942_v48, %v6142_v35  ;;  %v2188_v50 = vpop.f32.mrb[25].mxu1 }
 0x3b5   : > { %v2189_v51 = vadd.f32 %v6142_v35, %v2188_v50 }
 0x3b6   : > { %2236 = vst [vmem:[#allocation3 + $0x48] sm:$0xff] %v2194_v49 }
 0x3b7   : > { %2235 = vst [vmem:[#allocation3 + $0x40] sm:$0xff] %v2189_v51  ;;  %v6945_v53 = vpop.f32.mrb[26].mxu1 }
 0x3b8   : > { %v2204_v54 = vadd.f32 %v6945_v53, %v6142_v35  ;;  %v2198_v55 = vpop.f32.mrb[27].mxu1 }
 0x3b9   : > { %v2199_v56 = vadd.f32 %v6142_v35, %v2198_v55 }
 0x3ba   : > { %2238 = vst [vmem:[#allocation3 + $0x58] sm:$0xff] %v2204_v54 }
 0x3bb   : > { %2237 = vst [vmem:[#allocation3 + $0x50] sm:$0xff] %v2199_v56  ;;  %v6948_v21 = vpop.f32.mrb[28].mxu1 }
 0x3bc   : > { %v2214_v27 = vadd.f32 %v6948_v21, %v6142_v35  ;;  %v2208_v57 = vpop.f32.mrb[29].mxu1 }
 0x3bd   : > { %v2209_v58 = vadd.f32 %v6142_v35, %v2208_v57 }
 0x3be   : > { %2240 = vst [vmem:[#allocation3 + $0x68] sm:$0xff] %v2214_v27 }
 0x3bf   : > { %2239 = vst [vmem:[#allocation3 + $0x60] sm:$0xff] %v2209_v58  ;;  %v6951_v59 = vpop.f32.mrb[30].mxu1 }
 0x3c0   : > { %v2224_v60 = vadd.f32 %v6951_v59, %v6142_v35  ;;  %v2218_v61 = vpop.f32.mrb[31].mxu1 }
 0x3c1   : > { %v2219_v62 = vadd.f32 %v6142_v35, %v2218_v61 }
 0x3c2   : > { %2242 = vst [vmem:[#allocation3 + $0x78] sm:$0xff] %v2224_v60 }
 0x3c3   : > { %2241 = vst [vmem:[#allocation3 + $0x70] sm:$0xff] %v2219_v62 }
 0x3c4 PF: > { %v2684_v63 = vld [vmem:[#allocation2] sm:$0xff]  ;;  %v2685_v0 = vld [vmem:[#allocation2 + $0x8] sm:$0xff]  ;;  %v2686_v1 = vld [vmem:[#allocation2 + $0x10] sm:$0xff]  ;;  %s10112_s2 = sld [smem:[#allocation66_spill]] }
 0x3c5   : > { %v9436_v2 = vpack.c.bf16 %v2685_v0, %v2684_v63  ;;  %v2687_v3 = vld [vmem:[#allocation2 + $0x18] sm:$0xff]  ;;  %v2688_v5 = vld [vmem:[#allocation2 + $0x20] sm:$0xff]  ;;  %v2689_v6 = vld [vmem:[#allocation2 + $0x28] sm:$0xff] }
 0x3c6   : > { %v9438_v4 = vpack.c.bf16 %v2687_v3, %v2686_v1  ;;  %v9445_v7 = vpack.c.bf16 %v2689_v6, %v2688_v5  ;;  %v2829_v37 = vld [vmem:[#allocation5] sm:$0xff]  ;;  %v2690_v8 = vld [vmem:[#allocation2 + $0x30] sm:$0xff]  ;;  %v2691_v42 = vld [vmem:[#allocation2 + $0x38] sm:$0xff] }
 0x3c7   : > { %6984 = vmatprep.subr.bf16.mxu1 %v9436_v2  ;;  %6952 = vmatprep.subr.bf16.mxu0 %v9436_v2  ;;  %v2724_v9 = vld [vmem:[#allocation4] sm:$0xff]  ;;  %v9451_v10 = vpack.c.bf16 %v2691_v42, %v2690_v8  ;;  %v2693_v12 = vld [vmem:[#allocation2 + $0x48] sm:$0xff]  ;;  %v2694_v14 = vld [vmem:[#allocation2 + $0x50] sm:$0xff] }
 0x3c8   : > { %6985 = vmatpush3.bf16.msra.mxu1 %v9436_v2  ;;  %6953 = vmatpush3.bf16.msra.mxu0 %v9436_v2  ;;  %v2692_v11 = vld [vmem:[#allocation2 + $0x40] sm:$0xff]  ;;  %v2695_v16 = vld [vmem:[#allocation2 + $0x58] sm:$0xff]  ;;  %v2697_v20 = vld [vmem:[#allocation2 + $0x68] sm:$0xff] }
 0x3c9   : > { %6986 = vmatprep.subr.bf16.mxu1 %v9438_v4  ;;  %6954 = vmatprep.subr.bf16.mxu0 %v9438_v4  ;;  %v9457_v13 = vpack.c.bf16 %v2693_v12, %v2692_v11  ;;  %v2696_v17 = vld [vmem:[#allocation2 + $0x60] sm:$0xff]  ;;  %v9463_v18 = vpack.c.bf16 %v2695_v16, %v2694_v14  ;;  %v2698_v22 = vld [vmem:[#allocation2 + $0x70] sm:$0xff]  ;;  %v2699_v23 = vld [vmem:[#allocation2 + $0x78] sm:$0xff] }
 0x3ca   : > { %7000 = vmatprep.mubr.bf16.mxu1 %v2829_v37  ;;  %6968 = vmatprep.mubr.bf16.mxu0 %v2724_v9  ;;  %v9469_v24 = vpack.c.bf16 %v2697_v20, %v2696_v17  ;;  %v9475_v25 = vpack.c.bf16 %v2699_v23, %v2698_v22  ;;  %v8023_v26 = vld [vmem:[%s9156_s3 + $0x40] sm:$0xff]   ;;  %v2830_v28 = vld [vmem:[#allocation5 + $0x8] sm:$0xff]  ;;  %v2831_v19 = vld [vmem:[#allocation5 + $0x10] sm:$0xff]  ;;  %p5387_p0 = scmp.gt.s32.totalorder %s10112_s2, 0  ;;  %p6297_p12 = scmp.ne.s32.totalorder %s10112_s2, 2 }
 0x3cb   : > { %v2725_v52 = vld [vmem:[#allocation4 + $0x8] sm:$0xff]  ;;  %v2726_v29 = vld [vmem:[#allocation4 + $0x10] sm:$0xff]  ;;  %v2832_v31 = vld [vmem:[#allocation5 + $0x18] sm:$0xff]  ;;  %vm8589_vm1 = vmmov (!%p6297_p12), 0  }
 0x3cc   : > { %6987 = vmatpush3.bf16.msra.mxu1 %v9438_v4  ;;  %6955 = vmatpush3.bf16.msra.mxu0 %v9438_v4  ;;  %v8024_v35 = vld [vmem:[%s9156_s3 + $0x48] sm:$0xff]   ;;  %v8025_v30 = vld [vmem:[%s9156_s3 + $0x50] sm:$0xff]   ;;  %v2727_v32 = vld [vmem:[#allocation4 + $0x18] sm:$0xff]  ;;  %p5389_p13 = pnand %p5387_p0, %p1436_p8 }
 0x3cd   : > { %6988 = vmatprep.subr.bf16.mxu1 %v9445_v7  ;;  %6956 = vmatprep.subr.bf16.mxu0 %v9445_v7  ;;  %v2833_v33 = vld [vmem:[#allocation5 + $0x20] sm:$0xff]  ;;  %v8026_v36 = vld [vmem:[%s9156_s3 + $0x58] sm:$0xff]   ;;  %v2834_v39 = vld [vmem:[#allocation5 + $0x28] sm:$0xff] }
 0x3ce   : > { %v2728_v34 = vld [vmem:[#allocation4 + $0x20] sm:$0xff]  ;;  %v2729_v40 = vld [vmem:[#allocation4 + $0x28] sm:$0xff]  ;;  %v2835_v41 = vld [vmem:[#allocation5 + $0x30] sm:$0xff]  ;;  %s6296_s14 = scalar_select %p5389_p13, 0, 1 }
 0x3cf   : > { %v8027_v38 = vld [vmem:[%s9156_s3 + $0x60] sm:$0xff]   ;;  %v2730_v43 = vld [vmem:[#allocation4 + $0x30] sm:$0xff]  ;;  %v8028_v44 = vld [vmem:[%s9156_s3 + $0x68] sm:$0xff]  }
 0x3d0   : > { %6989 = vmatpush3.bf16.msra.mxu1 %v9445_v7  ;;  %6957 = vmatpush3.bf16.msra.mxu0 %v9445_v7  ;;  %v8029_v45 = vld [vmem:[%s9156_s3 + $0x70] sm:$0xff]   ;;  %v2836_v46 = vld [vmem:[#allocation5 + $0x38] sm:$0xff]  ;;  %v8031_v48 = vld [vmem:[%s9156_s3] sm:$0xff]   ;;  %s5392_s4 = scvt.s32.f32 %s6296_s14 }
 0x3d1   : > { %6990 = vmatprep.subr.bf16.mxu1 %v9451_v10  ;;  %6958 = vmatprep.subr.bf16.mxu0 %v9451_v10  ;;  %v2731_v15 = vld [vmem:[#allocation4 + $0x38] sm:$0xff]  ;;  %v8047_v49 = vld [vmem:[%s9159_s5] sm:$0xff]   ;;  %v8048_v50 = vld [vmem:[%s9159_s5 + $0x8] sm:$0xff]  }
 0x3d2   : > { %v8030_v47 = vld [vmem:[%s9156_s3 + $0x78] sm:$0xff]   ;;  %v8049_v51 = vld [vmem:[%s9159_s5 + $0x10] sm:$0xff]   ;;  %v8051_v54 = vld [vmem:[%s9159_s5 + $0x20] sm:$0xff]  }
 0x3d3   : > { %v8050_v53 = vld [vmem:[%s9159_s5 + $0x18] sm:$0xff]   ;;  %v8052_v55 = vld [vmem:[%s9159_s5 + $0x28] sm:$0xff]   ;;  %v8033_v8 = vld [vmem:[%s9156_s3 + $0x10] sm:$0xff]  }
 0x3d4   : > { %6991 = vmatpush3.bf16.msra.mxu1 %v9451_v10  ;;  %6959 = vmatpush3.bf16.msra.mxu0 %v9451_v10  ;;  %v8032_v3 = vld [vmem:[%s9156_s3 + $0x8] sm:$0xff]   ;;  %v8034_v23 = vld [vmem:[%s9156_s3 + $0x18] sm:$0xff]  }
 0x3d5   : > { %6992 = vmatprep.subr.bf16.mxu1 %v9457_v13  ;;  %6960 = vmatprep.subr.bf16.mxu0 %v9457_v13 }
 0x3d8   : > { %6993 = vmatpush3.bf16.msra.mxu1 %v9457_v13  ;;  %6961 = vmatpush3.bf16.msra.mxu0 %v9457_v13 }
 0x3d9   : > { %6994 = vmatprep.subr.bf16.mxu1 %v9463_v18  ;;  %6962 = vmatprep.subr.bf16.mxu0 %v9463_v18 }
 0x3dc   : > { %6995 = vmatpush3.bf16.msra.mxu1 %v9463_v18  ;;  %6963 = vmatpush3.bf16.msra.mxu0 %v9463_v18 }
 0x3dd   : > { %6996 = vmatprep.subr.bf16.mxu1 %v9469_v24  ;;  %6964 = vmatprep.subr.bf16.mxu0 %v9469_v24 }
 0x3e0   : > { %6997 = vmatpush3.bf16.msra.mxu1 %v9469_v24  ;;  %6965 = vmatpush3.bf16.msra.mxu0 %v9469_v24 }
 0x3e1   : > { %6998 = vmatprep.subr.bf16.mxu1 %v9475_v25  ;;  %6966 = vmatprep.subr.bf16.mxu0 %v9475_v25 }
 0x3e4   : > { %6999 = vmatpush3.bf16.msra.mxu1 %v9475_v25  ;;  %6967 = vmatpush3.bf16.msra.mxu0 %v9475_v25 }
 0x3e5   : > { %7016 = vmatprep.subr.bf16.mxu0 %v8023_v26  ;;  %7112 = vmatprep.subr.bf16.mxu1 %v8047_v49 }
 0x3e7   : > { %7001 = vmatmul.mubr.bf16.vlgmr.msra.gmra.mrb[0].mxu1 %v2830_v28  ;;  %6969 = vmatmul.mubr.bf16.vlgmr.msra.gmra.mrb[0].mxu0 %v2725_v52 }
 0x3e8   : > { %7004 = vmatprep.mubr.bf16.mxu1 %v2831_v19  ;;  %6972 = vmatprep.mubr.bf16.mxu0 %v2726_v29  ;;  %v8035_v19 = vld [vmem:[%s9156_s3 + $0x20] sm:$0xff]  }
 0x3e9   : > { %7017 = vmatpush3.bf16.msra.mxu0 %v8023_v26  ;;  %7113 = vmatpush3.bf16.msra.mxu1 %v8047_v49 }
 0x3ea   : > { %7018 = vmatprep.subr.bf16.mxu0 %v8024_v35  ;;  %7114 = vmatprep.subr.bf16.mxu1 %v8048_v50 }
 0x3ed   : > { %7019 = vmatpush3.bf16.msra.mxu0 %v8024_v35  ;;  %7115 = vmatpush3.bf16.msra.mxu1 %v8048_v50 }
 0x3ee   : > { %7020 = vmatprep.subr.bf16.mxu0 %v8025_v30  ;;  %7116 = vmatprep.subr.bf16.mxu1 %v8049_v51 }
 0x3ef   : > { %7005 = vmatmul.mubr.bf16.gmra.mrb[4].mxu1 %v2832_v31  ;;  %6973 = vmatmul.mubr.bf16.gmra.mrb[4].mxu0 %v2727_v32 }
 0x3f0   : > { %7008 = vmatprep.mubr.bf16.mxu1 %v2833_v33  ;;  %6976 = vmatprep.mubr.bf16.mxu0 %v2728_v34 }
 0x3f1   : > { %7021 = vmatpush3.bf16.msra.mxu0 %v8025_v30  ;;  %7117 = vmatpush3.bf16.msra.mxu1 %v8049_v51 }
 0x3f2   : > { %7022 = vmatprep.subr.bf16.mxu0 %v8026_v36  ;;  %7118 = vmatprep.subr.bf16.mxu1 %v8050_v53 }
 0x3f5   : > { %7023 = vmatpush3.bf16.msra.mxu0 %v8026_v36  ;;  %7119 = vmatpush3.bf16.msra.mxu1 %v8050_v53 }
 0x3f6   : > { %7024 = vmatprep.subr.bf16.mxu0 %v8027_v38  ;;  %7120 = vmatprep.subr.bf16.mxu1 %v8051_v54 }
 0x3f7   : > { %7009 = vmatmul.mubr.bf16.gmra.mrb[8].mxu1 %v2834_v39  ;;  %6977 = vmatmul.mubr.bf16.gmra.mrb[8].mxu0 %v2729_v40  ;;  %v8036_v39 = vld [vmem:[%s9156_s3 + $0x28] sm:$0xff]  }
 0x3f8   : > { %7012 = vmatprep.mubr.bf16.mxu1 %v2835_v41  ;;  %6980 = vmatprep.mubr.bf16.mxu0 %v2730_v43 }
 0x3f9   : > { %7025 = vmatpush3.bf16.msra.mxu0 %v8027_v38  ;;  %7121 = vmatpush3.bf16.msra.mxu1 %v8051_v54  ;;  %v8038_v54 = vld [vmem:[%s9156_s3 + $0x38] sm:$0xff]  }
 0x3fa   : > { %7026 = vmatprep.subr.bf16.mxu0 %v8028_v44  ;;  %7122 = vmatprep.subr.bf16.mxu1 %v8052_v55 }
 0x3fd   : > { %7027 = vmatpush3.bf16.msra.mxu0 %v8028_v44  ;;  %7123 = vmatpush3.bf16.msra.mxu1 %v8052_v55  ;;  %v8037_v44 = vld [vmem:[%s9156_s3 + $0x30] sm:$0xff]   ;;  %v8039_v55 = vld [vmem:[%s9156_s3 + $0x80] sm:$0xff]  }
 0x3fe   : > { %7028 = vmatprep.subr.bf16.mxu0 %v8029_v45 }
 0x3ff   : > { %7013 = vmatmul.mubr.bf16.gmra.mrb[12].mxu1 %v2836_v46  ;;  %6981 = vmatmul.mubr.bf16.gmra.mrb[12].mxu0 %v2731_v15 }
 0x401   : > { %7029 = vmatpush3.bf16.msra.mxu0 %v8029_v45 }
 0x402   : > { %7030 = vmatprep.subr.bf16.mxu0 %v8030_v47 }
 0x405   : > { %7031 = vmatpush3.bf16.msra.mxu0 %v8030_v47 }
 0x406   : > { %7048 = vmatprep.subr.bf16.mxu0 %v8031_v48 }
 0x4ba   : > { %v7002_v56 = vpop.f32.mrb[0].mxu1  ;;  %v9499_v21 = vpop.f32.mrb[0].mxu0 }
 0x4bb   : > { %v2871_v27 = vpop.f32.mrb[1].mxu1  ;;  %v9501_v57 = vpop.f32.mrb[1].mxu0 }
 0x4bc   : > { %v7003_v58 = vpop.f32.mrb[2].mxu1  ;;  %v9503_v59 = vpop.f32.mrb[2].mxu0 }
 0x4bd   : > { %v9505_v60 = vpack.c.bf16 %v7003_v58, %v7002_v56  ;;  %v2874_v61 = vpop.f32.mrb[3].mxu1  ;;  %v2935_v62 = vpack.c.bf16 %v9503_v59, %v9499_v21  ;;  %v9509_v63 = vpop.f32.mrb[3].mxu0  ;;  %v8040_v56 = vld [vmem:[%s9156_s3 + $0x88] sm:$0xff]   ;;  %v8043_v58 = vld [vmem:[%s9156_s3 + $0xa0] sm:$0xff]   ;;  %v8045_v59 = vld [vmem:[%s9156_s3 + $0xb0] sm:$0xff]  }
 0x4be   : > { %v9511_v0 = vpack.c.bf16 %v2874_v61, %v2871_v27  ;;  %v2934_v1 = vpack.c.bf16 %v9509_v63, %v9501_v57  ;;  %v8041_v27 = vld [vmem:[%s9156_s3 + $0x90] sm:$0xff]   ;;  %v8042_v57 = vld [vmem:[%s9156_s3 + $0x98] sm:$0xff]   ;;  %v8044_v21 = vld [vmem:[%s9156_s3 + $0xa8] sm:$0xff]  }
 0x4bf   : > { %v9567_v61 = vld [vmem:[#allocation3] sm:$0xff] }
 0x4c0   : > { %7032 = vmatprep.mubr.bf16.mxu0 %v9511_v0 }
 0x4c1   : > { %7033 = vmatmul.mubr.bf16.vlgmr.msra.gmra.mrb[16].mxu0 %v9505_v60 }
 0x4c2   : > { %v7006_v5 = vpop.f32.mrb[4].mxu1  ;;  %7049 = vmatpush3.bf16.msra.mxu0 %v8031_v48  ;;  %v9518_v6 = vpop.f32.mrb[4].mxu0 }
 0x4c3   : > { %v2887_v37 = vpop.f32.mrb[5].mxu1  ;;  %7050 = vmatprep.subr.bf16.mxu0 %v8032_v3  ;;  %v9521_v42 = vpop.f32.mrb[5].mxu0 }
 0x4c4   : > { %v7007_v9 = vpop.f32.mrb[6].mxu1  ;;  %v9523_v11 = vpop.f32.mrb[6].mxu0 }
 0x4c5   : > { %v9525_v12 = vpack.c.bf16 %v7007_v9, %v7006_v5  ;;  %v2890_v14 = vpop.f32.mrb[7].mxu1  ;;  %v2937_v16 = vpack.c.bf16 %v9523_v11, %v9518_v6  ;;  %v2785_v17 = vpop.f32.mrb[7].mxu0  ;;  %v9576_v5 = vld [vmem:[#allocation3 + $0x18] sm:$0xff]  ;;  %v9578_v6 = vld [vmem:[#allocation3 + $0x20] sm:$0xff]  ;;  %v9586_v9 = vld [vmem:[#allocation3 + $0x30] sm:$0xff] }
 0x4c6   : > { %v9529_v20 = vpack.c.bf16 %v2890_v14, %v2887_v37  ;;  %7051 = vmatpush3.bf16.msra.mxu0 %v8032_v3  ;;  %v2936_v22 = vpack.c.bf16 %v2785_v17, %v9521_v42  ;;  %v9574_v3 = vld [vmem:[#allocation3 + $0x10] sm:$0xff]  ;;  %v9580_v37 = vld [vmem:[#allocation3 + $0x28] sm:$0xff]  ;;  %v9588_v11 = vld [vmem:[#allocation3 + $0x38] sm:$0xff] }
 0x4c7   : > { %7052 = vmatprep.subr.bf16.mxu0 %v8033_v8  ;;  %v2952_v42 = vpack.c.bf16 %v9580_v37, %v9578_v6  ;;  %v9590_v14 = vld [vmem:[#allocation3 + $0x40] sm:$0xff]  ;;  %v2953_v17 = vpack.c.bf16 %v9588_v11, %v9586_v9 }
 0x4c8   : > { %7036 = vmatprep.mubr.bf16.mxu0 %v9529_v20 }
 0x4c9   : > { %7037 = vmatmul.mubr.bf16.gmra.mrb[20].mxu0 %v9525_v12 }
 0x4ca   : > { %v7010_v26 = vpop.f32.mrb[8].mxu1  ;;  %7053 = vmatpush3.bf16.msra.mxu0 %v8033_v8  ;;  %v6978_v28 = vpop.f32.mrb[8].mxu0  ;;  %v2951_v8 = vpack.c.bf16 %v9576_v5, %v9574_v3 }
 0x4cb   : > { %v2903_v52 = vpop.f32.mrb[9].mxu1  ;;  %7054 = vmatprep.subr.bf16.mxu0 %v8034_v23  ;;  %v2798_v29 = vpop.f32.mrb[9].mxu0 }
 0x4cc   : > { %v7011_v35 = vpop.f32.mrb[10].mxu1  ;;  %v6979_v30 = vpop.f32.mrb[10].mxu0 }
 0x4cd   : > { %v9536_v31 = vpack.c.bf16 %v7011_v35, %v7010_v26  ;;  %v2906_v32 = vpop.f32.mrb[11].mxu1  ;;  %v2939_v33 = vpack.c.bf16 %v6979_v30, %v6978_v28  ;;  %v2801_v34 = vpop.f32.mrb[11].mxu0  ;;  %v9600_v26 = vld [vmem:[#allocation3 + $0x58] sm:$0xff]  ;;  %v9602_v28 = vld [vmem:[#allocation3 + $0x60] sm:$0xff]  ;;  %v9610_v35 = vld [vmem:[#allocation3 + $0x70] sm:$0xff] }
 0x4ce   : > { %v9538_v36 = vpack.c.bf16 %v2906_v32, %v2903_v52  ;;  %7055 = vmatpush3.bf16.msra.mxu0 %v8034_v23  ;;  %v2938_v38 = vpack.c.bf16 %v2801_v34, %v2798_v29  ;;  %v9598_v23 = vld [vmem:[#allocation3 + $0x50] sm:$0xff]  ;;  %v9604_v52 = vld [vmem:[#allocation3 + $0x68] sm:$0xff]  ;;  %v9612_v30 = vld [vmem:[#allocation3 + $0x78] sm:$0xff] }
 0x4cf   : > { %7056 = vmatprep.subr.bf16.mxu0 %v8035_v19  ;;  %v2956_v29 = vpack.c.bf16 %v9604_v52, %v9602_v28  ;;  %v2957_v32 = vpack.c.bf16 %v9612_v30, %v9610_v35  ;;  %v8054_v34 = vld [vmem:[%s9159_s5 + $0x38] sm:$0xff]  }
 0x4d0   : > { %7040 = vmatprep.mubr.bf16.mxu0 %v9538_v36 }
 0x4d1   : > { %7041 = vmatmul.mubr.bf16.gmra.mrb[24].mxu0 %v9536_v31 }
 0x4d2   : > { %v7014_v40 = vpop.f32.mrb[12].mxu1  ;;  %7057 = vmatpush3.bf16.msra.mxu0 %v8035_v19  ;;  %v6982_v41 = vpop.f32.mrb[12].mxu0  ;;  %v2955_v19 = vpack.c.bf16 %v9600_v26, %v9598_v23 }
 0x4d3   : > { %v2919_v43 = vpop.f32.mrb[13].mxu1  ;;  %7058 = vmatprep.subr.bf16.mxu0 %v8036_v39  ;;  %v2814_v45 = vpop.f32.mrb[13].mxu0 }
 0x4d4   : > { %v7015_v46 = vpop.f32.mrb[14].mxu1  ;;  %v6983_v15 = vpop.f32.mrb[14].mxu0 }
 0x4d5   : > { %v9544_v47 = vpack.c.bf16 %v7015_v46, %v7014_v40  ;;  %v2922_v48 = vpop.f32.mrb[15].mxu1  ;;  %v2941_v49 = vpack.c.bf16 %v6983_v15, %v6982_v41  ;;  %v2817_v50 = vpop.f32.mrb[15].mxu0 }
 0x4d6   : > { %v9546_v51 = vpack.c.bf16 %v2922_v48, %v2919_v43  ;;  %7059 = vmatpush3.bf16.msra.mxu0 %v8036_v39  ;;  %v2940_v53 = vpack.c.bf16 %v2817_v50, %v2814_v45  ;;  %v9622_v39 = vld [vmem:[%s1443_s28] ss:$0 sm:$0xff] }
 0x4d7   : > { %7060 = vmatprep.subr.bf16.mxu0 %v8037_v44 }
 0x4d8   : > { %7044 = vmatprep.mubr.bf16.mxu0 %v9546_v51 }
 0x4d9   : > { %7045 = vmatmul.mubr.bf16.gmra.mrb[28].mxu0 %v9544_v47 }
 0x4da   : > { %7061 = vmatpush3.bf16.msra.mxu0 %v8037_v44  ;;  %7064 = vmatprep.mubr.bf16.mxu0 %v2934_v1  ;;  %v8046_v1 = vld [vmem:[%s9156_s3 + $0xb8] sm:$0xff]  }
 0x4db   : > { %7062 = vmatprep.subr.bf16.mxu0 %v8038_v54 }
 0x4de   : > { %7063 = vmatpush3.bf16.msra.mxu0 %v8038_v54 }
 0x4df   : > { %7080 = vmatprep.subr.bf16.mxu0 %v8039_v55 }
 0x4e1   : > { %7065 = vmatmul.mubr.bf16.vlgmr.msra.gmra.mrb[16].mxu0 %v2935_v62  ;;  %v9569_v62 = vld [vmem:[#allocation3 + $0x8] sm:$0xff] }
 0x4e2   : > { %7081 = vmatpush3.bf16.msra.mxu0 %v8039_v55  ;;  %7068 = vmatprep.mubr.bf16.mxu0 %v2936_v22  ;;  %v2950_v63 = vpack.c.bf16 %v9569_v62, %v9567_v61 }
 0x4e3   : > { %7082 = vmatprep.subr.bf16.mxu0 %v8040_v56 }
 0x4e6   : > { %7083 = vmatpush3.bf16.msra.mxu0 %v8040_v56 }
 0x4e7   : > { %7084 = vmatprep.subr.bf16.mxu0 %v8041_v27 }
 0x4e9   : > { %7069 = vmatmul.mubr.bf16.gmra.mrb[20].mxu0 %v2937_v16  ;;  %v9592_v16 = vld [vmem:[#allocation3 + $0x48] sm:$0xff] }
 0x4ea   : > { %7085 = vmatpush3.bf16.msra.mxu0 %v8041_v27  ;;  %7072 = vmatprep.mubr.bf16.mxu0 %v2938_v38  ;;  %v2954_v22 = vpack.c.bf16 %v9592_v16, %v9590_v14  ;;  %v8055_v38 = vld [vmem:[%s9137_s23 + $0x40] sm:$0xff]  }
 0x4eb   : > { %7086 = vmatprep.subr.bf16.mxu0 %v8042_v57 }
 0x4ee   : > { %7087 = vmatpush3.bf16.msra.mxu0 %v8042_v57 }
 0x4ef   : > { %7088 = vmatprep.subr.bf16.mxu0 %v8043_v58 }
 0x4f1   : > { %7073 = vmatmul.mubr.bf16.gmra.mrb[24].mxu0 %v2939_v33  ;;  %v8053_v33 = vld [vmem:[%s9159_s5 + $0x30] sm:$0xff]  }
 0x4f2   : > { %7089 = vmatpush3.bf16.msra.mxu0 %v8043_v58  ;;  %7076 = vmatprep.mubr.bf16.mxu0 %v2940_v53 }
 0x4f3   : > { %7090 = vmatprep.subr.bf16.mxu0 %v8044_v21  ;;  %7124 = vmatprep.subr.bf16.mxu1 %v8053_v33 }
 0x4f4   : > { %7125 = vmatpush3.bf16.msra.mxu1 %v8053_v33 }
 0x4f5   : > { %7126 = vmatprep.subr.bf16.mxu1 %v8054_v34 }
 0x4f6   : > { %7091 = vmatpush3.bf16.msra.mxu0 %v8044_v21  ;;  %v8056_v21 = vld [vmem:[%s9137_s23 + $0x48] sm:$0xff]  }
 0x4f7   : > { %7092 = vmatprep.subr.bf16.mxu0 %v8045_v59 }
 0x4f8   : > { %7127 = vmatpush3.bf16.msra.mxu1 %v8054_v34 }
 0x4f9   : > { %7077 = vmatmul.mubr.bf16.gmra.mrb[28].mxu0 %v2941_v49  ;;  %7144 = vmatprep.subr.bf16.mxu1 %v8055_v38 }
 0x4fa   : > { %7093 = vmatpush3.bf16.msra.mxu0 %v8045_v59  ;;  %7096 = vmatprep.mubr.bf16.mxu0 %v2950_v63 }
 0x4fb   : > { %7094 = vmatprep.subr.bf16.mxu0 %v8046_v1 }
 0x4fe   : > { %7095 = vmatpush3.bf16.msra.mxu0 %v8046_v1 }
 0x501   : > { %7097 = vmatmul.mubr.bf16.vlgmr.msra.gmra.mrb[16].mxu0 %v2951_v8 }
 0x502   : > { %7100 = vmatprep.mubr.bf16.mxu0 %v2952_v42 }
 0x509   : > { %7101 = vmatmul.mubr.bf16.gmra.mrb[20].mxu0 %v2953_v17 }
 0x50a   : > { %7104 = vmatprep.mubr.bf16.mxu0 %v2954_v22 }
 0x511   : > { %7105 = vmatmul.mubr.bf16.gmra.mrb[24].mxu0 %v2955_v19  ;;  %v8057_v19 = vld [vmem:[%s9137_s23 + $0x50] sm:$0xff]  }
 0x512   : > { %7108 = vmatprep.mubr.bf16.mxu0 %v2956_v29 }
 0x519   : > { %7109 = vmatmul.mubr.bf16.gmra.mrb[28].mxu0 %v2957_v32 }
 0x5d4   : > { %v7098_v40 = vpop.f32.mrb[16].mxu0 }
 0x5d5   : > { %v3466_v41 = vadd.f32 %v7098_v40, %v9622_v39  ;;  %v3378_v43 = vpop.f32.mrb[17].mxu0 }
 0x5d6   : > { %v3464_v44 = vadd.f32 %v9622_v39, %v3378_v43  ;;  %v7099_v45 = vpop.f32.mrb[18].mxu0 }
 0x5d7   : > { %v3467_v46 = vadd.f32 %v7099_v45, %v9622_v39  ;;  %v3381_v15 = vpop.f32.mrb[19].mxu0  ;;  %v3482_v49 = vmax.f32 %v3466_v41, 0.0 }
 0x5d8   : > { %v3465_v48 = vadd.f32 %v9622_v39, %v3381_v15  ;;  %v3480_v53 = vmax.f32 %v3464_v44, 0.0  ;;  %v8058_v44 = vld [vmem:[%s9137_s23 + $0x58] sm:$0xff]  }
 0x5d9   : > { %v3483_v50 = vmax.f32 %v3467_v46, 0.0 }
 0x5da   : > { %v3481_v54 = vmax.f32 %v3465_v48, 0.0 }
 0x5db   : > { %v3497_v55 = vpack.c.bf16 %v3483_v50, %v3482_v49 }
 0x5dc   : > { %v3496_v56 = vpack.c.bf16 %v3481_v54, %v3480_v53  ;;  %v7102_v27 = vpop.f32.mrb[20].mxu0  ;;  %v8059_v53 = vld [vmem:[%s9137_s23 + $0x60] sm:$0xff]  }
 0x5dd   : > { %v3470_v57 = vadd.f32 %v7102_v27, %v9622_v39  ;;  %v3394_v58 = vpop.f32.mrb[21].mxu0 }
 0x5de   : > { %v3468_v59 = vadd.f32 %v9622_v39, %v3394_v58  ;;  %v7103_v63 = vpop.f32.mrb[22].mxu0  ;;  %7128 = vmatprep.mubr.bf16.mxu1 %v3496_v56 }
 0x5df   : > { %v3471_v1 = vadd.f32 %v7103_v63, %v9622_v39  ;;  %v3397_v8 = vpop.f32.mrb[23].mxu0  ;;  %7129 = vmatmul.mubr.bf16.vlgmr.msra.gmra.mrb[16].mxu1 %v3497_v55  ;;  %v3486_v17 = vmax.f32 %v3470_v57, 0.0 }
 0x5e0   : > { %v3469_v42 = vadd.f32 %v9622_v39, %v3397_v8  ;;  %7145 = vmatpush3.bf16.msra.mxu1 %v8055_v38  ;;  %v3484_v29 = vmax.f32 %v3468_v59, 0.0  ;;  %v8060_v59 = vld [vmem:[%s9137_s23 + $0x68] sm:$0xff]  }
 0x5e1   : > { %v3487_v22 = vmax.f32 %v3471_v1, 0.0  ;;  %7146 = vmatprep.subr.bf16.mxu1 %v8056_v21 }
 0x5e2   : > { %v3485_v32 = vmax.f32 %v3469_v42, 0.0 }
 0x5e3   : > { %v3499_v33 = vpack.c.bf16 %v3487_v22, %v3486_v17 }
 0x5e4   : > { %v3498_v34 = vpack.c.bf16 %v3485_v32, %v3484_v29  ;;  %v7106_v40 = vpop.f32.mrb[24].mxu0  ;;  %7147 = vmatpush3.bf16.msra.mxu1 %v8056_v21 }
 0x5e5   : > { %v3474_v41 = vadd.f32 %v7106_v40, %v9622_v39  ;;  %v3410_v43 = vpop.f32.mrb[25].mxu0  ;;  %7148 = vmatprep.subr.bf16.mxu1 %v8057_v19  ;;  %v8061_v40 = vld [vmem:[%s9137_s23 + $0x70] sm:$0xff]  }
 0x5e6   : > { %v3472_v45 = vadd.f32 %v9622_v39, %v3410_v43  ;;  %v7107_v46 = vpop.f32.mrb[26].mxu0  ;;  %7132 = vmatprep.mubr.bf16.mxu1 %v3498_v34  ;;  %v8071_v43 = vld [vmem:[%s9173_s24] sm:$0xff]  }
 0x5e7   : > { %v3475_v38 = vadd.f32 %v7107_v46, %v9622_v39  ;;  %v3413_v15 = vpop.f32.mrb[27].mxu0  ;;  %7133 = vmatmul.mubr.bf16.gmra.mrb[20].mxu1 %v3499_v33  ;;  %v3490_v49 = vmax.f32 %v3474_v41, 0.0  ;;  %v8063_v41 = vld [vmem:[%s9137_s23] sm:$0xff]   ;;  %7208 = vmatprep.subr.bf16.mxu0 %v8071_v43  ;;  %v8074_v46 = vld [vmem:[%s9173_s24 + $0x18] sm:$0xff]  }
 0x5e8   : > { %v3473_v48 = vadd.f32 %v9622_v39, %v3413_v15  ;;  %7149 = vmatpush3.bf16.msra.mxu1 %v8057_v19  ;;  %v3488_v54 = vmax.f32 %v3472_v45, 0.0  ;;  %7209 = vmatpush3.bf16.msra.mxu0 %v8071_v43  ;;  %v8073_v45 = vld [vmem:[%s9173_s24 + $0x10] sm:$0xff]   ;;  %v8076_v15 = vld [vmem:[%s9173_s24 + $0x28] sm:$0xff]  }
 0x5e9   : > { %v3491_v50 = vmax.f32 %v3475_v38, 0.0  ;;  %7150 = vmatprep.subr.bf16.mxu1 %v8058_v44  ;;  %v8075_v38 = vld [vmem:[%s9173_s24 + $0x20] sm:$0xff]  }
 0x5ea   : > { %v3489_v55 = vmax.f32 %v3473_v48, 0.0  ;;  %v9657_v48 = vstv %s5392_s4 }
 0x5eb   : > { %v3501_v56 = vpack.c.bf16 %v3491_v50, %v3490_v49  ;;  %v9662_v49 = vld [vmem:[%s1451_s9] ss:$0 sm:$0xff]  ;;  %v5444_v50 = vmul.f32 %v9657_v48, %v9574_v3 }
 0x5ec   : > { %v3500_v27 = vpack.c.bf16 %v3489_v55, %v3488_v54  ;;  %v7110_v57 = vpop.f32.mrb[28].mxu0  ;;  %7151 = vmatpush3.bf16.msra.mxu1 %v8058_v44  ;;  %v8072_v44 = vld [vmem:[%s9173_s24 + $0x8] sm:$0xff]   ;;  %v5442_v54 = vmul.f32 %v9657_v48, %v9567_v61 }
 0x5ed   : > { %v3478_v58 = vadd.f32 %v7110_v57, %v9622_v39  ;;  %v3426_v21 = vpop.f32.mrb[29].mxu0  ;;  %7152 = vmatprep.subr.bf16.mxu1 %v8059_v53  ;;  %7210 = vmatprep.subr.bf16.mxu0 %v8072_v44 }
 0x5ee   : > { %v3476_v63 = vadd.f32 %v9622_v39, %v3426_v21  ;;  %v7111_v1 = vpop.f32.mrb[30].mxu0  ;;  %7136 = vmatprep.mubr.bf16.mxu1 %v3500_v27  ;;  %7211 = vmatpush3.bf16.msra.mxu0 %v8072_v44  ;;  %v5445_v27 = vmul.f32 %v9657_v48, %v9576_v5  ;;  %v5443_v21 = vmul.f32 %v9657_v48, %v9569_v62 }
 0x5ef   : > { %v3479_v8 = vadd.f32 %v7111_v1, %v9622_v39  ;;  %v3429_v42 = vpop.f32.mrb[31].mxu0  ;;  %7137 = vmatmul.mubr.bf16.gmra.mrb[24].mxu1 %v3501_v56  ;;  %v3494_v22 = vmax.f32 %v3478_v58, 0.0  ;;  %7212 = vmatprep.subr.bf16.mxu0 %v8073_v45 }
 0x5f0   : > { %v3477_v17 = vadd.f32 %v9622_v39, %v3429_v42  ;;  %7153 = vmatpush3.bf16.msra.mxu1 %v8059_v53  ;;  %v3492_v29 = vmax.f32 %v3476_v63, 0.0  ;;  %v8062_v39 = vld [vmem:[%s9137_s23 + $0x78] sm:$0xff]  }
 0x5f1   : > { %v3495_v19 = vmax.f32 %v3479_v8, 0.0  ;;  %7154 = vmatprep.subr.bf16.mxu1 %v8060_v59 }
 0x5f2   : > { %v3493_v32 = vmax.f32 %v3477_v17, 0.0  ;;  %7213 = vmatpush3.bf16.msra.mxu0 %v8073_v45 }
 0x5f3   : > { %v3503_v33 = vpack.c.bf16 %v3495_v19, %v3494_v22  ;;  %7214 = vmatprep.subr.bf16.mxu0 %v8074_v46  ;;  %v5448_v22 = vmul.f32 %v9657_v48, %v9586_v9  ;;  %v8064_v19 = vld [vmem:[%s9137_s23 + $0x8] sm:$0xff]   ;;  %v5447_v9 = vmul.f32 %v9657_v48, %v9580_v37  ;;  %v5452_v37 = vmul.f32 %v9657_v48, %v9598_v23 }
 0x5f4   : > { %v3502_v34 = vpack.c.bf16 %v3493_v32, %v3492_v29  ;;  %7155 = vmatpush3.bf16.msra.mxu1 %v8060_v59  ;;  %v5446_v29 = vmul.f32 %v9657_v48, %v9578_v6  ;;  %v8065_v6 = vld [vmem:[%s9137_s23 + $0x10] sm:$0xff]   ;;  %v5451_v23 = vmul.f32 %v9657_v48, %v9592_v16  ;;  %v5456_v16 = vmul.f32 %v9657_v48, %v9610_v35 }
 0x5f5   : > { %7156 = vmatprep.subr.bf16.mxu1 %v8061_v40  ;;  %v5455_v35 = vmul.f32 %v9657_v48, %v9604_v52  ;;  %v8070_v52 = vld [vmem:[%s9137_s23 + $0x38] sm:$0xff]  }
 0x5f6   : > { %7140 = vmatprep.mubr.bf16.mxu1 %v3502_v34  ;;  %7215 = vmatpush3.bf16.msra.mxu0 %v8074_v46  ;;  %v5449_v34 = vmul.f32 %v9657_v48, %v9588_v11 }
 0x5f7   : > { %7141 = vmatmul.mubr.bf16.gmra.mrb[28].mxu1 %v3503_v33  ;;  %7216 = vmatprep.subr.bf16.mxu0 %v8075_v38 }
 0x5f8   : > { %7157 = vmatpush3.bf16.msra.mxu1 %v8061_v40 }
 0x5f9   : > { %7158 = vmatprep.subr.bf16.mxu1 %v8062_v39 }
 0x5fa   : > { %7217 = vmatpush3.bf16.msra.mxu0 %v8075_v38 }
 0x5fb   : > { %7218 = vmatprep.subr.bf16.mxu0 %v8076_v15 }
 0x5fc   : > { %7159 = vmatpush3.bf16.msra.mxu1 %v8062_v39 }
 0x5fd   : > { %7176 = vmatprep.subr.bf16.mxu1 %v8063_v41 }
 0x5fe   : > { %7219 = vmatpush3.bf16.msra.mxu0 %v8076_v15 }
 0x6b2   : > { %v7130_v53 = vpop.f32.mrb[16].mxu1 }
 0x6b3   : > { %v3618_v55 = vadd.f32 %v7130_v53, %v9662_v49  ;;  %v3609_v56 = vpop.f32.mrb[17].mxu1 }
 0x6b4   : > { %v3610_v57 = vadd.f32 %v9662_v49, %v3609_v56  ;;  %v7131_v58 = vpop.f32.mrb[18].mxu1 }
 0x6b5   : > { %v5460_v59 = vadd.f32 %v5444_v50, %v3618_v55  ;;  %v3621_v3 = vadd.f32 %v7131_v58, %v9662_v49  ;;  %v3612_v63 = vpop.f32.mrb[19].mxu1 }
 0x6b6   : > { %v5458_v1 = vadd.f32 %v5442_v54, %v3610_v57  ;;  %v3613_v61 = vadd.f32 %v9662_v49, %v3612_v63 }
 0x6b7   : > { %5476 = vst [vmem:[#allocation3 + $0x10] sm:$0xff] %v5460_v59  ;;  %v3673_v8 = vpack.c.bf16 %v3621_v3, %v3618_v55  ;;  %v5461_v42 = vadd.f32 %v5445_v27, %v3621_v3  ;;  %v5450_v55 = vmul.f32 %v9657_v48, %v9590_v14  ;;  %v8067_v14 = vld [vmem:[%s9137_s23 + $0x20] sm:$0xff]  }
 0x6b8   : > { %5474 = vst [vmem:[#allocation3] sm:$0xff] %v5458_v1  ;;  %v3672_v17 = vpack.c.bf16 %v3613_v61, %v3610_v57  ;;  %v5459_v5 = vadd.f32 %v5443_v21, %v3613_v61  ;;  %v5453_v57 = vmul.f32 %v9657_v48, %v9600_v26 }
 0x6b9   : > { %5477 = vst [vmem:[#allocation3 + $0x18] sm:$0xff] %v5461_v42 }
 0x6ba   : > { %5475 = vst [vmem:[#allocation3 + $0x8] sm:$0xff] %v5459_v5  ;;  %v7134_v62 = vpop.f32.mrb[20].mxu1  ;;  %7160 = vmatprep.mubr.bf16.mxu1 %v3672_v17  ;;  %v8068_v5 = vld [vmem:[%s9137_s23 + $0x28] sm:$0xff]  }
 0x6bb   : > { %v3634_v32 = vadd.f32 %v7134_v62, %v9662_v49  ;;  %v3625_v33 = vpop.f32.mrb[21].mxu1  ;;  %7161 = vmatmul.mubr.bf16.vlgmr.msra.gmra.mrb[32].mxu1 %v3673_v8 }
 0x6bc   : > { %v3626_v40 = vadd.f32 %v9662_v49, %v3625_v33  ;;  %v7135_v39 = vpop.f32.mrb[22].mxu1  ;;  %7177 = vmatpush3.bf16.msra.mxu1 %v8063_v41  ;;  %v8066_v41 = vld [vmem:[%s9137_s23 + $0x18] sm:$0xff]  }
 0x6bd   : > { %v5464_v43 = vadd.f32 %v5448_v22, %v3634_v32  ;;  %v3637_v44 = vadd.f32 %v7135_v39, %v9662_v49  ;;  %v3628_v45 = vpop.f32.mrb[23].mxu1  ;;  %7178 = vmatprep.subr.bf16.mxu1 %v8064_v19 }
 0x6be   : > { %v5462_v46 = vadd.f32 %v5446_v29, %v3626_v40  ;;  %v3629_v38 = vadd.f32 %v9662_v49, %v3628_v45 }
 0x6bf   : > { %5480 = vst [vmem:[#allocation3 + $0x30] sm:$0xff] %v5464_v43  ;;  %v3675_v15 = vpack.c.bf16 %v3637_v44, %v3634_v32  ;;  %v5465_v11 = vadd.f32 %v5449_v34, %v3637_v44  ;;  %v5457_v32 = vmul.f32 %v9657_v48, %v9612_v30 }
 0x6c0   : > { %5478 = vst [vmem:[#allocation3 + $0x20] sm:$0xff] %v5462_v46  ;;  %v3674_v50 = vpack.c.bf16 %v3629_v38, %v3626_v40  ;;  %v5463_v53 = vadd.f32 %v5447_v9, %v3629_v38  ;;  %7179 = vmatpush3.bf16.msra.mxu1 %v8064_v19  ;;  %v5454_v19 = vmul.f32 %v9657_v48, %v9602_v28  ;;  %v8069_v28 = vld [vmem:[%s9137_s23 + $0x30] sm:$0xff]  }
 0x6c1   : > { %5481 = vst [vmem:[#allocation3 + $0x38] sm:$0xff] %v5465_v11  ;;  %7180 = vmatprep.subr.bf16.mxu1 %v8065_v6 }
 0x6c2   : > { %5479 = vst [vmem:[#allocation3 + $0x28] sm:$0xff] %v5463_v53  ;;  %v7138_v54 = vpop.f32.mrb[24].mxu1  ;;  %7164 = vmatprep.mubr.bf16.mxu1 %v3674_v50 }
 0x6c3   : > { %v3650_v56 = vadd.f32 %v7138_v54, %v9662_v49  ;;  %v3641_v27 = vpop.f32.mrb[25].mxu1  ;;  %7165 = vmatmul.mubr.bf16.gmra.mrb[36].mxu1 %v3675_v15 }
 0x6c4   : > { %v3642_v58 = vadd.f32 %v9662_v49, %v3641_v27  ;;  %v7139_v21 = vpop.f32.mrb[26].mxu1  ;;  %7181 = vmatpush3.bf16.msra.mxu1 %v8065_v6 }
 0x6c5   : > { %v5468_v59 = vadd.f32 %v5452_v37, %v3650_v56  ;;  %v3653_v3 = vadd.f32 %v7139_v21, %v9662_v49  ;;  %v3644_v63 = vpop.f32.mrb[27].mxu1  ;;  %7182 = vmatprep.subr.bf16.mxu1 %v8066_v41 }
 0x6c6   : > { %v5466_v1 = vadd.f32 %v5450_v55, %v3642_v58  ;;  %v3645_v61 = vadd.f32 %v9662_v49, %v3644_v63 }
 0x6c7   : > { %5484 = vst [vmem:[#allocation3 + $0x50] sm:$0xff] %v5468_v59  ;;  %v3677_v8 = vpack.c.bf16 %v3653_v3, %v3650_v56  ;;  %v5469_v26 = vadd.f32 %v5453_v57, %v3653_v3 }
 0x6c8   : > { %5482 = vst [vmem:[#allocation3 + $0x40] sm:$0xff] %v5466_v1  ;;  %v3676_v42 = vpack.c.bf16 %v3645_v61, %v3642_v58  ;;  %v5467_v17 = vadd.f32 %v5451_v23, %v3645_v61  ;;  %7183 = vmatpush3.bf16.msra.mxu1 %v8066_v41 }
 0x6c9   : > { %5485 = vst [vmem:[#allocation3 + $0x58] sm:$0xff] %v5469_v26  ;;  %7184 = vmatprep.subr.bf16.mxu1 %v8067_v14 }
 0x6ca   : > { %5483 = vst [vmem:[#allocation3 + $0x48] sm:$0xff] %v5467_v17  ;;  %v7142_v22 = vpop.f32.mrb[28].mxu1  ;;  %7168 = vmatprep.mubr.bf16.mxu1 %v3676_v42 }
 0x6cb   : > { %v3666_v62 = vadd.f32 %v7142_v22, %v9662_v49  ;;  %v3657_v29 = vpop.f32.mrb[29].mxu1  ;;  %7169 = vmatmul.mubr.bf16.gmra.mrb[40].mxu1 %v3677_v8 }
 0x6cc   : > { %v3658_v33 = vadd.f32 %v9662_v49, %v3657_v29  ;;  %v7143_v34 = vpop.f32.mrb[30].mxu1  ;;  %7185 = vmatpush3.bf16.msra.mxu1 %v8067_v14 }
 0x6cd   : > { %v5472_v40 = vadd.f32 %v5456_v16, %v3666_v62  ;;  %v3669_v39 = vadd.f32 %v7143_v34, %v9662_v49  ;;  %v3660_v9 = vpop.f32.mrb[31].mxu1  ;;  %7186 = vmatprep.subr.bf16.mxu1 %v8068_v5 }
 0x6ce   : > { %v5470_v43 = vadd.f32 %v5454_v19, %v3658_v33  ;;  %v3661_v44 = vadd.f32 %v9662_v49, %v3660_v9  ;;  %v8077_v49 = vld [vmem:[%s9173_s24 + $0x30] sm:$0xff]  }
 0x6cf   : > { %5488 = vst [vmem:[#allocation3 + $0x70] sm:$0xff] %v5472_v40  ;;  %v3679_v45 = vpack.c.bf16 %v3669_v39, %v3666_v62  ;;  %v5473_v30 = vadd.f32 %v5457_v32, %v3669_v39  ;;  %7220 = vmatprep.subr.bf16.mxu0 %v8077_v49 }
 0x6d0   : > { %5486 = vst [vmem:[#allocation3 + $0x60] sm:$0xff] %v5470_v43  ;;  %v3678_v6 = vpack.c.bf16 %v3661_v44, %v3658_v33  ;;  %v5471_v46 = vadd.f32 %v5455_v35, %v3661_v44  ;;  %7187 = vmatpush3.bf16.msra.mxu1 %v8068_v5  ;;  %7221 = vmatpush3.bf16.msra.mxu0 %v8077_v49 }
 0x6d1   : > { %5489 = vst [vmem:[#allocation3 + $0x78] sm:$0xff] %v5473_v30  ;;  %7188 = vmatprep.subr.bf16.mxu1 %v8069_v28 }
 0x6d2   : > { %5487 = vst [vmem:[#allocation3 + $0x68] sm:$0xff] %v5471_v46  ;;  %7172 = vmatprep.mubr.bf16.mxu1 %v3678_v6 }
 0x6d3   : > { %7173 = vmatmul.mubr.bf16.gmra.mrb[44].mxu1 %v3679_v45 }
 0x6d4   : > { %7189 = vmatpush3.bf16.msra.mxu1 %v8069_v28  ;;  %7192 = vmatprep.mubr.bf16.mxu1 %v9511_v0  ;;  %v8078_v0 = vld [vmem:[%s9173_s24 + $0x38] sm:$0xff]  }
 0x6d5   : > { %7190 = vmatprep.subr.bf16.mxu1 %v8070_v52  ;;  %7222 = vmatprep.subr.bf16.mxu0 %v8078_v0 }
 0x6d6   : > { %7223 = vmatpush3.bf16.msra.mxu0 %v8078_v0 }
 0x6d8   : > { %7191 = vmatpush3.bf16.msra.mxu1 %v8070_v52 }
 0x6db   : > { %7193 = vmatmul.mubr.bf16.vlgmr.msra.gmra.mrb[32].mxu1 %v9505_v60  ;;  %v6242_v60 = vld [vmem:[%s1454_s8] ss:$0 sm:$0xff] }
 0x6dc   : > { %7196 = vmatprep.mubr.bf16.mxu1 %v9529_v20 }
 0x6e3   : > { %7197 = vmatmul.mubr.bf16.gmra.mrb[36].mxu1 %v9525_v12 }
 0x6e4   : > { %7200 = vmatprep.mubr.bf16.mxu1 %v9538_v36 }
 0x6eb   : > { %7201 = vmatmul.mubr.bf16.gmra.mrb[40].mxu1 %v9536_v31 }
 0x6ec   : > { %7204 = vmatprep.mubr.bf16.mxu1 %v9546_v51 }
 0x6f3   : > { %7205 = vmatmul.mubr.bf16.gmra.mrb[44].mxu1 %v9544_v47 }
 0x7ae   : > { %v7194_v38 = vpop.f32.mrb[32].mxu1 }
 0x7af   : > { %v4011_v20 = vadd.f32 %v7194_v38, %v6242_v60  ;;  %v3939_v15 = vpop.f32.mrb[33].mxu1 }
 0x7b0   : > { %v4009_v12 = vadd.f32 %v6242_v60, %v3939_v15  ;;  %v7195_v11 = vpop.f32.mrb[34].mxu1  ;;  %v4217_v15 = vld [vmem:[#allocation6] sm:$0xff] }
 0x7b1   : > { %v4012_v36 = vadd.f32 %v7195_v11, %v6242_v60  ;;  %v3942_v50 = vpop.f32.mrb[35].mxu1  ;;  %v4027_v53 = vmax.f32 %v4011_v20, 0.0  ;;  %7256 = vmatprep.mubr.bf16.mxu1 %v4217_v15  ;;  %v4332_v11 = vld [vmem:[#allocation7 + $0x10] sm:$0xff] }
 0x7b2   : > { %v4010_v31 = vadd.f32 %v6242_v60, %v3942_v50  ;;  %v4025_v37 = vmax.f32 %v4009_v12, 0.0  ;;  %v4330_v12 = vld [vmem:[#allocation7] sm:$0xff]  ;;  %v4333_v50 = vld [vmem:[#allocation7 + $0x18] sm:$0xff] }
 0x7b3   : > { %v4028_v51 = vmax.f32 %v4012_v36, 0.0  ;;  %v8587_v36 = vmov 0  }
 0x7b4   : > { %v4026_v47 = vmax.f32 %v4010_v31, 0.0  ;;  %8021 = vset.pattern.permute.xlu0 %v8587_v36  ;;  %8022 = vset.pattern.permute.xlu1 %v8587_v36  ;;  %v8079_v31 = vld [vmem:[%s9175_s27 + $0x40] sm:$0xff]  }
 0x7b5   : > { %v4042_v41 = vpack.c.bf16 %v4028_v51, %v4027_v53  ;;  %4348 = vperm.xlu0 %8021, %v4330_v12   ;;  %4358 = vperm.xlu1 %8022, %v4332_v11   ;;  %v4334_v53 = vld [vmem:[#allocation7 + $0x20] sm:$0xff]  ;;  %v4335_v51 = vld [vmem:[#allocation7 + $0x28] sm:$0xff] }
 0x7b6   : > { %v4041_v54 = vpack.c.bf16 %v4026_v47, %v4025_v37  ;;  %v7198_v55 = vpop.f32.mrb[36].mxu1  ;;  %7272 = vmatprep.subr.bf16.mxu0 %v8079_v31  ;;  %v8080_v37 = vld [vmem:[%s9175_s27 + $0x48] sm:$0xff]   ;;  %v4336_v47 = vld [vmem:[#allocation7 + $0x30] sm:$0xff] }
 0x7b7   : > { %v4015_v56 = vadd.f32 %v7198_v55, %v6242_v60  ;;  %v3955_v27 = vpop.f32.mrb[37].mxu1  ;;  %v4338_v55 = vld [vmem:[#allocation7 + $0x40] sm:$0xff] }
 0x7b8   : > { %v4013_v57 = vadd.f32 %v6242_v60, %v3955_v27  ;;  %v7199_v58 = vpop.f32.mrb[38].mxu1  ;;  %7224 = vmatprep.mubr.bf16.mxu0 %v4041_v54  ;;  %v8081_v54 = vld [vmem:[%s9175_s27 + $0x50] sm:$0xff]   ;;  %v8082_v27 = vld [vmem:[%s9175_s27 + $0x58] sm:$0xff]  }
 0x7b9   : > { %v4016_v21 = vadd.f32 %v7199_v58, %v6242_v60  ;;  %v3958_v23 = vpop.f32.mrb[39].mxu1  ;;  %7225 = vmatmul.mubr.bf16.vlgmr.msra.gmra.mrb[32].mxu0 %v4042_v41  ;;  %v4031_v3 = vmax.f32 %v4015_v56, 0.0  ;;  %4363 = vperm.xlu1 %8022, %v4333_v50   ;;  %v4337_v41 = vld [vmem:[#allocation7 + $0x38] sm:$0xff]  ;;  %v4339_v56 = vld [vmem:[#allocation7 + $0x48] sm:$0xff] }
 0x7ba   : > { %v4014_v59 = vadd.f32 %v6242_v60, %v3958_v23  ;;  %v4029_v14 = vmax.f32 %v4013_v57, 0.0  ;;  %7273 = vmatpush3.bf16.msra.mxu0 %v8079_v31  ;;  %v4340_v57 = vld [vmem:[#allocation7 + $0x50] sm:$0xff]  ;;  %v4341_v58 = vld [vmem:[#allocation7 + $0x58] sm:$0xff]  ;;  %v4342_v23 = vld [vmem:[#allocation7 + $0x60] sm:$0xff] }
 0x7bb   : > { %v4032_v63 = vmax.f32 %v4016_v21, 0.0  ;;  %7274 = vmatprep.subr.bf16.mxu0 %v8080_v37  ;;  %v8083_v21 = vld [vmem:[%s9175_s27 + $0x60] sm:$0xff]  }
 0x7bc   : > { %v4030_v1 = vmax.f32 %v4014_v59, 0.0  ;;  %v4343_v59 = vld [vmem:[#allocation7 + $0x68] sm:$0xff] }
 0x7bd   : > { %v4044_v61 = vpack.c.bf16 %v4032_v63, %v4031_v3  ;;  %4373 = vperm.xlu1 %8022, %v4335_v51   ;;  %v8084_v3 = vld [vmem:[%s9175_s27 + $0x68] sm:$0xff]   ;;  %v4344_v63 = vld [vmem:[#allocation7 + $0x70] sm:$0xff] }
 0x7be   : > { %v4043_v8 = vpack.c.bf16 %v4030_v1, %v4029_v14  ;;  %v7202_v26 = vpop.f32.mrb[40].mxu1  ;;  %7275 = vmatpush3.bf16.msra.mxu0 %v8080_v37  ;;  %v4345_v14 = vld [vmem:[#allocation7 + $0x78] sm:$0xff] }
 0x7bf   : > { %v4019_v42 = vadd.f32 %v7202_v26, %v6242_v60  ;;  %v3971_v17 = vpop.f32.mrb[41].mxu1  ;;  %7276 = vmatprep.subr.bf16.mxu0 %v8081_v54 }
 0x7c0   : > { %v4017_v16 = vadd.f32 %v6242_v60, %v3971_v17  ;;  %v7203_v5 = vpop.f32.mrb[42].mxu1  ;;  %7228 = vmatprep.mubr.bf16.mxu0 %v4043_v8 }
 0x7c1   : > { %v4020_v22 = vadd.f32 %v7203_v5, %v6242_v60  ;;  %v3974_v19 = vpop.f32.mrb[43].mxu1  ;;  %7229 = vmatmul.mubr.bf16.gmra.mrb[36].mxu0 %v4044_v61  ;;  %v4035_v29 = vmax.f32 %v4019_v42, 0.0  ;;  %4383 = vperm.xlu1 %8022, %v4337_v41   ;;  %v6243_v61 = vld [vmem:[%s1457_s12] ss:$0 sm:$0xff]  ;;  %v4219_v41 = vld [vmem:[#allocation6 + $0x10] sm:$0xff]  ;;  %s10122_s12 = sld [smem:[#allocation46_spill]] (!%p6297_p12) }
 0x7c2   : > { %v4018_v62 = vadd.f32 %v6242_v60, %v3974_v19  ;;  %v4033_v33 = vmax.f32 %v4017_v16, 0.0  ;;  %7277 = vmatpush3.bf16.msra.mxu0 %v8081_v54  ;;  %v4220_v54 = vld [vmem:[#allocation6 + $0x18] sm:$0xff] }
 0x7c3   : > { %v4036_v32 = vmax.f32 %v4020_v22, 0.0  ;;  %7278 = vmatprep.subr.bf16.mxu0 %v8082_v27 }
 0x7c4   : > { %v4034_v34 = vmax.f32 %v4018_v62, 0.0 }
 0x7c5   : > { %v4046_v35 = vpack.c.bf16 %v4036_v32, %v4035_v29  ;;  %4393 = vperm.xlu1 %8022, %v4339_v56   ;;  %v4222_v56 = vld [vmem:[#allocation6 + $0x28] sm:$0xff] }
 0x7c6   : > { %v4045_v40 = vpack.c.bf16 %v4034_v34, %v4033_v33  ;;  %v7206_v39 = vpop.f32.mrb[44].mxu1  ;;  %7279 = vmatpush3.bf16.msra.mxu0 %v8082_v27  ;;  %v4223_v27 = vld [vmem:[#allocation6 + $0x30] sm:$0xff] }
 0x7c7   : > { %v4023_v9 = vadd.f32 %v7206_v39, %v6242_v60  ;;  %v3987_v28 = vpop.f32.mrb[45].mxu1  ;;  %7280 = vmatprep.subr.bf16.mxu0 %v8083_v21 }
 0x7c8   : > { %v4021_v43 = vadd.f32 %v6242_v60, %v3987_v28  ;;  %v7207_v44 = vpop.f32.mrb[46].mxu1  ;;  %7232 = vmatprep.mubr.bf16.mxu0 %v4045_v40 }
 0x7c9   : > { %v4024_v45 = vadd.f32 %v7207_v44, %v6242_v60  ;;  %v3990_v30 = vpop.f32.mrb[47].mxu1  ;;  %7233 = vmatmul.mubr.bf16.gmra.mrb[40].mxu0 %v4046_v35  ;;  %v4039_v46 = vmax.f32 %v4023_v9, 0.0  ;;  %4403 = vperm.xlu1 %8022, %v4341_v58   ;;  %v8085_v58 = vld [vmem:[%s9175_s27 + $0x70] sm:$0xff]  }
 0x7ca   : > { %v4022_v6 = vadd.f32 %v6242_v60, %v3990_v30  ;;  %v4037_v49 = vmax.f32 %v4021_v43, 0.0  ;;  %v4331_v60 = vld [vmem:[#allocation7 + $0x8] sm:$0xff]  ;;  %7281 = vmatpush3.bf16.msra.mxu0 %v8083_v21  ;;  %v8086_v21 = vld [vmem:[%s9175_s27 + $0x78] sm:$0xff]  }
 0x7cb   : > { %v4040_v52 = vmax.f32 %v4024_v45, 0.0  ;;  %4353 = vperm.xlu0 %8021, %v4331_v60   ;;  %7282 = vmatprep.subr.bf16.mxu0 %v8084_v3 }
 0x7cc   : > { %v4038_v0 = vmax.f32 %v4022_v6, 0.0 }
 0x7cd   : > { %v4048_v38 = vpack.c.bf16 %v4040_v52, %v4039_v46  ;;  %4413 = vperm.xlu1 %8022, %v4343_v59   ;;  %v8095_v59 = vld [vmem:[%s9177_s30] sm:$0xff]  }
 0x7ce   : > { %v4047_v20 = vpack.c.bf16 %v4038_v0, %v4037_v49  ;;  %7283 = vmatpush3.bf16.msra.mxu0 %v8084_v3  ;;  %v8096_v3 = vld [vmem:[%s9177_s30 + $0x8] sm:$0xff]  }
 0x7cf   : > { %4368 = vperm.xlu0 %8021, %v4334_v53   ;;  %7284 = vmatprep.subr.bf16.mxu0 %v8085_v58 }
 0x7d0   : > { %7236 = vmatprep.mubr.bf16.mxu0 %v4047_v20 }
 0x7d1   : > { %7237 = vmatmul.mubr.bf16.gmra.mrb[44].mxu0 %v4048_v38  ;;  %4423 = vperm.xlu1 %8022, %v4345_v14   ;;  %v8098_v14 = vld [vmem:[%s9177_s30 + $0x18] sm:$0xff]  }
 0x7d2   : > { %7285 = vmatpush3.bf16.msra.mxu0 %v8085_v58 }
 0x7d3   : > { %4378 = vperm.xlu0 %8021, %v4336_v47   ;;  %v4218_v47 = vld [vmem:[#allocation6 + $0x8] sm:$0xff]  ;;  %7286 = vmatprep.subr.bf16.mxu0 %v8086_v21 }
 0x7d6   : > { %7287 = vmatpush3.bf16.msra.mxu0 %v8086_v21 }
 0x7d7   : > { %4388 = vperm.xlu0 %8021, %v4338_v55   ;;  %v4221_v55 = vld [vmem:[#allocation6 + $0x20] sm:$0xff] }
 0x7db   : > { %4398 = vperm.xlu0 %8021, %v4340_v57   ;;  %v4224_v57 = vld [vmem:[#allocation6 + $0x38] sm:$0xff] }
 0x7df   : > { %4408 = vperm.xlu0 %8021, %v4342_v23   ;;  %v8087_v23 = vld [vmem:[%s9175_s27] sm:$0xff]  }
 0x7e0   : > { %7304 = vmatprep.subr.bf16.mxu0 %v8087_v23 }
 0x7e3   : > { %4418 = vperm.xlu0 %8021, %v4344_v63   ;;  %v8097_v63 = vld [vmem:[%s9177_s30 + $0x10] sm:$0xff]  }
 0x88c   : > { %v7226_v1 = vpop.f32.mrb[32].mxu0 }
 0x88d   : > { %v4154_v8 = vpop.f32.mrb[33].mxu0  ;;  %v4163_v42 = vadd.f32 %v7226_v1, %v6243_v61  ;;  %v8099_v1 = vld [vmem:[%s9177_s30 + $0x20] sm:$0xff]  }
 0x88e   : > { %v7227_v26 = vpop.f32.mrb[34].mxu0  ;;  %v4155_v5 = vadd.f32 %v6243_v61, %v4154_v8  ;;  %v4349_v8 = vpop.permute.xlu0 %4348 }
 0x88f   : > { %v4166_v17 = vadd.f32 %v7227_v26, %v6243_v61  ;;  %v4157_v16 = vpop.f32.mrb[35].mxu0  ;;  %v4359_v26 = vpop.permute.xlu1 %4358 }
 0x890   : > { %v4158_v22 = vadd.f32 %v6243_v61, %v4157_v16 }
 0x891   : > { %v4226_v19 = vpack.c.bf16 %v4166_v17, %v4163_v42 }
 0x892   : > { %v4225_v62 = vpack.c.bf16 %v4158_v22, %v4155_v5  ;;  %v4354_v42 = vpop.permute.xlu0 %4353 }
 0x893   : > { %v4364_v17 = vpop.permute.xlu1 %4363 }
 0x894   : > { %v7230_v29 = vpop.f32.mrb[36].mxu0  ;;  %7240 = vmatprep.subr.bf16.mxu1 %v4225_v62 }
 0x895   : > { %v4170_v32 = vpop.f32.mrb[37].mxu0  ;;  %7241 = vmatpush3.bf16.msra.mxu1 %v4225_v62  ;;  %v4179_v34 = vadd.f32 %v7230_v29, %v6243_v61 }
 0x896   : > { %v7231_v33 = vpop.f32.mrb[38].mxu0  ;;  %7242 = vmatprep.subr.bf16.mxu1 %v4226_v19  ;;  %v4171_v39 = vadd.f32 %v6243_v61, %v4170_v32  ;;  %v4369_v16 = vpop.permute.xlu0 %4368 }
 0x897   : > { %v4182_v35 = vadd.f32 %v7231_v33, %v6243_v61  ;;  %v4173_v40 = vpop.f32.mrb[39].mxu0  ;;  %v4374_v5 = vpop.permute.xlu1 %4373 }
 0x898   : > { %v4174_v9 = vadd.f32 %v6243_v61, %v4173_v40 }
 0x899   : > { %v4228_v28 = vpack.c.bf16 %v4182_v35, %v4179_v34  ;;  %7243 = vmatpush3.bf16.msra.mxu1 %v4226_v19 }
 0x89a   : > { %v4227_v43 = vpack.c.bf16 %v4174_v9, %v4171_v39  ;;  %v4379_v19 = vpop.permute.xlu0 %4378 }
 0x89b   : > { %v4384_v29 = vpop.permute.xlu1 %4383 }
 0x89c   : > { %v7234_v44 = vpop.f32.mrb[40].mxu0  ;;  %7244 = vmatprep.subr.bf16.mxu1 %v4227_v43 }
 0x89d   : > { %v4186_v45 = vpop.f32.mrb[41].mxu0  ;;  %7245 = vmatpush3.bf16.msra.mxu1 %v4227_v43  ;;  %v4195_v6 = vadd.f32 %v7234_v44, %v6243_v61  ;;  %v8088_v44 = vld [vmem:[%s9175_s27 + $0x8] sm:$0xff]  }
 0x89e   : > { %v7235_v30 = vpop.f32.mrb[42].mxu0  ;;  %7246 = vmatprep.subr.bf16.mxu1 %v4228_v28  ;;  %v4187_v49 = vadd.f32 %v6243_v61, %v4186_v45  ;;  %v4389_v43 = vpop.permute.xlu0 %4388 }
 0x89f   : > { %v4198_v46 = vadd.f32 %v7235_v30, %v6243_v61  ;;  %v4189_v52 = vpop.f32.mrb[43].mxu0  ;;  %v4394_v45 = vpop.permute.xlu1 %4393 }
 0x8a0   : > { %v4190_v0 = vadd.f32 %v6243_v61, %v4189_v52 }
 0x8a1   : > { %v4230_v38 = vpack.c.bf16 %v4198_v46, %v4195_v6  ;;  %7247 = vmatpush3.bf16.msra.mxu1 %v4228_v28 }
 0x8a2   : > { %v4229_v20 = vpack.c.bf16 %v4190_v0, %v4187_v49 }
 0x8a4   : > { %v7238_v15 = vpop.f32.mrb[44].mxu0  ;;  %7248 = vmatprep.subr.bf16.mxu1 %v4229_v20 }
 0x8a5   : > { %v4202_v12 = vpop.f32.mrb[45].mxu0  ;;  %7249 = vmatpush3.bf16.msra.mxu1 %v4229_v20  ;;  %v4211_v36 = vadd.f32 %v7238_v15, %v6243_v61 }
 0x8a6   : > { %v7239_v11 = vpop.f32.mrb[46].mxu0  ;;  %7250 = vmatprep.subr.bf16.mxu1 %v4230_v38  ;;  %v4203_v31 = vadd.f32 %v6243_v61, %v4202_v12  ;;  %v4399_v12 = vpop.permute.xlu0 %4398 }
 0x8a7   : > { %v4214_v60 = vadd.f32 %v7239_v11, %v6243_v61  ;;  %v4205_v50 = vpop.f32.mrb[47].mxu0 }
 0x8a8   : > { %v4206_v53 = vadd.f32 %v6243_v61, %v4205_v50  ;;  %v8100_v61 = vld [vmem:[%s9177_s30 + $0x28] sm:$0xff]   ;;  %v8090_v50 = vld [vmem:[%s9175_s27 + $0x18] sm:$0xff]  }
 0x8a9   : > { %v4232_v51 = vpack.c.bf16 %v4214_v60, %v4211_v36  ;;  %7251 = vmatpush3.bf16.msra.mxu1 %v4230_v38  ;;  %v8089_v38 = vld [vmem:[%s9175_s27 + $0x10] sm:$0xff]   ;;  %v4404_v36 = vpop.permute.xlu1 %4403 }
 0x8aa   : > { %v4231_v37 = vpack.c.bf16 %v4206_v53, %v4203_v31 }
 0x8ac   : > { %7252 = vmatprep.subr.bf16.mxu1 %v4231_v37 }
 0x8ad   : > { %7253 = vmatpush3.bf16.msra.mxu1 %v4231_v37  ;;  %v4409_v37 = vpop.permute.xlu0 %4408 }
 0x8ae   : > { %7254 = vmatprep.subr.bf16.mxu1 %v4232_v51 }
 0x8b1   : > { %7255 = vmatpush3.bf16.msra.mxu1 %v4232_v51 }
 0x8b2   : > { %7336 = vmatprep.subr.bf16.mxu1 %v8095_v59 }
 0x8b4   : > { %7257 = vmatmul.mubr.bf16.vlgmr.msra.gmra.mrb[48].mxu1 %v4218_v47 }
 0x8b5   : > { %7260 = vmatprep.mubr.bf16.mxu1 %v4219_v41  ;;  %7337 = vmatpush3.bf16.msra.mxu1 %v8095_v59 }
 0x8b6   : > { %7338 = vmatprep.subr.bf16.mxu1 %v8096_v3 }
 0x8b9   : > { %7339 = vmatpush3.bf16.msra.mxu1 %v8096_v3  ;;  %v4419_v3 = vpop.permute.xlu0 %4418 }
 0x8ba   : > { %7340 = vmatprep.subr.bf16.mxu1 %v8097_v63 }
 0x8bc   : > { %7261 = vmatmul.mubr.bf16.gmra.mrb[52].mxu1 %v4220_v54 }
 0x8bd   : > { %7264 = vmatprep.mubr.bf16.mxu1 %v4221_v55  ;;  %7341 = vmatpush3.bf16.msra.mxu1 %v8097_v63  ;;  %v8091_v55 = vld [vmem:[%s9175_s27 + $0x20] sm:$0xff]  }
 0x8be   : > { %7342 = vmatprep.subr.bf16.mxu1 %v8098_v14 }
 0x8c1   : > { %7343 = vmatpush3.bf16.msra.mxu1 %v8098_v14 }
 0x8c2   : > { %7344 = vmatprep.subr.bf16.mxu1 %v8099_v1 }
 0x8c4   : > { %7265 = vmatmul.mubr.bf16.gmra.mrb[56].mxu1 %v4222_v56  ;;  %v4414_v56 = vpop.permute.xlu1 %4413 }
 0x8c5   : > { %7268 = vmatprep.mubr.bf16.mxu1 %v4223_v27  ;;  %7345 = vmatpush3.bf16.msra.mxu1 %v8099_v1 }
 0x8c6   : > { %7346 = vmatprep.subr.bf16.mxu1 %v8100_v61 }
 0x8c8   : > { %v4424_v14 = vpop.permute.xlu1 %4423 }
 0x8c9   : > { %7347 = vmatpush3.bf16.msra.mxu1 %v8100_v61 }
 0x8cc   : > { %7269 = vmatmul.mubr.bf16.gmra.mrb[60].mxu1 %v4224_v57 }
 0x987   : > { %v7258_v22 = vpop.f32.mrb[48].mxu1 }
 0x988   : > { %v4267_v62 = vpop.f32.mrb[49].mxu1  ;;  %v4428_v33 = vmul.f32 %v7258_v22, %v4359_v26 }
 0x989   : > { %v7259_v32 = vpop.f32.mrb[50].mxu1  ;;  %v4426_v40 = vmul.f32 %v4349_v8, %v4267_v62  ;;  %v8102_v62 = vld [vmem:[%s9177_s30 + $0x38] sm:$0xff]  }
 0x98a   : > { %v4429_v34 = vmul.f32 %v7259_v32, %v4364_v17  ;;  %v4270_v35 = vpop.f32.mrb[51].mxu1 }
 0x98b   : > { %v4427_v39 = vmul.f32 %v4354_v42, %v4270_v35  ;;  %v8093_v42 = vld [vmem:[%s9175_s27 + $0x30] sm:$0xff]  }
 0x98c   : > { %v4459_v9 = vpack.c.bf16 %v4429_v34, %v4428_v33 }
 0x98d   : > { %v4458_v28 = vpack.c.bf16 %v4427_v39, %v4426_v40 }
 0x98f   : > { %v7262_v30 = vpop.f32.mrb[52].mxu1  ;;  %7288 = vmatprep.mubr.bf16.mxu0 %v4458_v28 }
 0x990   : > { %v4283_v6 = vpop.f32.mrb[53].mxu1  ;;  %7289 = vmatmul.mubr.bf16.vlgmr.msra.gmra.mrb[48].mxu0 %v4459_v9  ;;  %v4432_v52 = vmul.f32 %v7262_v30, %v4379_v19  ;;  %v8094_v19 = vld [vmem:[%s9175_s27 + $0x38] sm:$0xff]   ;;  %v8104_v30 = vld [vmem:[%s9179_s18 + $0x8] sm:$0xff]  }
 0x991   : > { %v7263_v46 = vpop.f32.mrb[54].mxu1  ;;  %7305 = vmatpush3.bf16.msra.mxu0 %v8087_v23  ;;  %v4430_v20 = vmul.f32 %v4369_v16, %v4283_v6  ;;  %v8092_v23 = vld [vmem:[%s9175_s27 + $0x28] sm:$0xff]   ;;  %s10123_s27 = sld [smem:[#allocation63_spill]] (!%p6297_p12) }
 0x992   : > { %v4433_v49 = vmul.f32 %v7263_v46, %v4384_v29  ;;  %v4286_v0 = vpop.f32.mrb[55].mxu1  ;;  %7306 = vmatprep.subr.bf16.mxu0 %v8088_v44  ;;  %v8103_v29 = vld [vmem:[%s9179_s18] sm:$0xff]  }
 0x993   : > { %v4431_v15 = vmul.f32 %v4374_v5, %v4286_v0 }
 0x994   : > { %v4461_v11 = vpack.c.bf16 %v4433_v49, %v4432_v52 }
 0x995   : > { %v4460_v60 = vpack.c.bf16 %v4431_v15, %v4430_v20  ;;  %7307 = vmatpush3.bf16.msra.mxu0 %v8088_v44  ;;  %v8105_v15 = vld [vmem:[%s9179_s18 + $0x10] sm:$0xff]  }
 0x996   : > { %7308 = vmatprep.subr.bf16.mxu0 %v8089_v38 }
 0x997   : > { %v7266_v31 = vpop.f32.mrb[56].mxu1  ;;  %7292 = vmatprep.mubr.bf16.mxu0 %v4460_v60 }
 0x998   : > { %v4299_v53 = vpop.f32.mrb[57].mxu1  ;;  %7293 = vmatmul.mubr.bf16.gmra.mrb[52].mxu0 %v4461_v11  ;;  %v4436_v47 = vmul.f32 %v7266_v31, %v4399_v12 }
 0x999   : > { %v7267_v51 = vpop.f32.mrb[58].mxu1  ;;  %7309 = vmatpush3.bf16.msra.mxu0 %v8089_v38  ;;  %v4434_v27 = vmul.f32 %v4389_v43, %v4299_v53 }
 0x99a   : > { %v4437_v41 = vmul.f32 %v7267_v51, %v4404_v36  ;;  %v4302_v54 = vpop.f32.mrb[59].mxu1  ;;  %7310 = vmatprep.subr.bf16.mxu0 %v8090_v50  ;;  %v8106_v51 = vld [vmem:[%s9179_s18 + $0x18] sm:$0xff]  }
 0x99b   : > { %v4435_v57 = vmul.f32 %v4394_v45, %v4302_v54 }
 0x99c   : > { %v4463_v58 = vpack.c.bf16 %v4437_v41, %v4436_v47 }
 0x99d   : > { %v4462_v21 = vpack.c.bf16 %v4435_v57, %v4434_v27  ;;  %7311 = vmatpush3.bf16.msra.mxu0 %v8090_v50  ;;  %v8107_v57 = vld [vmem:[%s9179_s18 + $0x20] sm:$0xff]  }
 0x99e   : > { %7312 = vmatprep.subr.bf16.mxu0 %v8091_v55 }
 0x99f   : > { %v7270_v59 = vpop.f32.mrb[60].mxu1  ;;  %7296 = vmatprep.mubr.bf16.mxu0 %v4462_v21 }
 0x9a0   : > { %v4315_v63 = vpop.f32.mrb[61].mxu1  ;;  %7297 = vmatmul.mubr.bf16.gmra.mrb[56].mxu0 %v4463_v58  ;;  %v4440_v61 = vmul.f32 %v7270_v59, %v4419_v3 }
 0x9a1   : > { %v7271_v1 = vpop.f32.mrb[62].mxu1  ;;  %7313 = vmatpush3.bf16.msra.mxu0 %v8091_v55  ;;  %v4438_v17 = vmul.f32 %v4409_v37, %v4315_v63 }
 0x9a2   : > { %v4441_v8 = vmul.f32 %v7271_v1, %v4424_v14  ;;  %v4318_v26 = vpop.f32.mrb[63].mxu1  ;;  %7314 = vmatprep.subr.bf16.mxu0 %v8092_v23  ;;  %v8108_v1 = vld [vmem:[%s9179_s18 + $0x28] sm:$0xff]  }
 0x9a3   : > { %v4439_v16 = vmul.f32 %v4414_v56, %v4318_v26 }
 0x9a4   : > { %v4465_v5 = vpack.c.bf16 %v4441_v8, %v4440_v61 }
 0x9a5   : > { %v4464_v22 = vpack.c.bf16 %v4439_v16, %v4438_v17  ;;  %7315 = vmatpush3.bf16.msra.mxu0 %v8092_v23 }
 0x9a6   : > { %7316 = vmatprep.subr.bf16.mxu0 %v8093_v42 }
 0x9a7   : > { %7300 = vmatprep.mubr.bf16.mxu0 %v4464_v22 }
 0x9a8   : > { %7301 = vmatmul.mubr.bf16.gmra.mrb[60].mxu0 %v4465_v5 }
 0x9a9   : > { %7317 = vmatpush3.bf16.msra.mxu0 %v8093_v42  ;;  %7320 = vmatprep.mubr.bf16.mxu0 %v9436_v2  ;;  %v8101_v2 = vld [vmem:[%s9177_s30 + $0x30] sm:$0xff]   ;;  %s10121_s30 = sld [smem:[#allocation44_spill]] (!%p6297_p12) }
 0x9aa   : > { %7318 = vmatprep.subr.bf16.mxu0 %v8094_v19  ;;  %7348 = vmatprep.subr.bf16.mxu1 %v8101_v2 }
 0x9ab   : > { %7349 = vmatpush3.bf16.msra.mxu1 %v8101_v2 }
 0x9ac   : > { %7350 = vmatprep.subr.bf16.mxu1 %v8102_v62 }
 0x9ad   : > { %7319 = vmatpush3.bf16.msra.mxu0 %v8094_v19 }
 0x9af   : > { %7351 = vmatpush3.bf16.msra.mxu1 %v8102_v62 }
 0x9b0   : > { %7321 = vmatmul.mubr.bf16.vlgmr.msra.gmra.mrb[48].mxu0 %v9438_v4  ;;  %7368 = vmatprep.subr.bf16.mxu1 %v8103_v29  ;;  %v9771_v4 = vld [vmem:[%s1460_s13] ss:$0 sm:$0xff] }
 0x9b1   : > { %7324 = vmatprep.mubr.bf16.mxu0 %v9445_v7 }
 0x9b8   : > { %7325 = vmatmul.mubr.bf16.gmra.mrb[52].mxu0 %v9451_v10 }
 0x9b9   : > { %7328 = vmatprep.mubr.bf16.mxu0 %v9457_v13 }
 0x9c0   : > { %7329 = vmatmul.mubr.bf16.gmra.mrb[56].mxu0 %v9463_v18 }
 0x9c1   : > { %7332 = vmatprep.mubr.bf16.mxu0 %v9469_v24 }
 0x9c8   : > { %7333 = vmatmul.mubr.bf16.gmra.mrb[60].mxu0 %v9475_v25 }
 0xa83   : > { %v7322_v7 = vpop.f32.mrb[48].mxu0 }
 0xa84   : > { %v4781_v10 = vadd.f32 %v7322_v7, %v9771_v4  ;;  %v4709_v13 = vpop.f32.mrb[49].mxu0  ;;  %v8111_v7 = vld [vmem:[%s9181_s0] sm:$0xff]  }
 0xa85   : > { %v4779_v18 = vadd.f32 %v9771_v4, %v4709_v13  ;;  %v7323_v24 = vpop.f32.mrb[50].mxu0  ;;  %7400 = vmatprep.subr.bf16.mxu0 %v8111_v7  ;;  %v8113_v13 = vld [vmem:[%s9181_s0 + $0x10] sm:$0xff]  }
 0xa86   : > { %v4782_v25 = vadd.f32 %v7323_v24, %v9771_v4  ;;  %v4712_v32 = vpop.f32.mrb[51].mxu0  ;;  %v4797_v34 = vmax.f32 %v4781_v10, 0.0  ;;  %v8112_v10 = vld [vmem:[%s9181_s0 + $0x8] sm:$0xff]   ;;  %7401 = vmatpush3.bf16.msra.mxu0 %v8111_v7  ;;  %v8115_v24 = vld [vmem:[%s9181_s0 + $0x20] sm:$0xff]  }
 0xa87   : > { %v4780_v33 = vadd.f32 %v9771_v4, %v4712_v32  ;;  %v4795_v40 = vmax.f32 %v4779_v18, 0.0  ;;  %7402 = vmatprep.subr.bf16.mxu0 %v8112_v10  ;;  %v8114_v18 = vld [vmem:[%s9181_s0 + $0x18] sm:$0xff]  }
 0xa88   : > { %v4798_v35 = vmax.f32 %v4782_v25, 0.0  ;;  %v8116_v25 = vld [vmem:[%s9181_s0 + $0x28] sm:$0xff]  }
 0xa89   : > { %v4796_v39 = vmax.f32 %v4780_v33, 0.0  ;;  %v6269_v33 = vld [vmem:[%s1463_s17] ss:$0 sm:$0xff] }
 0xa8a   : > { %v4812_v9 = vpack.c.bf16 %v4798_v35, %v4797_v34  ;;  %7403 = vmatpush3.bf16.msra.mxu0 %v8112_v10 }
 0xa8b   : > { %v4811_v28 = vpack.c.bf16 %v4796_v39, %v4795_v40  ;;  %v7326_v43 = vpop.f32.mrb[52].mxu0  ;;  %7404 = vmatprep.subr.bf16.mxu0 %v8113_v13 }
 0xa8c   : > { %v4785_v44 = vadd.f32 %v7326_v43, %v9771_v4  ;;  %v4725_v45 = vpop.f32.mrb[53].mxu0 }
 0xa8d   : > { %v4783_v6 = vadd.f32 %v9771_v4, %v4725_v45  ;;  %v7327_v46 = vpop.f32.mrb[54].mxu0  ;;  %7352 = vmatprep.mubr.bf16.mxu1 %v4811_v28 }
 0xa8e   : > { %v4786_v52 = vadd.f32 %v7327_v46, %v9771_v4  ;;  %v4728_v49 = vpop.f32.mrb[55].mxu0  ;;  %7353 = vmatmul.mubr.bf16.vlgmr.msra.gmra.mrb[64].mxu1 %v4812_v9  ;;  %v4801_v38 = vmax.f32 %v4785_v44, 0.0  ;;  %7405 = vmatpush3.bf16.msra.mxu0 %v8113_v13 }
 0xa8f   : > { %v4784_v0 = vadd.f32 %v9771_v4, %v4728_v49  ;;  %7369 = vmatpush3.bf16.msra.mxu1 %v8103_v29  ;;  %v4799_v12 = vmax.f32 %v4783_v6, 0.0  ;;  %v8109_v29 = vld [vmem:[%s9179_s18 + $0x30] sm:$0xff]   ;;  %7406 = vmatprep.subr.bf16.mxu0 %v8114_v18 }
 0xa90   : > { %v4802_v20 = vmax.f32 %v4786_v52, 0.0  ;;  %7370 = vmatprep.subr.bf16.mxu1 %v8104_v30 }
 0xa91   : > { %v4800_v11 = vmax.f32 %v4784_v0, 0.0 }
 0xa92   : > { %v4814_v36 = vpack.c.bf16 %v4802_v20, %v4801_v38  ;;  %7407 = vmatpush3.bf16.msra.mxu0 %v8114_v18 }
 0xa93   : > { %v4813_v60 = vpack.c.bf16 %v4800_v11, %v4799_v12  ;;  %v7330_v50 = vpop.f32.mrb[56].mxu0  ;;  %7371 = vmatpush3.bf16.msra.mxu1 %v8104_v30  ;;  %7408 = vmatprep.subr.bf16.mxu0 %v8115_v24 }
 0xa94   : > { %v4789_v31 = vadd.f32 %v7330_v50, %v9771_v4  ;;  %v4741_v53 = vpop.f32.mrb[57].mxu0  ;;  %7372 = vmatprep.subr.bf16.mxu1 %v8105_v15 }
 0xa95   : > { %v4787_v37 = vadd.f32 %v9771_v4, %v4741_v53  ;;  %v7331_v47 = vpop.f32.mrb[58].mxu0  ;;  %7356 = vmatprep.mubr.bf16.mxu1 %v4813_v60 }
 0xa96   : > { %v4790_v41 = vadd.f32 %v7331_v47, %v9771_v4  ;;  %v4744_v54 = vpop.f32.mrb[59].mxu0  ;;  %7357 = vmatmul.mubr.bf16.gmra.mrb[68].mxu1 %v4814_v36  ;;  %v4805_v56 = vmax.f32 %v4789_v31, 0.0  ;;  %7409 = vmatpush3.bf16.msra.mxu0 %v8115_v24 }
 0xa97   : > { %v4788_v55 = vadd.f32 %v9771_v4, %v4744_v54  ;;  %7373 = vmatpush3.bf16.msra.mxu1 %v8105_v15  ;;  %v4803_v58 = vmax.f32 %v4787_v37, 0.0  ;;  %7410 = vmatprep.subr.bf16.mxu0 %v8116_v25 }
 0xa98   : > { %v4806_v27 = vmax.f32 %v4790_v41, 0.0  ;;  %7374 = vmatprep.subr.bf16.mxu1 %v8106_v51 }
 0xa99   : > { %v4804_v21 = vmax.f32 %v4788_v55, 0.0 }
 0xa9a   : > { %v4816_v23 = vpack.c.bf16 %v4806_v27, %v4805_v56  ;;  %7411 = vmatpush3.bf16.msra.mxu0 %v8116_v25 }
 0xa9b   : > { %v4815_v59 = vpack.c.bf16 %v4804_v21, %v4803_v58  ;;  %v7334_v3 = vpop.f32.mrb[60].mxu0  ;;  %7375 = vmatpush3.bf16.msra.mxu1 %v8106_v51 }
 0xa9c   : > { %v4793_v63 = vadd.f32 %v7334_v3, %v9771_v4  ;;  %v4757_v14 = vpop.f32.mrb[61].mxu0  ;;  %7376 = vmatprep.subr.bf16.mxu1 %v8107_v57 }
 0xa9d   : > { %v4791_v61 = vadd.f32 %v9771_v4, %v4757_v14  ;;  %v7335_v8 = vpop.f32.mrb[62].mxu0  ;;  %7360 = vmatprep.mubr.bf16.mxu1 %v4815_v59  ;;  %v8118_v14 = vld [vmem:[%s9181_s0 + $0x38] sm:$0xff]  }
 0xa9e   : > { %v4794_v26 = vadd.f32 %v7335_v8, %v9771_v4  ;;  %v4760_v42 = vpop.f32.mrb[63].mxu0  ;;  %7361 = vmatmul.mubr.bf16.gmra.mrb[72].mxu1 %v4816_v23  ;;  %v4809_v16 = vmax.f32 %v4793_v63, 0.0  ;;  %v8117_v63 = vld [vmem:[%s9181_s0 + $0x30] sm:$0xff]  }
 0xa9f   : > { %v4792_v17 = vadd.f32 %v9771_v4, %v4760_v42  ;;  %7377 = vmatpush3.bf16.msra.mxu1 %v8107_v57  ;;  %v4807_v22 = vmax.f32 %v4791_v61, 0.0  ;;  %v8110_v4 = vld [vmem:[%s9179_s18 + $0x38] sm:$0xff]   ;;  %7412 = vmatprep.subr.bf16.mxu0 %v8117_v63 }
 0xaa0   : > { %v4810_v5 = vmax.f32 %v4794_v26, 0.0  ;;  %7378 = vmatprep.subr.bf16.mxu1 %v8108_v1  ;;  %7413 = vmatpush3.bf16.msra.mxu0 %v8117_v63 }
 0xaa1   : > { %v4808_v19 = vmax.f32 %v4792_v17, 0.0  ;;  %7414 = vmatprep.subr.bf16.mxu0 %v8118_v14 }
 0xaa2   : > { %v4818_v2 = vpack.c.bf16 %v4810_v5, %v4809_v16 }
 0xaa3   : > { %v4817_v62 = vpack.c.bf16 %v4808_v19, %v4807_v22  ;;  %7379 = vmatpush3.bf16.msra.mxu1 %v8108_v1  ;;  %v6278_v1 = vld [vmem:[%s1466_s19] ss:$0 sm:$0xff] }
 0xaa4   : > { %7380 = vmatprep.subr.bf16.mxu1 %v8109_v29  ;;  %7415 = vmatpush3.bf16.msra.mxu0 %v8118_v14 }
 0xaa5   : > { %7364 = vmatprep.mubr.bf16.mxu1 %v4817_v62 }
 0xaa6   : > { %7365 = vmatmul.mubr.bf16.gmra.mrb[76].mxu1 %v4818_v2 }
 0xaa7   : > { %7381 = vmatpush3.bf16.msra.mxu1 %v8109_v29 }
 0xaa8   : > { %7382 = vmatprep.subr.bf16.mxu1 %v8110_v4 }
 0xaab   : > { %7383 = vmatpush3.bf16.msra.mxu1 %v8110_v4 }
 0xaac   : > { %7737 = vmatprep.subr.bf16.mxu1 %v8111_v7 }
 0xb61   : > { %v7354_v32 = vpop.f32.mrb[64].mxu1 }
 0xb62   : > { %v4924_v34 = vpop.f32.mrb[65].mxu1  ;;  %v9811_v43 = vadd.f32 %v7354_v32, %v6269_v33 }
 0xb63   : > { %v7355_v35 = vpop.f32.mrb[66].mxu1  ;;  %v9807_v9 = vadd.f32 %v6269_v33, %v4924_v34 }
 0xb64   : > { %v9805_v40 = vadd.f32 %v7355_v35, %v6269_v33  ;;  %v4927_v39 = vpop.f32.mrb[67].mxu1 }
 0xb65   : > { %v9809_v28 = vadd.f32 %v6269_v33, %v4927_v39 }
 0xb66   : > { %v4988_v45 = vpack.c.bf16 %v9805_v40, %v9811_v43 }
 0xb67   : > { %v4987_v44 = vpack.c.bf16 %v9809_v28, %v9807_v9 }
 0xb69   : > { %v7358_v30 = vpop.f32.mrb[68].mxu1  ;;  %7384 = vmatprep.mubr.bf16.mxu1 %v4987_v44 }
 0xb6a   : > { %v4940_v6 = vpop.f32.mrb[69].mxu1  ;;  %7385 = vmatmul.mubr.bf16.vlgmr.msra.gmra.mrb[80].mxu1 %v4988_v45  ;;  %v9823_v20 = vadd.f32 %v7358_v30, %v6269_v33 }
 0xb6b   : > { %v7359_v46 = vpop.f32.mrb[70].mxu1  ;;  %7745 = vmatpush3.bf16.msra.mxu1 %v8111_v7  ;;  %v9819_v0 = vadd.f32 %v6269_v33, %v4940_v6 }
 0xb6c   : > { %v9817_v52 = vadd.f32 %v7359_v46, %v6269_v33  ;;  %v4943_v49 = vpop.f32.mrb[71].mxu1  ;;  %7738 = vmatprep.subr.bf16.mxu1 %v8112_v10 }
 0xb6d   : > { %v9821_v38 = vadd.f32 %v6269_v33, %v4943_v49 }
 0xb6e   : > { %v4990_v12 = vpack.c.bf16 %v9817_v52, %v9823_v20 }
 0xb6f   : > { %v4989_v15 = vpack.c.bf16 %v9821_v38, %v9819_v0  ;;  %7746 = vmatpush3.bf16.msra.mxu1 %v8112_v10 }
 0xb70   : > { %7739 = vmatprep.subr.bf16.mxu1 %v8113_v13 }
 0xb71   : > { %v7362_v11 = vpop.f32.mrb[72].mxu1  ;;  %7388 = vmatprep.mubr.bf16.mxu1 %v4989_v15 }
 0xb72   : > { %v4956_v36 = vpop.f32.mrb[73].mxu1  ;;  %7389 = vmatmul.mubr.bf16.gmra.mrb[84].mxu1 %v4990_v12  ;;  %v9835_v37 = vadd.f32 %v7362_v11, %v6269_v33 }
 0xb73   : > { %v7363_v60 = vpop.f32.mrb[74].mxu1  ;;  %7747 = vmatpush3.bf16.msra.mxu1 %v8113_v13  ;;  %v9831_v53 = vadd.f32 %v6269_v33, %v4956_v36 }
 0xb74   : > { %v9829_v50 = vadd.f32 %v7363_v60, %v6269_v33  ;;  %v4959_v31 = vpop.f32.mrb[75].mxu1  ;;  %7740 = vmatprep.subr.bf16.mxu1 %v8114_v18 }
 0xb75   : > { %v9833_v51 = vadd.f32 %v6269_v33, %v4959_v31 }
 0xb76   : > { %v4992_v41 = vpack.c.bf16 %v9829_v50, %v9835_v37 }
 0xb77   : > { %v4991_v47 = vpack.c.bf16 %v9833_v51, %v9831_v53  ;;  %7748 = vmatpush3.bf16.msra.mxu1 %v8114_v18 }
 0xb78   : > { %7741 = vmatprep.subr.bf16.mxu1 %v8115_v24 }
 0xb79   : > { %v7366_v54 = vpop.f32.mrb[76].mxu1  ;;  %7392 = vmatprep.mubr.bf16.mxu1 %v4991_v47 }
 0xb7a   : > { %v4972_v55 = vpop.f32.mrb[77].mxu1  ;;  %7393 = vmatmul.mubr.bf16.gmra.mrb[88].mxu1 %v4992_v41  ;;  %v9847_v23 = vadd.f32 %v7366_v54, %v6269_v33 }
 0xb7b   : > { %v7367_v56 = vpop.f32.mrb[78].mxu1  ;;  %7749 = vmatpush3.bf16.msra.mxu1 %v8115_v24  ;;  %v9843_v58 = vadd.f32 %v6269_v33, %v4972_v55 }
 0xb7c   : > { %v9841_v27 = vadd.f32 %v7367_v56, %v6269_v33  ;;  %v4975_v57 = vpop.f32.mrb[79].mxu1  ;;  %7742 = vmatprep.subr.bf16.mxu1 %v8116_v25 }
 0xb7d   : > { %v9845_v21 = vadd.f32 %v6269_v33, %v4975_v57 }
 0xb7e   : > { %v4994_v3 = vpack.c.bf16 %v9841_v27, %v9847_v23 }
 0xb7f   : > { %v4993_v59 = vpack.c.bf16 %v9845_v21, %v9843_v58  ;;  %7750 = vmatpush3.bf16.msra.mxu1 %v8116_v25 }
 0xb80   : > { %7743 = vmatprep.subr.bf16.mxu1 %v8117_v63 }
 0xb81   : > { %7396 = vmatprep.mubr.bf16.mxu1 %v4993_v59 }
 0xb82   : > { %7397 = vmatmul.mubr.bf16.gmra.mrb[92].mxu1 %v4994_v3 }
 0xb83   : > { %7751 = vmatpush3.bf16.msra.mxu1 %v8117_v63 }
 0xb84   : > { %7744 = vmatprep.subr.bf16.mxu1 %v8118_v14 }
 0xb87   : > { %7752 = vmatpush3.bf16.msra.mxu1 %v8118_v14 }
 0xc3d   : > { %v7386_v61 = vpop.f32.mrb[80].mxu1 }
 0xc3e   : > { %v5109_v8 = vadd.f32 %v7386_v61, %v6278_v1  ;;  %v5100_v26 = vpop.f32.mrb[81].mxu1 }
 0xc3f   : > { %v5101_v42 = vadd.f32 %v6278_v1, %v5100_v26  ;;  %v7387_v17 = vpop.f32.mrb[82].mxu1 }
 0xc40   : > { %v5112_v16 = vadd.f32 %v7387_v17, %v6278_v1  ;;  %v5103_v5 = vpop.f32.mrb[83].mxu1  ;;  %v5165_v19 = vmax.f32 %v5109_v8, 0.0 }
 0xc41   : > { %v5104_v22 = vadd.f32 %v6278_v1, %v5103_v5  ;;  %v5163_v62 = vmax.f32 %v5101_v42, 0.0 }
 0xc42   : > { %v5166_v2 = vmax.f32 %v5112_v16, 0.0 }
 0xc43   : > { %v5164_v29 = vmax.f32 %v5104_v22, 0.0 }
 0xc44   : > { %v5180_v4 = vpack.c.bf16 %v5166_v2, %v5165_v19 }
 0xc45   : > { %v5179_v7 = vpack.c.bf16 %v5164_v29, %v5163_v62  ;;  %v7390_v10 = vpop.f32.mrb[84].mxu1  ;;  %v9861_v29 = vld [vmem:[%s1469_s21] ss:$0 sm:$0xff]  ;;  %s10120_s21 = sld [smem:[#allocation34_spill]] (!%p6297_p12) }
 0xc46   : > { %v5125_v13 = vadd.f32 %v7390_v10, %v6278_v1  ;;  %v5116_v18 = vpop.f32.mrb[85].mxu1 }
 0xc47   : > { %v5117_v24 = vadd.f32 %v6278_v1, %v5116_v18  ;;  %v7391_v25 = vpop.f32.mrb[86].mxu1  ;;  %7416 = vmatprep.mubr.bf16.mxu0 %v5179_v7  ;;  %v8119_v7 = vld [vmem:[#allocation2 + $0x10] sm:$0xff]  ;;  %v8120_v18 = vld [vmem:[#allocation2] sm:$0xff] }
 0xc48   : > { %v5128_v32 = vadd.f32 %v7391_v25, %v6278_v1  ;;  %v5119_v33 = vpop.f32.mrb[87].mxu1  ;;  %7417 = vmatmul.mubr.bf16.vlgmr.msra.gmra.mrb[64].mxu0 %v5180_v4  ;;  %v5169_v35 = vmax.f32 %v5125_v13, 0.0  ;;  %v5396_v10 = vmul.f32 %v8119_v7, %v9657_v48 }
 0xc49   : > { %v5120_v34 = vadd.f32 %v6278_v1, %v5119_v33  ;;  %v5167_v44 = vmax.f32 %v5117_v24, 0.0  ;;  %v5394_v24 = vmul.f32 %v8120_v18, %v9657_v48 }
 0xc4a   : > { %v5170_v39 = vmax.f32 %v5128_v32, 0.0 }
 0xc4b   : > { %v5168_v45 = vmax.f32 %v5120_v34, 0.0  ;;  %v8121_v34 = vld [vmem:[#allocation2 + $0x18] sm:$0xff] }
 0xc4c   : > { %v5182_v30 = vpack.c.bf16 %v5170_v39, %v5169_v35  ;;  %v5397_v35 = vmul.f32 %v8121_v34, %v9657_v48 }
 0xc4d   : > { %v5181_v6 = vpack.c.bf16 %v5168_v45, %v5167_v44  ;;  %v7394_v46 = vpop.f32.mrb[88].mxu1  ;;  %v8122_v45 = vld [vmem:[#allocation2 + $0x8] sm:$0xff] }
 0xc4e   : > { %v5141_v49 = vadd.f32 %v7394_v46, %v6278_v1  ;;  %v5132_v15 = vpop.f32.mrb[89].mxu1 }
 0xc4f   : > { %v5133_v12 = vadd.f32 %v6278_v1, %v5132_v15  ;;  %v7395_v11 = vpop.f32.mrb[90].mxu1  ;;  %7420 = vmatprep.mubr.bf16.mxu0 %v5181_v6 }
 0xc50   : > { %v5144_v36 = vadd.f32 %v7395_v11, %v6278_v1  ;;  %v5135_v60 = vpop.f32.mrb[91].mxu1  ;;  %7421 = vmatmul.mubr.bf16.gmra.mrb[68].mxu0 %v5182_v30  ;;  %v5173_v47 = vmax.f32 %v5141_v49, 0.0  ;;  %v5395_v30 = vmul.f32 %v8122_v45, %v9657_v48 }
 0xc51   : > { %v5136_v31 = vadd.f32 %v6278_v1, %v5135_v60  ;;  %v5171_v54 = vmax.f32 %v5133_v12, 0.0 }
 0xc52   : > { %v5174_v41 = vmax.f32 %v5144_v36, 0.0  ;;  %v8123_v36 = vld [vmem:[#allocation2 + $0x30] sm:$0xff] }
 0xc53   : > { %v5172_v55 = vmax.f32 %v5136_v31, 0.0 }
 0xc54   : > { %v5184_v56 = vpack.c.bf16 %v5174_v41, %v5173_v47  ;;  %v8124_v47 = vld [vmem:[#allocation2 + $0x20] sm:$0xff] }
 0xc55   : > { %v5183_v57 = vpack.c.bf16 %v5172_v55, %v5171_v54  ;;  %v7398_v59 = vpop.f32.mrb[92].mxu1  ;;  %v5398_v41 = vmul.f32 %v8124_v47, %v9657_v48 }
 0xc56   : > { %v5157_v3 = vadd.f32 %v7398_v59, %v6278_v1  ;;  %v5148_v63 = vpop.f32.mrb[93].mxu1 }
 0xc57   : > { %v5149_v14 = vadd.f32 %v6278_v1, %v5148_v63  ;;  %v7399_v61 = vpop.f32.mrb[94].mxu1  ;;  %7424 = vmatprep.mubr.bf16.mxu1 %v5183_v57  ;;  %v8125_v57 = vld [vmem:[#allocation2 + $0x38] sm:$0xff] }
 0xc58   : > { %v5160_v8 = vadd.f32 %v7399_v61, %v6278_v1  ;;  %v5151_v26 = vpop.f32.mrb[95].mxu1  ;;  %7425 = vmatmul.mubr.bf16.vlgmr.msra.gmra.mrb[96].mxu1 %v5184_v56  ;;  %v5177_v17 = vmax.f32 %v5157_v3, 0.0  ;;  %v5401_v59 = vmul.f32 %v8125_v57, %v9657_v48 }
 0xc59   : > { %v5152_v42 = vadd.f32 %v6278_v1, %v5151_v26  ;;  %v5175_v5 = vmax.f32 %v5149_v14, 0.0  ;;  %v8126_v14 = vld [vmem:[#allocation2 + $0x28] sm:$0xff] }
 0xc5a   : > { %v5178_v16 = vmax.f32 %v5160_v8, 0.0  ;;  %v5399_v61 = vmul.f32 %v8126_v14, %v9657_v48 }
 0xc5b   : > { %v5176_v22 = vmax.f32 %v5152_v42, 0.0 }
 0xc5c   : > { %v5186_v19 = vpack.c.bf16 %v5178_v16, %v5177_v17 }
 0xc5d   : > { %v5185_v2 = vpack.c.bf16 %v5176_v22, %v5175_v5  ;;  %v8127_v22 = vld [vmem:[#allocation2 + $0x50] sm:$0xff] }
 0xc5f   : > { %7428 = vmatprep.mubr.bf16.mxu1 %v5185_v2 }
 0xc60   : > { %7429 = vmatmul.mubr.bf16.gmra.mrb[100].mxu1 %v5186_v19 }
 0xd1b   : > { %v7418_v62 = vpop.f32.mrb[64].mxu0 }
 0xd1c   : > { %v5350_v4 = vadd.f32 %v7418_v62, %v9811_v43  ;;  %v5285_v13 = vpop.f32.mrb[65].mxu0  ;;  %v8128_v62 = vld [vmem:[#allocation2 + $0x40] sm:$0xff] }
 0xd1d   : > { %v5348_v1 = vadd.f32 %v5285_v13, %v9807_v9  ;;  %v7419_v25 = vpop.f32.mrb[66].mxu0 }
 0xd1e   : > { %v5373_v32 = vadd.f32 %v9861_v29, %v5350_v4  ;;  %v5351_v33 = vadd.f32 %v7419_v25, %v9805_v40  ;;  %v5288_v39 = vpop.f32.mrb[67].mxu0  ;;  %v5402_v4 = vmul.f32 %v8128_v62, %v9657_v48 }
 0xd1f   : > { %v5371_v43 = vadd.f32 %v9861_v29, %v5348_v1  ;;  %v5349_v44 = vadd.f32 %v5288_v39, %v9809_v28  ;;  %v5400_v28 = vmul.f32 %v8123_v36, %v9657_v48  ;;  %v8129_v1 = vld [vmem:[#allocation2 + $0x58] sm:$0xff] }
 0xd20   : > { %v5412_v9 = vadd.f32 %v5396_v10, %v5373_v32  ;;  %v5374_v6 = vadd.f32 %v9861_v29, %v5351_v33  ;;  %v5405_v18 = vmul.f32 %v8129_v1, %v9657_v48  ;;  %v8130_v32 = vld [vmem:[#allocation2 + $0x48] sm:$0xff] }
 0xd21   : > { %v5410_v46 = vadd.f32 %v5394_v24, %v5371_v43  ;;  %v5372_v49 = vadd.f32 %v9861_v29, %v5349_v44  ;;  %v5403_v33 = vmul.f32 %v8130_v32, %v9657_v48  ;;  %v5590_v32 = vld [vmem:[#allocation15 + $0x48] sm:$0xff] (!%p6297_p12) }
 0xd22   : > { %5428 = vst [vmem:[#allocation2 + $0x10] sm:$0xff] %v5412_v9  ;;  %v5413_v15 = vadd.f32 %v5397_v35, %v5374_v6 }
 0xd23   : > { %5426 = vst [vmem:[#allocation2] sm:$0xff] %v5410_v46  ;;  %v5411_v40 = vadd.f32 %v5395_v30, %v5372_v49  ;;  %v7422_v12 = vpop.f32.mrb[68].mxu0  ;;  %v8131_v30 = vld [vmem:[#allocation2 + $0x70] sm:$0xff]  ;;  %v8132_v46 = vld [vmem:[#allocation2 + $0x60] sm:$0xff] }
 0xd24   : > { %5429 = vst [vmem:[#allocation2 + $0x18] sm:$0xff] %v5413_v15  ;;  %v5354_v11 = vadd.f32 %v7422_v12, %v9823_v20  ;;  %v5301_v60 = vpop.f32.mrb[69].mxu0  ;;  %v5406_v49 = vmul.f32 %v8132_v46, %v9657_v48 }
 0xd25   : > { %5427 = vst [vmem:[#allocation2 + $0x8] sm:$0xff] %v5411_v40  ;;  %v5352_v31 = vadd.f32 %v5301_v60, %v9819_v0  ;;  %v7423_v54 = vpop.f32.mrb[70].mxu0 }
 0xd26   : > { %v5377_v55 = vadd.f32 %v9861_v29, %v5354_v11  ;;  %v5355_v56 = vadd.f32 %v7423_v54, %v9817_v52  ;;  %v5304_v3 = vpop.f32.mrb[71].mxu0  ;;  %v8133_v11 = vld [vmem:[#allocation2 + $0x78] sm:$0xff] }
 0xd27   : > { %v5375_v20 = vadd.f32 %v9861_v29, %v5352_v31  ;;  %v5353_v63 = vadd.f32 %v5304_v3, %v9821_v38  ;;  %v5404_v38 = vmul.f32 %v8127_v22, %v9657_v48  ;;  %v5409_v36 = vmul.f32 %v8133_v11, %v9657_v48  ;;  %v8134_v31 = vld [vmem:[#allocation2 + $0x68] sm:$0xff]  ;;  %v5675_v11 = vld [vmem:[#allocation16] sm:$0xff] (!%p6297_p12) }
 0xd28   : > { %v5416_v0 = vadd.f32 %v5400_v28, %v5377_v55  ;;  %v5378_v8 = vadd.f32 %v9861_v29, %v5355_v56  ;;  %v5407_v47 = vmul.f32 %v8134_v31, %v9657_v48  ;;  %v8588_v3 = vmov (!%p6297_p12), 0.0|0.0  }
 0xd29   : > { %v5414_v26 = vadd.f32 %v5398_v41, %v5375_v20  ;;  %v5376_v42 = vadd.f32 %v9861_v29, %v5353_v63  ;;  %7665 = vmatprep.subr.bf16.mxu0 (!%p6297_p12), %v8588_v3  ;;  %v8590_v63 = vmov (!%p6297_p12), 0.0   ;;  %7689 = vmatprep.subr.bf16.mxu1 (!%p6297_p12), %v8588_v3 }
 0xd2a   : > { %5432 = vst [vmem:[#allocation2 + $0x30] sm:$0xff] %v5416_v0  ;;  %v5417_v17 = vadd.f32 %v5401_v59, %v5378_v8  ;;  %v5495_v57 = vld [vmem:[#allocation2] sm:$0xff] (!%p6297_p12)  ;;  %v5497_v59 = vld [vmem:[#allocation2 + $0x10] sm:$0xff] (!%p6297_p12)  ;;  %7464 = vmatprep.mubr.msk.f32.mxu0 (!%p6297_p12), %vm8589_vm1, %v8590_v63  ;;  %7499 = vmatprep.mubr.msk.f32.mxu1 (!%p6297_p12), %vm8589_vm1, %v8590_v63  ;;  %v5582_v8 = vld [vmem:[#allocation15 + $0x8] sm:$0xff] (!%p6297_p12) }
 0xd2b   : > { %5430 = vst [vmem:[#allocation2 + $0x20] sm:$0xff] %v5414_v26  ;;  %v5415_v52 = vadd.f32 %v5399_v61, %v5376_v42  ;;  %v7426_v16 = vpop.f32.mrb[96].mxu1  ;;  %v5498_v20 = vld [vmem:[#allocation2 + $0x18] sm:$0xff] (!%p6297_p12)  ;;  %v5581_v0 = vld [vmem:[#allocation15] sm:$0xff] (!%p6297_p12)  ;;  %v5583_v26 = vld [vmem:[#allocation15 + $0x10] sm:$0xff] (!%p6297_p12) }
 0xd2c   : > { %5433 = vst [vmem:[#allocation2 + $0x38] sm:$0xff] %v5417_v17  ;;  %v5358_v5 = vadd.f32 %v7426_v16, %v9835_v37  ;;  %v5317_v19 = vpop.f32.mrb[97].mxu1  ;;  %v5584_v42 = vld [vmem:[#allocation15 + $0x18] sm:$0xff] (!%p6297_p12) }
 0xd2d   : > { %5431 = vst [vmem:[#allocation2 + $0x28] sm:$0xff] %v5415_v52  ;;  %v5356_v2 = vadd.f32 %v5317_v19, %v9831_v53  ;;  %v7427_v7 = vpop.f32.mrb[98].mxu1  ;;  %v7690_v52 = vpack.c.bf16 (!%p6297_p12), %v5582_v8, %v5581_v0  ;;  %v7693_v22 = vpack.c.bf16 (!%p6297_p12), %v5584_v42, %v5583_v26  ;;  %v5586_v19 = vld [vmem:[#allocation15 + $0x28] sm:$0xff] (!%p6297_p12)  ;;  %v5689_v8 = vld [vmem:[#allocation16 + $0x70] sm:$0xff] (!%p6297_p12)  ;;  %v5690_v26 = vld [vmem:[#allocation16 + $0x78] sm:$0xff] (!%p6297_p12) }
 0xd2e   : > { %v5381_v10 = vadd.f32 %v9861_v29, %v5358_v5  ;;  %v5359_v13 = vadd.f32 %v7427_v7, %v9829_v50  ;;  %v5320_v24 = vpop.f32.mrb[99].mxu1  ;;  %v7735_v42 = vpack.c.bf16 (!%p6297_p12), %v5690_v26, %v5689_v8 }
 0xd2f   : > { %v5379_v37 = vadd.f32 %v9861_v29, %v5356_v2  ;;  %v5357_v25 = vadd.f32 %v5320_v24, %v9833_v51  ;;  %v5408_v51 = vmul.f32 %v8131_v30, %v9657_v48  ;;  %7691 = vmatpush3.bf16.msra.mxu1 (!%p6297_p12), %v7690_v52 }
 0xd30   : > { %v5420_v53 = vadd.f32 %v5404_v38, %v5381_v10  ;;  %v5382_v34 = vadd.f32 %v9861_v29, %v5359_v13  ;;  %7692 = vmatprep.subr.bf16.mxu1 (!%p6297_p12), %v8588_v3  ;;  %v5585_v38 = vld [vmem:[#allocation15 + $0x20] sm:$0xff] (!%p6297_p12)  ;;  %v5587_v10 = vld [vmem:[#allocation15 + $0x30] sm:$0xff] (!%p6297_p12)  ;;  %v5588_v13 = vld [vmem:[#allocation15 + $0x38] sm:$0xff] (!%p6297_p12) }
 0xd31   : > { %v5418_v35 = vadd.f32 %v5402_v4, %v5379_v37  ;;  %v5380_v39 = vadd.f32 %v9861_v29, %v5357_v25  ;;  %v5501_v16 = vld [vmem:[#allocation2 + $0x30] sm:$0xff] (!%p6297_p12)  ;;  %v7696_v7 = vpack.c.bf16 (!%p6297_p12), %v5586_v19, %v5585_v38  ;;  %v7699_v37 = vpack.c.bf16 (!%p6297_p12), %v5588_v13, %v5587_v10  ;;  %v5589_v25 = vld [vmem:[#allocation15 + $0x40] sm:$0xff] (!%p6297_p12) }
 0xd32   : > { %5436 = vst [vmem:[#allocation2 + $0x50] sm:$0xff] %v5420_v53  ;;  %v5421_v43 = vadd.f32 %v5405_v18, %v5382_v34  ;;  %v5499_v14 = vld [vmem:[#allocation2 + $0x20] sm:$0xff] (!%p6297_p12) }
 0xd33   : > { %5434 = vst [vmem:[#allocation2 + $0x40] sm:$0xff] %v5418_v35  ;;  %v5419_v50 = vadd.f32 %v5403_v33, %v5380_v39  ;;  %v7430_v44 = vpop.f32.mrb[100].mxu1  ;;  %v5502_v5 = vld [vmem:[#allocation2 + $0x38] sm:$0xff] (!%p6297_p12)  ;;  %7694 = vmatpush3.bf16.msra.mxu1 (!%p6297_p12), %v7693_v22  ;;  %v7702_v35 = vpack.c.bf16 (!%p6297_p12), %v5590_v32, %v5589_v25  ;;  %v5591_v39 = vld [vmem:[#allocation15 + $0x50] sm:$0xff] (!%p6297_p12)  ;;  %v6299_v38 = vld [vmem:[%s10122_s12] ss:$0 sm:$0xff] (!%p6297_p12) }
 0xd34   : > { %5437 = vst [vmem:[#allocation2 + $0x58] sm:$0xff] %v5421_v43  ;;  %v5362_v45 = vadd.f32 %v7430_v44, %v9847_v23  ;;  %v5333_v9 = vpop.f32.mrb[101].mxu1  ;;  %v5500_v61 = vld [vmem:[#allocation2 + $0x28] sm:$0xff] (!%p6297_p12)  ;;  %v7675_v2 = vpack.c.bf16 (!%p6297_p12), %v5502_v5, %v5501_v16  ;;  %7695 = vmatprep.subr.bf16.mxu1 (!%p6297_p12), %v8588_v3  ;;  %v5592_v43 = vld [vmem:[#allocation15 + $0x58] sm:$0xff] (!%p6297_p12) }
 0xd35   : > { %5435 = vst [vmem:[#allocation2 + $0x48] sm:$0xff] %v5419_v50  ;;  %v5360_v6 = vadd.f32 %v5333_v9, %v9843_v58  ;;  %v7431_v15 = vpop.f32.mrb[102].mxu1  ;;  %v7672_v17 = vpack.c.bf16 (!%p6297_p12), %v5500_v61, %v5499_v14  ;;  %v7705_v30 = vpack.c.bf16 (!%p6297_p12), %v5592_v43, %v5591_v39  ;;  %v5594_v9 = vld [vmem:[#allocation15 + $0x68] sm:$0xff] (!%p6297_p12) }
 0xd36   : > { %v5385_v40 = vadd.f32 %v9861_v29, %v5362_v45  ;;  %v5363_v12 = vadd.f32 %v7431_v15, %v9841_v27  ;;  %v5336_v28 = vpop.f32.mrb[103].mxu1  ;;  %v5596_v15 = vld [vmem:[#allocation15 + $0x78] sm:$0xff] (!%p6297_p12) }
 0xd37   : > { %v5383_v23 = vadd.f32 %v9861_v29, %v5360_v6  ;;  %v5361_v60 = vadd.f32 %v5336_v28, %v9845_v21  ;;  %5493 = sbr.rel (%p6297_p12) target bundleno = 4060 (0xfdc), region = 212  ;;  %v5496_v21 = vld [vmem:[#allocation2 + $0x8] sm:$0xff] (!%p6297_p12)  ;;  %7697 = vmatpush3.bf16.msra.mxu1 (!%p6297_p12), %v7696_v7  ;;  %v5677_v28 = vld [vmem:[#allocation16 + $0x10] sm:$0xff] (!%p6297_p12) }
 0xd38   : > { %v5424_v58 = vadd.f32 %v5408_v51, %v5385_v40  ;;  %v5386_v41 = vadd.f32 %v9861_v29, %v5363_v12  ;;  %v7666_v48 = vpack.c.bf16 (!%p6297_p12), %v5496_v21, %v5495_v57  ;;  %7698 = vmatprep.subr.bf16.mxu1 (!%p6297_p12), %v8588_v3  ;;  %v5593_v51 = vld [vmem:[#allocation15 + $0x60] sm:$0xff] (!%p6297_p12)  ;;  %v5684_v57 = vld [vmem:[#allocation16 + $0x48] sm:$0xff] (!%p6297_p12) }
 0xd39   : > { %v5422_v54 = vadd.f32 %v5406_v49, %v5383_v23  ;;  %v5384_v55 = vadd.f32 %v9861_v29, %v5361_v60  ;;  %v7669_v29 = vpack.c.bf16 (!%p6297_p12), %v5498_v20, %v5497_v59  ;;  %v5505_v18 = vld [vmem:[#allocation2 + $0x50] sm:$0xff] (!%p6297_p12)  ;;  %v7708_v46 = vpack.c.bf16 (!%p6297_p12), %v5594_v9, %v5593_v51  ;;  %v5494_v40 = vld [vmem:[%s10120_s21] sm:$0xff] (!%p6297_p12)  ;;  %v5678_v60 = vld [vmem:[#allocation16 + $0x18] sm:$0xff] (!%p6297_p12) }
 0xd3a   : > { %5440 = vst [vmem:[#allocation2 + $0x70] sm:$0xff] %v5424_v58  ;;  %v5425_v56 = vadd.f32 %v5409_v36, %v5386_v41  ;;  %7667 = vmatpush3.bf16.msra.mxu0 (!%p6297_p12), %v7666_v48  ;;  %v5503_v62 = vld [vmem:[#allocation2 + $0x40] sm:$0xff] (!%p6297_p12)  ;;  %v5595_v49 = vld [vmem:[#allocation15 + $0x70] sm:$0xff] (!%p6297_p12)  ;;  %v5676_v36 = vld [vmem:[#allocation16 + $0x8] sm:$0xff] (!%p6297_p12)  ;;  %v7717_v31 = vpack.c.bf16 (!%p6297_p12), %v5678_v60, %v5677_v28 }
 0xd3b   : > { %5438 = vst [vmem:[#allocation2 + $0x60] sm:$0xff] %v5422_v54  ;;  %v5423_v27 = vadd.f32 %v5407_v47, %v5384_v55  ;;  %7668 = vmatprep.subr.bf16.mxu0 (!%p6297_p12), %v8588_v3  ;;  %v5506_v24 = vld [vmem:[#allocation2 + $0x58] sm:$0xff] (!%p6297_p12)  ;;  %7700 = vmatpush3.bf16.msra.mxu1 (!%p6297_p12), %v7699_v37  ;;  %v7711_v12 = vpack.c.bf16 (!%p6297_p12), %v5596_v15, %v5595_v49  ;;  %v5679_v47 = vld [vmem:[#allocation16 + $0x20] sm:$0xff] (!%p6297_p12)  ;;  %v5680_v58 = vld [vmem:[#allocation16 + $0x28] sm:$0xff] (!%p6297_p12) }
 0xd3c   : > { %5441 = vst [vmem:[#allocation2 + $0x78] sm:$0xff] %v5425_v56  ;;  %v5504_v4 = vld [vmem:[#allocation2 + $0x48] sm:$0xff] (!%p6297_p12)  ;;  %v7681_v33 = vpack.c.bf16 (!%p6297_p12), %v5506_v24, %v5505_v18  ;;  %7701 = vmatprep.subr.bf16.mxu1 (!%p6297_p12), %v8588_v3  ;;  %v7714_v23 = vpack.c.bf16 (!%p6297_p12), %v5676_v36, %v5675_v11  ;;  %v7720_v41 = vpack.c.bf16 (!%p6297_p12), %v5680_v58, %v5679_v47  ;;  %v5681_v54 = vld [vmem:[#allocation16 + $0x30] sm:$0xff] (!%p6297_p12)  ;;  %v5682_v55 = vld [vmem:[#allocation16 + $0x38] sm:$0xff] (!%p6297_p12) }
 0xd3d   : > { %5439 = vst [vmem:[#allocation2 + $0x68] sm:$0xff] %v5423_v27  ;;  %v7678_v1 = vpack.c.bf16 (!%p6297_p12), %v5504_v4, %v5503_v62  ;;  %v7723_v56 = vpack.c.bf16 (!%p6297_p12), %v5682_v55, %v5681_v54  ;;  %v5683_v27 = vld [vmem:[#allocation16 + $0x40] sm:$0xff] (!%p6297_p12)  ;;  %v5685_v59 = vld [vmem:[#allocation16 + $0x50] sm:$0xff] (!%p6297_p12)  ;;  %v5686_v48 = vld [vmem:[#allocation16 + $0x58] sm:$0xff] (!%p6297_p12) }
 0xd3e   : > { %7670 = vmatpush3.bf16.msra.mxu0 %v7669_v29  ;;  %v7726_v21 = vpack.c.bf16 %v5684_v57, %v5683_v27  ;;  %v7729_v20 = vpack.c.bf16 %v5686_v48, %v5685_v59  ;;  %v5688_v29 = vld [vmem:[#allocation16 + $0x68] sm:$0xff] }
 0xd3f   : > { %7671 = vmatprep.subr.bf16.mxu0 %v8588_v3  ;;  %7703 = vmatpush3.bf16.msra.mxu1 %v7702_v35 }
 0xd40   : > { %7704 = vmatprep.subr.bf16.mxu1 %v8588_v3 }
 0xd41   : > { %v5509_v44 = vld [vmem:[#allocation2 + $0x70] sm:$0xff] }
 0xd42   : > { %7673 = vmatpush3.bf16.msra.mxu0 %v7672_v17  ;;  %v5507_v53 = vld [vmem:[#allocation2 + $0x60] sm:$0xff] }
 0xd43   : > { %7674 = vmatprep.subr.bf16.mxu0 %v8588_v3  ;;  %v5510_v45 = vld [vmem:[#allocation2 + $0x78] sm:$0xff]  ;;  %7706 = vmatpush3.bf16.msra.mxu1 %v7705_v30  ;;  %v6298_v17 = vld [vmem:[%s10121_s30] ss:$0 sm:$0xff] }
 0xd44   : > { %v5508_v34 = vld [vmem:[#allocation2 + $0x68] sm:$0xff]  ;;  %v7687_v6 = vpack.c.bf16 %v5510_v45, %v5509_v44  ;;  %7707 = vmatprep.subr.bf16.mxu1 %v8588_v3 }
 0xd45   : > { %v7684_v50 = vpack.c.bf16 %v5508_v34, %v5507_v53 }
 0xd46   : > { %7676 = vmatpush3.bf16.msra.mxu0 %v7675_v2 }
 0xd47   : > { %7677 = vmatprep.subr.bf16.mxu0 %v8588_v3  ;;  %7709 = vmatpush3.bf16.msra.mxu1 %v7708_v46 }
 0xd48   : > { %7710 = vmatprep.subr.bf16.mxu1 %v8588_v3 }
 0xd4a   : > { %7679 = vmatpush3.bf16.msra.mxu0 %v7678_v1 }
 0xd4b   : > { %7680 = vmatprep.subr.bf16.mxu0 %v8588_v3  ;;  %7712 = vmatpush3.bf16.msra.mxu1 %v7711_v12 }
 0xd4e   : > { %7682 = vmatpush3.bf16.msra.mxu0 %v7681_v33 }
 0xd4f   : > { %7683 = vmatprep.subr.bf16.mxu0 %v8588_v3 }
 0xd52   : > { %7685 = vmatpush3.bf16.msra.mxu0 %v7684_v50 }
 0xd53   : > { %7686 = vmatprep.subr.bf16.mxu0 %v8588_v3 }
 0xd56   : > { %7688 = vmatpush3.bf16.msra.mxu0 %v7687_v6 }
 0xd57   : > { %7713 = vmatprep.subr.bf16.mxu0 %v8588_v3 }
 0xd59   : > { %7465 = vmatmul.mubr.f32.vlgmr.msra.gmra.mrb[0].mxu0 %v5494_v40 }
 0xd5a   : > { %7534 = vmatprep.mubr.msk.f32.mxu0 %vm8589_vm1, %v8590_v63  ;;  %7715 = vmatpush3.bf16.msra.mxu0 %v7714_v23  ;;  %v5687_v63 = vld [vmem:[#allocation16 + $0x60] sm:$0xff] }
 0xd5b   : > { %7716 = vmatprep.subr.bf16.mxu0 %v8588_v3  ;;  %v7732_v14 = vpack.c.bf16 %v5688_v29, %v5687_v63 }
 0xd5e   : > { %7718 = vmatpush3.bf16.msra.mxu0 %v7717_v31 }
 0xd5f   : > { %7719 = vmatprep.subr.bf16.mxu0 %v8588_v3 }
 0xd62   : > { %7721 = vmatpush3.bf16.msra.mxu0 %v7720_v41 }
 0xd63   : > { %7722 = vmatprep.subr.bf16.mxu0 %v8588_v3 }
 0xd66   : > { %7724 = vmatpush3.bf16.msra.mxu0 %v7723_v56 }
 0xd67   : > { %7725 = vmatprep.subr.bf16.mxu0 %v8588_v3 }
 0xd6a   : > { %7727 = vmatpush3.bf16.msra.mxu0 %v7726_v21 }
 0xd6b   : > { %7728 = vmatprep.subr.bf16.mxu0 %v8588_v3 }
 0xd6e   : > { %7730 = vmatpush3.bf16.msra.mxu0 %v7729_v20 }
 0xd6f   : > { %7731 = vmatprep.subr.bf16.mxu0 %v8588_v3 }
 0xd72   : > { %7733 = vmatpush3.bf16.msra.mxu0 %v7732_v14 }
 0xd73   : > { %7734 = vmatprep.subr.bf16.mxu0 %v8588_v3 }
 0xd76   : > { %7736 = vmatpush3.bf16.msra.mxu0 %v7735_v42 }
 0xe2c   : > { %v5577_v61 = vpop.f32.mrb[0].mxu0 }
 0xe2d   : > { %v7466_v0 = vpop.f32.mrb[1].mxu0  ;;  %7500 = vmatmul.mubr.f32.vlgmr.msra.gmra.mrb[0].mxu1 %v5577_v61 }
 0xf00   : > { %v5670_v52 = vpop.f32.mrb[0].mxu1 }
 0xf01   : > { %v5671_v16 = vadd.f32 %v6298_v17, %v5670_v52  ;;  %v7501_v5 = vpop.f32.mrb[1].mxu1 }
 0xf03   : > { %v5674_v22 = vmax.f32 %v5671_v16, 0.0 }
 0xf05   : > { %7535 = vmatmul.mubr.f32.vlgmr.msra.gmra.mrb[2].mxu0 %v5674_v22 }
 0xfd8   : > { %v5764_v19 = vpop.f32.mrb[2].mxu0 }
 0xfd9   : > { %v5765_v2 = vadd.f32 %v6299_v38, %v5764_v19  ;;  %v7536_v62 = vpop.f32.mrb[3].mxu0 }
 0xfdb   : > { %5768 = vst [vmem:[%s10123_s27] sm:$0xff] %v5765_v2 }
 0xfdc PF: > { %s10124_s22 = sld [smem:[#allocation67_spill]]  ;;  %s10125_s15 = sld [smem:[#allocation64_spill]] }
 0xfdd   : > { %s10126_s16 = sld [smem:[#allocation65_spill]]  ;;  %s10127_s18 = sld [smem:[#allocation68_spill]] }
 0xfe2   : > { %p80_p10 = scmp.ge.s32.totalorder %s10124_s22, 5  }
 0xfe4   :  { %82 = sbr.rel (!%p80_p10) target bundleno = 77 (0x4d), region = 342 }
 0xfeb   :  { %5780 = vsyncpa [#allocation9], 1 }
 0xfec   :  { %5782 = vsyncpa [#allocation9 + $0x1], 1 }
 0xfed   :  { %5783 = vsyncpa [#allocation11], 1 }
 0xfee   :  { %5784 = vsyncpa [#allocation14], 1 }
 0xfef   :  { %5785 = vsyncpa [#allocation17], 1 }

</bundles_post_ra>
